<compile_context>
chip_gen: v7x
topology: tpu7x:2x2x1
jax: 0.10.0
libtpu: 0.0.40
codegen_flags: <defaults>
</compile_context>

<pallas_src>
import numpy as np
import jax
import jax.numpy as jnp
from jax.experimental import pallas as pl
from jax.experimental.pallas import tpu as pltpu

# ----------------------------- configuration -------------------------------
B, T = 2, 4                  # batch, frames
C_IN, H_IN, W_IN = 3, 16, 16
PATCH = 8
NPATCH = (H_IN // PATCH) * (W_IN // PATCH)   # 4 patches / frame
NTOK = NPATCH + 1                            # +cls = 5 tokens / frame
DIM = 32                                     # feature_dim (vit hidden)
NHEADS = 2
HEAD_DIM = DIM // NHEADS
MLP_DIM = 4 * DIM
DEPTH = 2
LN_EPS = 1e-6
HEAD_H1, HEAD_H2, NUM_CLASSES = 512, 128, 2  # Sequential head dims from module
BLK_ROWS = 16                                # per-block rows in the vector slab


# ------------------------------ fused kernel --------------------------------
def _vit_kernel(xp_ref, base_ref, patch_w_ref, attn_w_ref, fc1_w_ref, fc2_w_ref,
                blk_ref, misc_ref, w1_ref, w2_ref, w3_ref,
                mask_ref, pool_ref, o_ref):
    f32, bf16 = jnp.float32, jnp.bfloat16
    btn = base_ref.shape[0]
    bt = btn // NTOK

    def vec(ref, row, n):                       # (1, n) f32 parameter row
        return ref[row:row + 1, :n]

    def layer_norm(v, g, b):
        mu = jnp.mean(v, axis=-1, keepdims=True)
        var = jnp.mean(v * v, axis=-1, keepdims=True) - mu * mu
        return (v - mu) * jax.lax.rsqrt(var + LN_EPS) * g + b

    # ---- patch embedding: single lane-dense matmul, rows already in token order
    emb = jnp.dot(xp_ref[...].astype(bf16), patch_w_ref[...],
                  preferred_element_type=f32)                  # (BT*NPATCH, DIM)
    # token layout: rows [0, BT) = cls tokens, rows [BT, BTN) = patch tokens
    x = jnp.concatenate([base_ref[:bt, :], base_ref[bt:, :] + emb], axis=0)

    mask = mask_ref[...]                                       # (NHEADS*BTN, BTN)

    for d in range(DEPTH):
        r0 = d * BLK_ROWS
        # --- multi-head self-attention (pre-norm) ---
        h = layer_norm(x, vec(blk_ref, r0 + 0, DIM), vec(blk_ref, r0 + 1, DIM))
        hb = h.astype(bf16)
        s_heads, v_heads = [], []
        for hd in range(NHEADS):
            wi = (d * NHEADS + hd) * 4          # Wq, Wk, Wv, Wproj (all (DIM,DIM))
            rb = r0 + 7 + hd * 3                # bq, bk, bv rows
            q = jnp.dot(hb, attn_w_ref[wi + 0],
                        preferred_element_type=f32) + vec(blk_ref, rb + 0, DIM)
            k = jnp.dot(hb, attn_w_ref[wi + 1],
                        preferred_element_type=f32) + vec(blk_ref, rb + 1, DIM)
            v = jnp.dot(hb, attn_w_ref[wi + 2],
                        preferred_element_type=f32) + vec(blk_ref, rb + 2, DIM)
            s_heads.append(jax.lax.dot_general(
                q.astype(bf16), k.astype(bf16), (((1,), (1,)), ((), ())),
                preferred_element_type=f32))                    # (BTN, BTN)
            v_heads.append(v.astype(bf16))

        # merged masked softmax for both heads: one (NHEADS*BTN, BTN) tile
        s = jnp.concatenate(s_heads, axis=0) + mask
        s = s - jnp.max(s, axis=-1, keepdims=True)
        p = jnp.exp(s)
        p = p * pl.reciprocal(jnp.sum(p, axis=-1, keepdims=True), approx=True)
        p = p.astype(bf16)

        attn_out = jnp.zeros((btn, DIM), f32)
        for hd in range(NHEADS):
            wi = (d * NHEADS + hd) * 4
            o = jnp.dot(p[hd * btn:(hd + 1) * btn, :], v_heads[hd],
                        preferred_element_type=f32)             # (BTN, DIM) padded
            attn_out = attn_out + jnp.dot(o.astype(bf16), attn_w_ref[wi + 3],
                                          preferred_element_type=f32)
        x = x + attn_out + vec(blk_ref, r0 + 4, DIM)

        # --- MLP (pre-norm) ---
        h = layer_norm(x, vec(blk_ref, r0 + 2, DIM), vec(blk_ref, r0 + 3, DIM))
        h = jnp.dot(h.astype(bf16), fc1_w_ref[d],
                    preferred_element_type=f32) + vec(blk_ref, r0 + 5, MLP_DIM)
        # TODO(synk): tanh-approx GELU; PyTorch nn.GELU default is exact erf.
        h = jax.nn.gelu(h)
        x = x + jnp.dot(h.astype(bf16), fc2_w_ref[d],
                        preferred_element_type=f32) + vec(blk_ref, r0 + 6, DIM)

    # --- final LN, cls pooling + frame mean via one precomputed selection matmul
    xn = layer_norm(x, vec(misc_ref, 0, DIM), vec(misc_ref, 1, DIM))
    feat = jnp.dot(pool_ref[...].astype(bf16), xn.astype(bf16),
                   preferred_element_type=f32)                  # (B, DIM)

    # --- classification head (dropout = identity in eval) ---
    h = jnp.maximum(jnp.dot(feat.astype(bf16), w1_ref[...],
                            preferred_element_type=f32) + vec(misc_ref, 2, HEAD_H1), 0.0)
    h = jnp.maximum(jnp.dot(h.astype(bf16), w2_ref[...],
                            preferred_element_type=f32) + vec(misc_ref, 3, HEAD_H2), 0.0)
    logits = jnp.dot(h.astype(bf16), w3_ref[...],
                     preferred_element_type=f32) + vec(misc_ref, 4, NUM_CLASSES)
    o_ref[...] = logits.astype(o_ref.dtype)


# ------------------------------ wrapper --------------------------------------
_ARG_ORDER = ("base", "patch_w", "attn_w", "fc1_w", "fc2_w",
              "blk_vec", "misc", "w1", "w2", "w3", "mask", "pool")


def vit_video_classifier(kp, x):
    """x: (B, T, C, H, W) float32 -> logits (B, NUM_CLASSES)."""
    bb, tt, cc, hh, ww = x.shape
    nh, nw = hh // PATCH, ww // PATCH
    # wrapper-side patch extraction (tiny tensor, one XLA transpose) so the
    # kernel consumes lane-dense (BT*NPATCH, C*P*P) patch rows directly.
    xp = x.reshape(bb * tt, cc, nh, PATCH, nw, PATCH)
    xp = xp.transpose(0, 2, 4, 1, 3, 5).reshape(bb * tt * nh * nw,
                                                cc * PATCH * PATCH)
    xp = xp.astype(jnp.float32)

    args = [xp] + [kp[k] for k in _ARG_ORDER]
    return pl.pallas_call(
        _vit_kernel,
        out_shape=jax.ShapeDtypeStruct((bb, NUM_CLASSES), jnp.float32),
        in_specs=[pl.BlockSpec(memory_space=pltpu.MemorySpace.VMEM)
                  for _ in args],
        out_specs=pl.BlockSpec(memory_space=pltpu.MemorySpace.VMEM),
    )(*args)


# ------------------------------ parameter init -------------------------------
def init_params(key):
    def nrm(k, shape, std=0.02):
        return (std * jax.random.normal(k, shape)).astype(jnp.float32)

    ks = iter(jax.random.split(key, 64))
    params = {
        "patch_w": nrm(next(ks), (C_IN * PATCH * PATCH, DIM)),
        "patch_b": jnp.zeros((DIM,), jnp.float32),
        "cls": nrm(next(ks), (1, 1, DIM)),
        "pos": nrm(next(ks), (1, NTOK, DIM)),
        "ln_f_g": jnp.ones((DIM,), jnp.float32),
        "ln_f_b": jnp.zeros((DIM,), jnp.float32),
        "blocks": [],
        "head": {
            "w1": nrm(next(ks), (DIM, HEAD_H1)), "b1": jnp.zeros((HEAD_H1,), jnp.float32),
            "w2": nrm(next(ks), (HEAD_H1, HEAD_H2)), "b2": jnp.zeros((HEAD_H2,), jnp.float32),
            "w3": nrm(next(ks), (HEAD_H2, NUM_CLASSES)), "b3": jnp.zeros((NUM_CLASSES,), jnp.float32),
        },
    }
    for _ in range(DEPTH):
        params["blocks"].append({
            "ln1_g": jnp.ones((DIM,), jnp.float32), "ln1_b": jnp.zeros((DIM,), jnp.float32),
            "qkv_w": nrm(next(ks), (DIM, 3 * DIM)), "qkv_b": jnp.zeros((3 * DIM,), jnp.float32),
            "proj_w": nrm(next(ks), (DIM, DIM)), "proj_b": jnp.zeros((DIM,), jnp.float32),
            "ln2_g": jnp.ones((DIM,), jnp.float32), "ln2_b": jnp.zeros((DIM,), jnp.float32),
            "fc1_w": nrm(next(ks), (DIM, MLP_DIM)), "fc1_b": jnp.zeros((MLP_DIM,), jnp.float32),
            "fc2_w": nrm(next(ks), (MLP_DIM, DIM)), "fc2_b": jnp.zeros((DIM,), jnp.float32),
        })
    return params


def prepare_params(params, batch, frames):
    """One-time weight preprocessing for the fused kernel (outside jit)."""
    f32 = np.float32
    bt = batch * frames
    btn = bt * NTOK
    scale = HEAD_DIM ** -0.5

    # Token scaffold (cls-first layout): rows [0,BT) = cls+pos[0];
    # rows [BT,BTN) (frame-major, patch-minor) = pos[1+p]+patch_bias.
    pos = np.asarray(params["pos"], f32)[0]                     # (NTOK, DIM)
    cls = np.asarray(params["cls"], f32).reshape(DIM)
    pb = np.asarray(params["patch_b"], f32)
    base = np.concatenate(
        [np.tile((cls + pos[0])[None, :], (bt, 1)),
         np.tile(pos[1:] + pb[None, :], (bt, 1))], axis=0)      # (BTN, DIM)

    # Precomputed constants (no in-kernel iota/where).
    frame_of = np.concatenate([np.arange(bt),
                               np.repeat(np.arange(bt), NPATCH)]).astype(np.int32)
    mask = np.where(frame_of[:, None] == frame_of[None, :], 0.0, -1e30).astype(f32)
    mask = np.tile(mask, (NHEADS, 1))                           # (NHEADS*BTN, BTN)
    pool = np.zeros((batch, btn), f32)
    for b in range(batch):
        pool[b, b * frames:(b + 1) * frames] = 1.0 / frames     # mean over cls tokens

    # Per-head attention weights, zero-padded to (DIM, DIM); scale folded into Wq/bq.
    attn_w = np.zeros((DEPTH * NHEADS * 4, DIM, DIM), f32)
    blk_vec = np.zeros((DEPTH * BLK_ROWS, 128), f32)
    fc1_w = np.zeros((DEPTH, DIM, MLP_DIM), f32)
    fc2_w = np.zeros((DEPTH, MLP_DIM, DIM), f32)
    for d, blk in enumerate(params["blocks"]):
        qkv_w = np.asarray(blk["qkv_w"], f32)
        qkv_b = np.asarray(blk["qkv_b"], f32)
        proj_w = np.asarray(blk["proj_w"], f32)
        wq, wk, wv = qkv_w[:, :DIM], qkv_w[:, DIM:2 * DIM], qkv_w[:, 2 * DIM:]
        bq, bk, bv = qkv_b[:DIM], qkv_b[DIM:2 * DIM], qkv_b[2 * DIM:]
        r0 = d * BLK_ROWS
        for hd in range(NHEADS):
            sl = slice(hd * HEAD_DIM, (hd + 1) * HEAD_DIM)
            wi = (d * NHEADS + hd) * 4
            attn_w[wi + 0, :, :HEAD_DIM] = wq[:, sl] * scale
            attn_w[wi + 1, :, :HEAD_DIM] = wk[:, sl]
            attn_w[wi + 2, :, :HEAD_DIM] = wv[:, sl]
            attn_w[wi + 3, :HEAD_DIM, :] = proj_w[sl, :]
            rb = r0 + 7 + hd * 3
            blk_vec[rb + 0, :HEAD_DIM] = bq[sl] * scale
            blk_vec[rb + 1, :HEAD_DIM] = bk[sl]
            blk_vec[rb + 2, :HEAD_DIM] = bv[sl]
        blk_vec[r0 + 0, :DIM] = np.asarray(blk["ln1_g"], f32)
        blk_vec[r0 + 1, :DIM] = np.asarray(blk["ln1_b"], f32)
        blk_vec[r0 + 2, :DIM] = np.asarray(blk["ln2_g"], f32)
        blk_vec[r0 + 3, :DIM] = np.asarray(blk["ln2_b"], f32)
        blk_vec[r0 + 4, :DIM] = np.asarray(blk["proj_b"], f32)
        blk_vec[r0 + 5, :MLP_DIM] = np.asarray(blk["fc1_b"], f32)
        blk_vec[r0 + 6, :DIM] = np.asarray(blk["fc2_b"], f32)
        fc1_w[d] = np.asarray(blk["fc1_w"], f32)
        fc2_w[d] = np.asarray(blk["fc2_w"], f32)

    misc = np.zeros((8, HEAD_H1), f32)
    misc[0, :DIM] = np.asarray(params["ln_f_g"], f32)
    misc[1, :DIM] = np.asarray(params["ln_f_b"], f32)
    misc[2, :HEAD_H1] = np.asarray(params["head"]["b1"], f32)
    misc[3, :HEAD_H2] = np.asarray(params["head"]["b2"], f32)
    misc[4, :NUM_CLASSES] = np.asarray(params["head"]["b3"], f32)

    bf16 = jnp.bfloat16
    return {
        "base": jnp.asarray(base),
        "patch_w": jnp.asarray(np.asarray(params["patch_w"], f32)).astype(bf16),
        "attn_w": jnp.asarray(attn_w).astype(bf16),
        "fc1_w": jnp.asarray(fc1_w).astype(bf16),
        "fc2_w": jnp.asarray(fc2_w).astype(bf16),
        "blk_vec": jnp.asarray(blk_vec),
        "misc": jnp.asarray(misc),
        "w1": jnp.asarray(params["head"]["w1"]).astype(bf16),
        "w2": jnp.asarray(params["head"]["w2"]).astype(bf16),
        "w3": jnp.asarray(params["head"]["w3"]).astype(bf16),
        "mask": jnp.asarray(mask),
        "pool": jnp.asarray(pool),
    }


# ----------------------------------- main ------------------------------------
if __name__ == "__main__":
    key = jax.random.PRNGKey(0)
    pkey, xkey = jax.random.split(key)
    params = init_params(pkey)
    kernel_params = prepare_params(params, B, T)
    x = jax.random.normal(xkey, (B, T, C_IN, H_IN, W_IN), jnp.float32)

    logits = jax.jit(vit_video_classifier)(kernel_params, x)
    logits = jax.block_until_ready(logits)

    assert logits.shape == (B, NUM_CLASSES), logits.shape
    assert bool(jnp.all(jnp.isfinite(logits)))
    print("KERNEL_OK")
</pallas_src>

<mosaic_0001>
module attributes {stable_mosaic.version = 11 : i64} {
  func.func @_vit_kernel(%arg0: memref<32x192xf32, #tpu.memory_space<vmem>>, %arg1: memref<40x32xf32, #tpu.memory_space<vmem>>, %arg2: memref<192x32xbf16, #tpu.memory_space<vmem>>, %arg3: memref<16x32x32xbf16, #tpu.memory_space<vmem>>, %arg4: memref<2x32x128xbf16, #tpu.memory_space<vmem>>, %arg5: memref<2x128x32xbf16, #tpu.memory_space<vmem>>, %arg6: memref<32x128xf32, #tpu.memory_space<vmem>>, %arg7: memref<8x512xf32, #tpu.memory_space<vmem>>, %arg8: memref<32x512xbf16, #tpu.memory_space<vmem>>, %arg9: memref<512x128xbf16, #tpu.memory_space<vmem>>, %arg10: memref<128x2xbf16, #tpu.memory_space<vmem>>, %arg11: memref<80x40xf32, #tpu.memory_space<vmem>>, %arg12: memref<2x40xf32, #tpu.memory_space<vmem>>, %arg13: memref<2x2xf32, #tpu.memory_space<vmem>>) attributes {dimension_semantics = [], scalar_prefetch = 0 : i64, scratch_operands = 0 : i64, tpu.core_type = #tpu.core_type<tc>} {
    %c0 = arith.constant 0 : index
    %c0_0 = arith.constant 0 : index
    %0 = vector.load %arg0[%c0, %c0_0] : memref<32x192xf32, #tpu.memory_space<vmem>>, vector<32x192xf32>
    %1 = arith.truncf %0 : vector<32x192xf32> to vector<32x192xbf16>
    %c0_1 = arith.constant 0 : index
    %c0_2 = arith.constant 0 : index
    %2 = vector.load %arg2[%c0_1, %c0_2] : memref<192x32xbf16, #tpu.memory_space<vmem>>, vector<192x32xbf16>
    %cst = arith.constant dense<0.000000e+00> : vector<32x32xf32>
    %3 = tpu.matmul %1, %2, %cst {dimension_numbers = #tpu.dot_dimension_numbers<[1], [0], [0], [1], [0, 0, 1, 1], [], []>} : vector<32x192xbf16>, vector<192x32xbf16>, vector<32x32xf32> -> vector<32x32xf32>
    %c0_3 = arith.constant 0 : index
    %c0_4 = arith.constant 0 : index
    %4 = vector.load %arg1[%c0_3, %c0_4] : memref<40x32xf32, #tpu.memory_space<vmem>>, vector<8x32xf32>
    %c8 = arith.constant 8 : index
    %c0_5 = arith.constant 0 : index
    %5 = vector.load %arg1[%c8, %c0_5] : memref<40x32xf32, #tpu.memory_space<vmem>>, vector<32x32xf32>
    %6 = arith.addf %5, %3 : vector<32x32xf32>
    %7 = tpu.concatenate %4, %6 in 0 : vector<8x32xf32>, vector<32x32xf32> -> vector<40x32xf32>
    %c0_6 = arith.constant 0 : index
    %c0_7 = arith.constant 0 : index
    %8 = vector.load %arg11[%c0_6, %c0_7] : memref<80x40xf32, #tpu.memory_space<vmem>>, vector<80x40xf32>
    %c0_8 = arith.constant 0 : index
    %c0_9 = arith.constant 0 : index
    %9 = vector.load %arg6[%c0_8, %c0_9] : memref<32x128xf32, #tpu.memory_space<vmem>>, vector<1x32xf32>
    %c1 = arith.constant 1 : index
    %c0_10 = arith.constant 0 : index
    %10 = vector.load %arg6[%c1, %c0_10] : memref<32x128xf32, #tpu.memory_space<vmem>>, vector<1x32xf32>
    %cst_11 = arith.constant dense<0.000000e+00> : vector<40xf32>
    %11 = vector.multi_reduction <add>, %7, %cst_11 [1] : vector<40x32xf32> to vector<40xf32>
    %12 = vector.shape_cast %11 : vector<40xf32> to vector<40x1xf32>
    %cst_12 = arith.constant 3.200000e+01 : f32
    %13 = vector.broadcast %cst_12 : f32 to vector<40x1xf32>
    %14 = arith.divf %12, %13 : vector<40x1xf32>
    %15 = arith.mulf %7, %7 : vector<40x32xf32>
    %cst_13 = arith.constant dense<0.000000e+00> : vector<40xf32>
    %16 = vector.multi_reduction <add>, %15, %cst_13 [1] : vector<40x32xf32> to vector<40xf32>
    %17 = vector.shape_cast %16 : vector<40xf32> to vector<40x1xf32>
    %cst_14 = arith.constant 3.200000e+01 : f32
    %18 = vector.broadcast %cst_14 : f32 to vector<40x1xf32>
    %19 = arith.divf %17, %18 : vector<40x1xf32>
    %20 = arith.mulf %14, %14 : vector<40x1xf32>
    %21 = arith.subf %19, %20 : vector<40x1xf32>
    %22 = vector.broadcast %14 : vector<40x1xf32> to vector<40x32xf32>
    %23 = arith.subf %7, %22 : vector<40x32xf32>
    %cst_15 = arith.constant 9.99999997E-7 : f32
    %24 = vector.broadcast %cst_15 : f32 to vector<40x1xf32>
    %25 = arith.addf %21, %24 : vector<40x1xf32>
    %26 = math.rsqrt %25 : vector<40x1xf32>
    %27 = vector.broadcast %26 : vector<40x1xf32> to vector<40x32xf32>
    %28 = arith.mulf %23, %27 : vector<40x32xf32>
    %29 = vector.broadcast %9 : vector<1x32xf32> to vector<40x32xf32>
    %30 = arith.mulf %28, %29 : vector<40x32xf32>
    %31 = vector.broadcast %10 : vector<1x32xf32> to vector<40x32xf32>
    %32 = arith.addf %30, %31 : vector<40x32xf32>
    %33 = arith.truncf %32 : vector<40x32xf32> to vector<40x32xbf16>
    %c0_16 = arith.constant 0 : index
    %c0_17 = arith.constant 0 : index
    %c0_18 = arith.constant 0 : index
    %34 = vector.load %arg3[%c0_16, %c0_17, %c0_18] : memref<16x32x32xbf16, #tpu.memory_space<vmem>>, vector<1x32x32xbf16>
    %35 = vector.shape_cast %34 : vector<1x32x32xbf16> to vector<32x32xbf16>
    %cst_19 = arith.constant dense<0.000000e+00> : vector<40x32xf32>
    %36 = tpu.matmul %33, %35, %cst_19 {dimension_numbers = #tpu.dot_dimension_numbers<[1], [0], [0], [1], [0, 0, 1, 1], [], []>} : vector<40x32xbf16>, vector<32x32xbf16>, vector<40x32xf32> -> vector<40x32xf32>
    %c7 = arith.constant 7 : index
    %c0_20 = arith.constant 0 : index
    %37 = vector.load %arg6[%c7, %c0_20] : memref<32x128xf32, #tpu.memory_space<vmem>>, vector<1x32xf32>
    %38 = vector.broadcast %37 : vector<1x32xf32> to vector<40x32xf32>
    %39 = arith.addf %36, %38 : vector<40x32xf32>
    %c1_21 = arith.constant 1 : index
    %c0_22 = arith.constant 0 : index
    %c0_23 = arith.constant 0 : index
    %40 = vector.load %arg3[%c1_21, %c0_22, %c0_23] : memref<16x32x32xbf16, #tpu.memory_space<vmem>>, vector<1x32x32xbf16>
    %41 = vector.shape_cast %40 : vector<1x32x32xbf16> to vector<32x32xbf16>
    %cst_24 = arith.constant dense<0.000000e+00> : vector<40x32xf32>
    %42 = tpu.matmul %33, %41, %cst_24 {dimension_numbers = #tpu.dot_dimension_numbers<[1], [0], [0], [1], [0, 0, 1, 1], [], []>} : vector<40x32xbf16>, vector<32x32xbf16>, vector<40x32xf32> -> vector<40x32xf32>
    %c8_25 = arith.constant 8 : index
    %c0_26 = arith.constant 0 : index
    %43 = vector.load %arg6[%c8_25, %c0_26] : memref<32x128xf32, #tpu.memory_space<vmem>>, vector<1x32xf32>
    %44 = vector.broadcast %43 : vector<1x32xf32> to vector<40x32xf32>
    %45 = arith.addf %42, %44 : vector<40x32xf32>
    %c2 = arith.constant 2 : index
    %c0_27 = arith.constant 0 : index
    %c0_28 = arith.constant 0 : index
    %46 = vector.load %arg3[%c2, %c0_27, %c0_28] : memref<16x32x32xbf16, #tpu.memory_space<vmem>>, vector<1x32x32xbf16>
    %47 = vector.shape_cast %46 : vector<1x32x32xbf16> to vector<32x32xbf16>
    %cst_29 = arith.constant dense<0.000000e+00> : vector<40x32xf32>
    %48 = tpu.matmul %33, %47, %cst_29 {dimension_numbers = #tpu.dot_dimension_numbers<[1], [0], [0], [1], [0, 0, 1, 1], [], []>} : vector<40x32xbf16>, vector<32x32xbf16>, vector<40x32xf32> -> vector<40x32xf32>
    %c9 = arith.constant 9 : index
    %c0_30 = arith.constant 0 : index
    %49 = vector.load %arg6[%c9, %c0_30] : memref<32x128xf32, #tpu.memory_space<vmem>>, vector<1x32xf32>
    %50 = vector.broadcast %49 : vector<1x32xf32> to vector<40x32xf32>
    %51 = arith.addf %48, %50 : vector<40x32xf32>
    %52 = arith.truncf %39 : vector<40x32xf32> to vector<40x32xbf16>
    %53 = arith.truncf %45 : vector<40x32xf32> to vector<40x32xbf16>
    %cst_31 = arith.constant dense<0.000000e+00> : vector<40x40xf32>
    %54 = tpu.matmul %52, %53, %cst_31 {dimension_numbers = #tpu.dot_dimension_numbers<[1], [1], [0], [0], [0, 0, 1, 0], [], []>} : vector<40x32xbf16>, vector<40x32xbf16>, vector<40x40xf32> -> vector<40x40xf32>
    %55 = arith.truncf %51 : vector<40x32xf32> to vector<40x32xbf16>
    %c4 = arith.constant 4 : index
    %c0_32 = arith.constant 0 : index
    %c0_33 = arith.constant 0 : index
    %56 = vector.load %arg3[%c4, %c0_32, %c0_33] : memref<16x32x32xbf16, #tpu.memory_space<vmem>>, vector<1x32x32xbf16>
    %57 = vector.shape_cast %56 : vector<1x32x32xbf16> to vector<32x32xbf16>
    %cst_34 = arith.constant dense<0.000000e+00> : vector<40x32xf32>
    %58 = tpu.matmul %33, %57, %cst_34 {dimension_numbers = #tpu.dot_dimension_numbers<[1], [0], [0], [1], [0, 0, 1, 1], [], []>} : vector<40x32xbf16>, vector<32x32xbf16>, vector<40x32xf32> -> vector<40x32xf32>
    %c10 = arith.constant 10 : index
    %c0_35 = arith.constant 0 : index
    %59 = vector.load %arg6[%c10, %c0_35] : memref<32x128xf32, #tpu.memory_space<vmem>>, vector<1x32xf32>
    %60 = vector.broadcast %59 : vector<1x32xf32> to vector<40x32xf32>
    %61 = arith.addf %58, %60 : vector<40x32xf32>
    %c5 = arith.constant 5 : index
    %c0_36 = arith.constant 0 : index
    %c0_37 = arith.constant 0 : index
    %62 = vector.load %arg3[%c5, %c0_36, %c0_37] : memref<16x32x32xbf16, #tpu.memory_space<vmem>>, vector<1x32x32xbf16>
    %63 = vector.shape_cast %62 : vector<1x32x32xbf16> to vector<32x32xbf16>
    %cst_38 = arith.constant dense<0.000000e+00> : vector<40x32xf32>
    %64 = tpu.matmul %33, %63, %cst_38 {dimension_numbers = #tpu.dot_dimension_numbers<[1], [0], [0], [1], [0, 0, 1, 1], [], []>} : vector<40x32xbf16>, vector<32x32xbf16>, vector<40x32xf32> -> vector<40x32xf32>
    %c11 = arith.constant 11 : index
    %c0_39 = arith.constant 0 : index
    %65 = vector.load %arg6[%c11, %c0_39] : memref<32x128xf32, #tpu.memory_space<vmem>>, vector<1x32xf32>
    %66 = vector.broadcast %65 : vector<1x32xf32> to vector<40x32xf32>
    %67 = arith.addf %64, %66 : vector<40x32xf32>
    %c6 = arith.constant 6 : index
    %c0_40 = arith.constant 0 : index
    %c0_41 = arith.constant 0 : index
    %68 = vector.load %arg3[%c6, %c0_40, %c0_41] : memref<16x32x32xbf16, #tpu.memory_space<vmem>>, vector<1x32x32xbf16>
    %69 = vector.shape_cast %68 : vector<1x32x32xbf16> to vector<32x32xbf16>
    %cst_42 = arith.constant dense<0.000000e+00> : vector<40x32xf32>
    %70 = tpu.matmul %33, %69, %cst_42 {dimension_numbers = #tpu.dot_dimension_numbers<[1], [0], [0], [1], [0, 0, 1, 1], [], []>} : vector<40x32xbf16>, vector<32x32xbf16>, vector<40x32xf32> -> vector<40x32xf32>
    %c12 = arith.constant 12 : index
    %c0_43 = arith.constant 0 : index
    %71 = vector.load %arg6[%c12, %c0_43] : memref<32x128xf32, #tpu.memory_space<vmem>>, vector<1x32xf32>
    %72 = vector.broadcast %71 : vector<1x32xf32> to vector<40x32xf32>
    %73 = arith.addf %70, %72 : vector<40x32xf32>
    %74 = arith.truncf %61 : vector<40x32xf32> to vector<40x32xbf16>
    %75 = arith.truncf %67 : vector<40x32xf32> to vector<40x32xbf16>
    %cst_44 = arith.constant dense<0.000000e+00> : vector<40x40xf32>
    %76 = tpu.matmul %74, %75, %cst_44 {dimension_numbers = #tpu.dot_dimension_numbers<[1], [1], [0], [0], [0, 0, 1, 0], [], []>} : vector<40x32xbf16>, vector<40x32xbf16>, vector<40x40xf32> -> vector<40x40xf32>
    %77 = arith.truncf %73 : vector<40x32xf32> to vector<40x32xbf16>
    %78 = tpu.concatenate %54, %76 in 0 : vector<40x40xf32>, vector<40x40xf32> -> vector<80x40xf32>
    %79 = arith.addf %78, %8 : vector<80x40xf32>
    %cst_45 = arith.constant dense<0xFF800000> : vector<80xf32>
    %80 = vector.multi_reduction <maximumf>, %79, %cst_45 [1] : vector<80x40xf32> to vector<80xf32>
    %81 = vector.shape_cast %80 : vector<80xf32> to vector<80x1xf32>
    %82 = vector.broadcast %81 : vector<80x1xf32> to vector<80x40xf32>
    %83 = arith.subf %79, %82 : vector<80x40xf32>
    %84 = math.exp %83 : vector<80x40xf32>
    %cst_46 = arith.constant dense<0.000000e+00> : vector<80xf32>
    %85 = vector.multi_reduction <add>, %84, %cst_46 [1] : vector<80x40xf32> to vector<80xf32>
    %86 = vector.shape_cast %85 : vector<80xf32> to vector<80x1xf32>
    %87 = tpu.reciprocal %86 {approx = true} : vector<80x1xf32> -> vector<80x1xf32>
    %88 = vector.broadcast %87 : vector<80x1xf32> to vector<80x40xf32>
    %89 = arith.mulf %84, %88 : vector<80x40xf32>
    %90 = arith.truncf %89 : vector<80x40xf32> to vector<80x40xbf16>
    %cst_47 = arith.constant 0.000000e+00 : f32
    %91 = vector.broadcast %cst_47 : f32 to vector<40x32xf32>
    %92 = vector.extract_strided_slice %90 {offsets = [0, 0], sizes = [40, 40], strides = [1, 1]} : vector<80x40xbf16> to vector<40x40xbf16>
    %cst_48 = arith.constant dense<0.000000e+00> : vector<40x32xf32>
    %93 = tpu.matmul %92, %55, %cst_48 {dimension_numbers = #tpu.dot_dimension_numbers<[1], [0], [0], [1], [0, 0, 1, 1], [], []>} : vector<40x40xbf16>, vector<40x32xbf16>, vector<40x32xf32> -> vector<40x32xf32>
    %94 = arith.truncf %93 : vector<40x32xf32> to vector<40x32xbf16>
    %c3 = arith.constant 3 : index
    %c0_49 = arith.constant 0 : index
    %c0_50 = arith.constant 0 : index
    %95 = vector.load %arg3[%c3, %c0_49, %c0_50] : memref<16x32x32xbf16, #tpu.memory_space<vmem>>, vector<1x32x32xbf16>
    %96 = vector.shape_cast %95 : vector<1x32x32xbf16> to vector<32x32xbf16>
    %cst_51 = arith.constant dense<0.000000e+00> : vector<40x32xf32>
    %97 = tpu.matmul %94, %96, %cst_51 {dimension_numbers = #tpu.dot_dimension_numbers<[1], [0], [0], [1], [0, 0, 1, 1], [], []>} : vector<40x32xbf16>, vector<32x32xbf16>, vector<40x32xf32> -> vector<40x32xf32>
    %98 = arith.addf %91, %97 : vector<40x32xf32>
    %99 = vector.extract_strided_slice %90 {offsets = [40, 0], sizes = [40, 40], strides = [1, 1]} : vector<80x40xbf16> to vector<40x40xbf16>
    %cst_52 = arith.constant dense<0.000000e+00> : vector<40x32xf32>
    %100 = tpu.matmul %99, %77, %cst_52 {dimension_numbers = #tpu.dot_dimension_numbers<[1], [0], [0], [1], [0, 0, 1, 1], [], []>} : vector<40x40xbf16>, vector<40x32xbf16>, vector<40x32xf32> -> vector<40x32xf32>
    %101 = arith.truncf %100 : vector<40x32xf32> to vector<40x32xbf16>
    %c7_53 = arith.constant 7 : index
    %c0_54 = arith.constant 0 : index
    %c0_55 = arith.constant 0 : index
    %102 = vector.load %arg3[%c7_53, %c0_54, %c0_55] : memref<16x32x32xbf16, #tpu.memory_space<vmem>>, vector<1x32x32xbf16>
    %103 = vector.shape_cast %102 : vector<1x32x32xbf16> to vector<32x32xbf16>
    %cst_56 = arith.constant dense<0.000000e+00> : vector<40x32xf32>
    %104 = tpu.matmul %101, %103, %cst_56 {dimension_numbers = #tpu.dot_dimension_numbers<[1], [0], [0], [1], [0, 0, 1, 1], [], []>} : vector<40x32xbf16>, vector<32x32xbf16>, vector<40x32xf32> -> vector<40x32xf32>
    %105 = arith.addf %98, %104 : vector<40x32xf32>
    %106 = arith.addf %7, %105 : vector<40x32xf32>
    %c4_57 = arith.constant 4 : index
    %c0_58 = arith.constant 0 : index
    %107 = vector.load %arg6[%c4_57, %c0_58] : memref<32x128xf32, #tpu.memory_space<vmem>>, vector<1x32xf32>
    %108 = vector.broadcast %107 : vector<1x32xf32> to vector<40x32xf32>
    %109 = arith.addf %106, %108 : vector<40x32xf32>
    %c2_59 = arith.constant 2 : index
    %c0_60 = arith.constant 0 : index
    %110 = vector.load %arg6[%c2_59, %c0_60] : memref<32x128xf32, #tpu.memory_space<vmem>>, vector<1x32xf32>
    %c3_61 = arith.constant 3 : index
    %c0_62 = arith.constant 0 : index
    %111 = vector.load %arg6[%c3_61, %c0_62] : memref<32x128xf32, #tpu.memory_space<vmem>>, vector<1x32xf32>
    %cst_63 = arith.constant dense<0.000000e+00> : vector<40xf32>
    %112 = vector.multi_reduction <add>, %109, %cst_63 [1] : vector<40x32xf32> to vector<40xf32>
    %113 = vector.shape_cast %112 : vector<40xf32> to vector<40x1xf32>
    %cst_64 = arith.constant 3.200000e+01 : f32
    %114 = vector.broadcast %cst_64 : f32 to vector<40x1xf32>
    %115 = arith.divf %113, %114 : vector<40x1xf32>
    %116 = arith.mulf %109, %109 : vector<40x32xf32>
    %cst_65 = arith.constant dense<0.000000e+00> : vector<40xf32>
    %117 = vector.multi_reduction <add>, %116, %cst_65 [1] : vector<40x32xf32> to vector<40xf32>
    %118 = vector.shape_cast %117 : vector<40xf32> to vector<40x1xf32>
    %cst_66 = arith.constant 3.200000e+01 : f32
    %119 = vector.broadcast %cst_66 : f32 to vector<40x1xf32>
    %120 = arith.divf %118, %119 : vector<40x1xf32>
    %121 = arith.mulf %115, %115 : vector<40x1xf32>
    %122 = arith.subf %120, %121 : vector<40x1xf32>
    %123 = vector.broadcast %115 : vector<40x1xf32> to vector<40x32xf32>
    %124 = arith.subf %109, %123 : vector<40x32xf32>
    %cst_67 = arith.constant 9.99999997E-7 : f32
    %125 = vector.broadcast %cst_67 : f32 to vector<40x1xf32>
    %126 = arith.addf %122, %125 : vector<40x1xf32>
    %127 = math.rsqrt %126 : vector<40x1xf32>
    %128 = vector.broadcast %127 : vector<40x1xf32> to vector<40x32xf32>
    %129 = arith.mulf %124, %128 : vector<40x32xf32>
    %130 = vector.broadcast %110 : vector<1x32xf32> to vector<40x32xf32>
    %131 = arith.mulf %129, %130 : vector<40x32xf32>
    %132 = vector.broadcast %111 : vector<1x32xf32> to vector<40x32xf32>
    %133 = arith.addf %131, %132 : vector<40x32xf32>
    %134 = arith.truncf %133 : vector<40x32xf32> to vector<40x32xbf16>
    %c0_68 = arith.constant 0 : index
    %c0_69 = arith.constant 0 : index
    %c0_70 = arith.constant 0 : index
    %135 = vector.load %arg4[%c0_68, %c0_69, %c0_70] : memref<2x32x128xbf16, #tpu.memory_space<vmem>>, vector<1x32x128xbf16>
    %136 = vector.shape_cast %135 : vector<1x32x128xbf16> to vector<32x128xbf16>
    %cst_71 = arith.constant dense<0.000000e+00> : vector<40x128xf32>
    %137 = tpu.matmul %134, %136, %cst_71 {dimension_numbers = #tpu.dot_dimension_numbers<[1], [0], [0], [1], [0, 0, 1, 1], [], []>} : vector<40x32xbf16>, vector<32x128xbf16>, vector<40x128xf32> -> vector<40x128xf32>
    %c5_72 = arith.constant 5 : index
    %c0_73 = arith.constant 0 : index
    %138 = vector.load %arg6[%c5_72, %c0_73] : memref<32x128xf32, #tpu.memory_space<vmem>>, vector<1x128xf32>
    %139 = vector.broadcast %138 : vector<1x128xf32> to vector<40x128xf32>
    %140 = arith.addf %137, %139 : vector<40x128xf32>
    %141 = arith.mulf %140, %140 : vector<40x128xf32>
    %142 = arith.mulf %140, %141 : vector<40x128xf32>
    %cst_74 = arith.constant 4.471500e-02 : f32
    %143 = vector.broadcast %cst_74 : f32 to vector<40x128xf32>
    %144 = arith.mulf %143, %142 : vector<40x128xf32>
    %145 = arith.addf %140, %144 : vector<40x128xf32>
    %cst_75 = arith.constant 0.797884583 : f32
    %146 = vector.broadcast %cst_75 : f32 to vector<40x128xf32>
    %147 = arith.mulf %146, %145 : vector<40x128xf32>
    %148 = math.tanh %147 : vector<40x128xf32>
    %cst_76 = arith.constant 1.000000e+00 : f32
    %149 = vector.broadcast %cst_76 : f32 to vector<40x128xf32>
    %150 = arith.addf %149, %148 : vector<40x128xf32>
    %cst_77 = arith.constant 5.000000e-01 : f32
    %151 = vector.broadcast %cst_77 : f32 to vector<40x128xf32>
    %152 = arith.mulf %151, %150 : vector<40x128xf32>
    %153 = arith.mulf %140, %152 : vector<40x128xf32>
    %154 = arith.truncf %153 : vector<40x128xf32> to vector<40x128xbf16>
    %c0_78 = arith.constant 0 : index
    %c0_79 = arith.constant 0 : index
    %c0_80 = arith.constant 0 : index
    %155 = vector.load %arg5[%c0_78, %c0_79, %c0_80] : memref<2x128x32xbf16, #tpu.memory_space<vmem>>, vector<1x128x32xbf16>
    %156 = vector.shape_cast %155 : vector<1x128x32xbf16> to vector<128x32xbf16>
    %cst_81 = arith.constant dense<0.000000e+00> : vector<40x32xf32>
    %157 = tpu.matmul %154, %156, %cst_81 {dimension_numbers = #tpu.dot_dimension_numbers<[1], [0], [0], [1], [0, 0, 1, 1], [], []>} : vector<40x128xbf16>, vector<128x32xbf16>, vector<40x32xf32> -> vector<40x32xf32>
    %158 = arith.addf %109, %157 : vector<40x32xf32>
    %c6_82 = arith.constant 6 : index
    %c0_83 = arith.constant 0 : index
    %159 = vector.load %arg6[%c6_82, %c0_83] : memref<32x128xf32, #tpu.memory_space<vmem>>, vector<1x32xf32>
    %160 = vector.broadcast %159 : vector<1x32xf32> to vector<40x32xf32>
    %161 = arith.addf %158, %160 : vector<40x32xf32>
    %c16 = arith.constant 16 : index
    %c0_84 = arith.constant 0 : index
    %162 = vector.load %arg6[%c16, %c0_84] : memref<32x128xf32, #tpu.memory_space<vmem>>, vector<1x32xf32>
    %c17 = arith.constant 17 : index
    %c0_85 = arith.constant 0 : index
    %163 = vector.load %arg6[%c17, %c0_85] : memref<32x128xf32, #tpu.memory_space<vmem>>, vector<1x32xf32>
    %cst_86 = arith.constant dense<0.000000e+00> : vector<40xf32>
    %164 = vector.multi_reduction <add>, %161, %cst_86 [1] : vector<40x32xf32> to vector<40xf32>
    %165 = vector.shape_cast %164 : vector<40xf32> to vector<40x1xf32>
    %cst_87 = arith.constant 3.200000e+01 : f32
    %166 = vector.broadcast %cst_87 : f32 to vector<40x1xf32>
    %167 = arith.divf %165, %166 : vector<40x1xf32>
    %168 = arith.mulf %161, %161 : vector<40x32xf32>
    %cst_88 = arith.constant dense<0.000000e+00> : vector<40xf32>
    %169 = vector.multi_reduction <add>, %168, %cst_88 [1] : vector<40x32xf32> to vector<40xf32>
    %170 = vector.shape_cast %169 : vector<40xf32> to vector<40x1xf32>
    %cst_89 = arith.constant 3.200000e+01 : f32
    %171 = vector.broadcast %cst_89 : f32 to vector<40x1xf32>
    %172 = arith.divf %170, %171 : vector<40x1xf32>
    %173 = arith.mulf %167, %167 : vector<40x1xf32>
    %174 = arith.subf %172, %173 : vector<40x1xf32>
    %175 = vector.broadcast %167 : vector<40x1xf32> to vector<40x32xf32>
    %176 = arith.subf %161, %175 : vector<40x32xf32>
    %cst_90 = arith.constant 9.99999997E-7 : f32
    %177 = vector.broadcast %cst_90 : f32 to vector<40x1xf32>
    %178 = arith.addf %174, %177 : vector<40x1xf32>
    %179 = math.rsqrt %178 : vector<40x1xf32>
    %180 = vector.broadcast %179 : vector<40x1xf32> to vector<40x32xf32>
    %181 = arith.mulf %176, %180 : vector<40x32xf32>
    %182 = vector.broadcast %162 : vector<1x32xf32> to vector<40x32xf32>
    %183 = arith.mulf %181, %182 : vector<40x32xf32>
    %184 = vector.broadcast %163 : vector<1x32xf32> to vector<40x32xf32>
    %185 = arith.addf %183, %184 : vector<40x32xf32>
    %186 = arith.truncf %185 : vector<40x32xf32> to vector<40x32xbf16>
    %c8_91 = arith.constant 8 : index
    %c0_92 = arith.constant 0 : index
    %c0_93 = arith.constant 0 : index
    %187 = vector.load %arg3[%c8_91, %c0_92, %c0_93] : memref<16x32x32xbf16, #tpu.memory_space<vmem>>, vector<1x32x32xbf16>
    %188 = vector.shape_cast %187 : vector<1x32x32xbf16> to vector<32x32xbf16>
    %cst_94 = arith.constant dense<0.000000e+00> : vector<40x32xf32>
    %189 = tpu.matmul %186, %188, %cst_94 {dimension_numbers = #tpu.dot_dimension_numbers<[1], [0], [0], [1], [0, 0, 1, 1], [], []>} : vector<40x32xbf16>, vector<32x32xbf16>, vector<40x32xf32> -> vector<40x32xf32>
    %c23 = arith.constant 23 : index
    %c0_95 = arith.constant 0 : index
    %190 = vector.load %arg6[%c23, %c0_95] : memref<32x128xf32, #tpu.memory_space<vmem>>, vector<1x32xf32>
    %191 = vector.broadcast %190 : vector<1x32xf32> to vector<40x32xf32>
    %192 = arith.addf %189, %191 : vector<40x32xf32>
    %c9_96 = arith.constant 9 : index
    %c0_97 = arith.constant 0 : index
    %c0_98 = arith.constant 0 : index
    %193 = vector.load %arg3[%c9_96, %c0_97, %c0_98] : memref<16x32x32xbf16, #tpu.memory_space<vmem>>, vector<1x32x32xbf16>
    %194 = vector.shape_cast %193 : vector<1x32x32xbf16> to vector<32x32xbf16>
    %cst_99 = arith.constant dense<0.000000e+00> : vector<40x32xf32>
    %195 = tpu.matmul %186, %194, %cst_99 {dimension_numbers = #tpu.dot_dimension_numbers<[1], [0], [0], [1], [0, 0, 1, 1], [], []>} : vector<40x32xbf16>, vector<32x32xbf16>, vector<40x32xf32> -> vector<40x32xf32>
    %c24 = arith.constant 24 : index
    %c0_100 = arith.constant 0 : index
    %196 = vector.load %arg6[%c24, %c0_100] : memref<32x128xf32, #tpu.memory_space<vmem>>, vector<1x32xf32>
    %197 = vector.broadcast %196 : vector<1x32xf32> to vector<40x32xf32>
    %198 = arith.addf %195, %197 : vector<40x32xf32>
    %c10_101 = arith.constant 10 : index
    %c0_102 = arith.constant 0 : index
    %c0_103 = arith.constant 0 : index
    %199 = vector.load %arg3[%c10_101, %c0_102, %c0_103] : memref<16x32x32xbf16, #tpu.memory_space<vmem>>, vector<1x32x32xbf16>
    %200 = vector.shape_cast %199 : vector<1x32x32xbf16> to vector<32x32xbf16>
    %cst_104 = arith.constant dense<0.000000e+00> : vector<40x32xf32>
    %201 = tpu.matmul %186, %200, %cst_104 {dimension_numbers = #tpu.dot_dimension_numbers<[1], [0], [0], [1], [0, 0, 1, 1], [], []>} : vector<40x32xbf16>, vector<32x32xbf16>, vector<40x32xf32> -> vector<40x32xf32>
    %c25 = arith.constant 25 : index
    %c0_105 = arith.constant 0 : index
    %202 = vector.load %arg6[%c25, %c0_105] : memref<32x128xf32, #tpu.memory_space<vmem>>, vector<1x32xf32>
    %203 = vector.broadcast %202 : vector<1x32xf32> to vector<40x32xf32>
    %204 = arith.addf %201, %203 : vector<40x32xf32>
    %205 = arith.truncf %192 : vector<40x32xf32> to vector<40x32xbf16>
    %206 = arith.truncf %198 : vector<40x32xf32> to vector<40x32xbf16>
    %cst_106 = arith.constant dense<0.000000e+00> : vector<40x40xf32>
    %207 = tpu.matmul %205, %206, %cst_106 {dimension_numbers = #tpu.dot_dimension_numbers<[1], [1], [0], [0], [0, 0, 1, 0], [], []>} : vector<40x32xbf16>, vector<40x32xbf16>, vector<40x40xf32> -> vector<40x40xf32>
    %208 = arith.truncf %204 : vector<40x32xf32> to vector<40x32xbf16>
    %c12_107 = arith.constant 12 : index
    %c0_108 = arith.constant 0 : index
    %c0_109 = arith.constant 0 : index
    %209 = vector.load %arg3[%c12_107, %c0_108, %c0_109] : memref<16x32x32xbf16, #tpu.memory_space<vmem>>, vector<1x32x32xbf16>
    %210 = vector.shape_cast %209 : vector<1x32x32xbf16> to vector<32x32xbf16>
    %cst_110 = arith.constant dense<0.000000e+00> : vector<40x32xf32>
    %211 = tpu.matmul %186, %210, %cst_110 {dimension_numbers = #tpu.dot_dimension_numbers<[1], [0], [0], [1], [0, 0, 1, 1], [], []>} : vector<40x32xbf16>, vector<32x32xbf16>, vector<40x32xf32> -> vector<40x32xf32>
    %c26 = arith.constant 26 : index
    %c0_111 = arith.constant 0 : index
    %212 = vector.load %arg6[%c26, %c0_111] : memref<32x128xf32, #tpu.memory_space<vmem>>, vector<1x32xf32>
    %213 = vector.broadcast %212 : vector<1x32xf32> to vector<40x32xf32>
    %214 = arith.addf %211, %213 : vector<40x32xf32>
    %c13 = arith.constant 13 : index
    %c0_112 = arith.constant 0 : index
    %c0_113 = arith.constant 0 : index
    %215 = vector.load %arg3[%c13, %c0_112, %c0_113] : memref<16x32x32xbf16, #tpu.memory_space<vmem>>, vector<1x32x32xbf16>
    %216 = vector.shape_cast %215 : vector<1x32x32xbf16> to vector<32x32xbf16>
    %cst_114 = arith.constant dense<0.000000e+00> : vector<40x32xf32>
    %217 = tpu.matmul %186, %216, %cst_114 {dimension_numbers = #tpu.dot_dimension_numbers<[1], [0], [0], [1], [0, 0, 1, 1], [], []>} : vector<40x32xbf16>, vector<32x32xbf16>, vector<40x32xf32> -> vector<40x32xf32>
    %c27 = arith.constant 27 : index
    %c0_115 = arith.constant 0 : index
    %218 = vector.load %arg6[%c27, %c0_115] : memref<32x128xf32, #tpu.memory_space<vmem>>, vector<1x32xf32>
    %219 = vector.broadcast %218 : vector<1x32xf32> to vector<40x32xf32>
    %220 = arith.addf %217, %219 : vector<40x32xf32>
    %c14 = arith.constant 14 : index
    %c0_116 = arith.constant 0 : index
    %c0_117 = arith.constant 0 : index
    %221 = vector.load %arg3[%c14, %c0_116, %c0_117] : memref<16x32x32xbf16, #tpu.memory_space<vmem>>, vector<1x32x32xbf16>
    %222 = vector.shape_cast %221 : vector<1x32x32xbf16> to vector<32x32xbf16>
    %cst_118 = arith.constant dense<0.000000e+00> : vector<40x32xf32>
    %223 = tpu.matmul %186, %222, %cst_118 {dimension_numbers = #tpu.dot_dimension_numbers<[1], [0], [0], [1], [0, 0, 1, 1], [], []>} : vector<40x32xbf16>, vector<32x32xbf16>, vector<40x32xf32> -> vector<40x32xf32>
    %c28 = arith.constant 28 : index
    %c0_119 = arith.constant 0 : index
    %224 = vector.load %arg6[%c28, %c0_119] : memref<32x128xf32, #tpu.memory_space<vmem>>, vector<1x32xf32>
    %225 = vector.broadcast %224 : vector<1x32xf32> to vector<40x32xf32>
    %226 = arith.addf %223, %225 : vector<40x32xf32>
    %227 = arith.truncf %214 : vector<40x32xf32> to vector<40x32xbf16>
    %228 = arith.truncf %220 : vector<40x32xf32> to vector<40x32xbf16>
    %cst_120 = arith.constant dense<0.000000e+00> : vector<40x40xf32>
    %229 = tpu.matmul %227, %228, %cst_120 {dimension_numbers = #tpu.dot_dimension_numbers<[1], [1], [0], [0], [0, 0, 1, 0], [], []>} : vector<40x32xbf16>, vector<40x32xbf16>, vector<40x40xf32> -> vector<40x40xf32>
    %230 = arith.truncf %226 : vector<40x32xf32> to vector<40x32xbf16>
    %231 = tpu.concatenate %207, %229 in 0 : vector<40x40xf32>, vector<40x40xf32> -> vector<80x40xf32>
    %232 = arith.addf %231, %8 : vector<80x40xf32>
    %cst_121 = arith.constant dense<0xFF800000> : vector<80xf32>
    %233 = vector.multi_reduction <maximumf>, %232, %cst_121 [1] : vector<80x40xf32> to vector<80xf32>
    %234 = vector.shape_cast %233 : vector<80xf32> to vector<80x1xf32>
    %235 = vector.broadcast %234 : vector<80x1xf32> to vector<80x40xf32>
    %236 = arith.subf %232, %235 : vector<80x40xf32>
    %237 = math.exp %236 : vector<80x40xf32>
    %cst_122 = arith.constant dense<0.000000e+00> : vector<80xf32>
    %238 = vector.multi_reduction <add>, %237, %cst_122 [1] : vector<80x40xf32> to vector<80xf32>
    %239 = vector.shape_cast %238 : vector<80xf32> to vector<80x1xf32>
    %240 = tpu.reciprocal %239 {approx = true} : vector<80x1xf32> -> vector<80x1xf32>
    %241 = vector.broadcast %240 : vector<80x1xf32> to vector<80x40xf32>
    %242 = arith.mulf %237, %241 : vector<80x40xf32>
    %243 = arith.truncf %242 : vector<80x40xf32> to vector<80x40xbf16>
    %cst_123 = arith.constant 0.000000e+00 : f32
    %244 = vector.broadcast %cst_123 : f32 to vector<40x32xf32>
    %245 = vector.extract_strided_slice %243 {offsets = [0, 0], sizes = [40, 40], strides = [1, 1]} : vector<80x40xbf16> to vector<40x40xbf16>
    %cst_124 = arith.constant dense<0.000000e+00> : vector<40x32xf32>
    %246 = tpu.matmul %245, %208, %cst_124 {dimension_numbers = #tpu.dot_dimension_numbers<[1], [0], [0], [1], [0, 0, 1, 1], [], []>} : vector<40x40xbf16>, vector<40x32xbf16>, vector<40x32xf32> -> vector<40x32xf32>
    %247 = arith.truncf %246 : vector<40x32xf32> to vector<40x32xbf16>
    %c11_125 = arith.constant 11 : index
    %c0_126 = arith.constant 0 : index
    %c0_127 = arith.constant 0 : index
    %248 = vector.load %arg3[%c11_125, %c0_126, %c0_127] : memref<16x32x32xbf16, #tpu.memory_space<vmem>>, vector<1x32x32xbf16>
    %249 = vector.shape_cast %248 : vector<1x32x32xbf16> to vector<32x32xbf16>
    %cst_128 = arith.constant dense<0.000000e+00> : vector<40x32xf32>
    %250 = tpu.matmul %247, %249, %cst_128 {dimension_numbers = #tpu.dot_dimension_numbers<[1], [0], [0], [1], [0, 0, 1, 1], [], []>} : vector<40x32xbf16>, vector<32x32xbf16>, vector<40x32xf32> -> vector<40x32xf32>
    %251 = arith.addf %244, %250 : vector<40x32xf32>
    %252 = vector.extract_strided_slice %243 {offsets = [40, 0], sizes = [40, 40], strides = [1, 1]} : vector<80x40xbf16> to vector<40x40xbf16>
    %cst_129 = arith.constant dense<0.000000e+00> : vector<40x32xf32>
    %253 = tpu.matmul %252, %230, %cst_129 {dimension_numbers = #tpu.dot_dimension_numbers<[1], [0], [0], [1], [0, 0, 1, 1], [], []>} : vector<40x40xbf16>, vector<40x32xbf16>, vector<40x32xf32> -> vector<40x32xf32>
    %254 = arith.truncf %253 : vector<40x32xf32> to vector<40x32xbf16>
    %c15 = arith.constant 15 : index
    %c0_130 = arith.constant 0 : index
    %c0_131 = arith.constant 0 : index
    %255 = vector.load %arg3[%c15, %c0_130, %c0_131] : memref<16x32x32xbf16, #tpu.memory_space<vmem>>, vector<1x32x32xbf16>
    %256 = vector.shape_cast %255 : vector<1x32x32xbf16> to vector<32x32xbf16>
    %cst_132 = arith.constant dense<0.000000e+00> : vector<40x32xf32>
    %257 = tpu.matmul %254, %256, %cst_132 {dimension_numbers = #tpu.dot_dimension_numbers<[1], [0], [0], [1], [0, 0, 1, 1], [], []>} : vector<40x32xbf16>, vector<32x32xbf16>, vector<40x32xf32> -> vector<40x32xf32>
    %258 = arith.addf %251, %257 : vector<40x32xf32>
    %259 = arith.addf %161, %258 : vector<40x32xf32>
    %c20 = arith.constant 20 : index
    %c0_133 = arith.constant 0 : index
    %260 = vector.load %arg6[%c20, %c0_133] : memref<32x128xf32, #tpu.memory_space<vmem>>, vector<1x32xf32>
    %261 = vector.broadcast %260 : vector<1x32xf32> to vector<40x32xf32>
    %262 = arith.addf %259, %261 : vector<40x32xf32>
    %c18 = arith.constant 18 : index
    %c0_134 = arith.constant 0 : index
    %263 = vector.load %arg6[%c18, %c0_134] : memref<32x128xf32, #tpu.memory_space<vmem>>, vector<1x32xf32>
    %c19 = arith.constant 19 : index
    %c0_135 = arith.constant 0 : index
    %264 = vector.load %arg6[%c19, %c0_135] : memref<32x128xf32, #tpu.memory_space<vmem>>, vector<1x32xf32>
    %cst_136 = arith.constant dense<0.000000e+00> : vector<40xf32>
    %265 = vector.multi_reduction <add>, %262, %cst_136 [1] : vector<40x32xf32> to vector<40xf32>
    %266 = vector.shape_cast %265 : vector<40xf32> to vector<40x1xf32>
    %cst_137 = arith.constant 3.200000e+01 : f32
    %267 = vector.broadcast %cst_137 : f32 to vector<40x1xf32>
    %268 = arith.divf %266, %267 : vector<40x1xf32>
    %269 = arith.mulf %262, %262 : vector<40x32xf32>
    %cst_138 = arith.constant dense<0.000000e+00> : vector<40xf32>
    %270 = vector.multi_reduction <add>, %269, %cst_138 [1] : vector<40x32xf32> to vector<40xf32>
    %271 = vector.shape_cast %270 : vector<40xf32> to vector<40x1xf32>
    %cst_139 = arith.constant 3.200000e+01 : f32
    %272 = vector.broadcast %cst_139 : f32 to vector<40x1xf32>
    %273 = arith.divf %271, %272 : vector<40x1xf32>
    %274 = arith.mulf %268, %268 : vector<40x1xf32>
    %275 = arith.subf %273, %274 : vector<40x1xf32>
    %276 = vector.broadcast %268 : vector<40x1xf32> to vector<40x32xf32>
    %277 = arith.subf %262, %276 : vector<40x32xf32>
    %cst_140 = arith.constant 9.99999997E-7 : f32
    %278 = vector.broadcast %cst_140 : f32 to vector<40x1xf32>
    %279 = arith.addf %275, %278 : vector<40x1xf32>
    %280 = math.rsqrt %279 : vector<40x1xf32>
    %281 = vector.broadcast %280 : vector<40x1xf32> to vector<40x32xf32>
    %282 = arith.mulf %277, %281 : vector<40x32xf32>
    %283 = vector.broadcast %263 : vector<1x32xf32> to vector<40x32xf32>
    %284 = arith.mulf %282, %283 : vector<40x32xf32>
    %285 = vector.broadcast %264 : vector<1x32xf32> to vector<40x32xf32>
    %286 = arith.addf %284, %285 : vector<40x32xf32>
    %287 = arith.truncf %286 : vector<40x32xf32> to vector<40x32xbf16>
    %c1_141 = arith.constant 1 : index
    %c0_142 = arith.constant 0 : index
    %c0_143 = arith.constant 0 : index
    %288 = vector.load %arg4[%c1_141, %c0_142, %c0_143] : memref<2x32x128xbf16, #tpu.memory_space<vmem>>, vector<1x32x128xbf16>
    %289 = vector.shape_cast %288 : vector<1x32x128xbf16> to vector<32x128xbf16>
    %cst_144 = arith.constant dense<0.000000e+00> : vector<40x128xf32>
    %290 = tpu.matmul %287, %289, %cst_144 {dimension_numbers = #tpu.dot_dimension_numbers<[1], [0], [0], [1], [0, 0, 1, 1], [], []>} : vector<40x32xbf16>, vector<32x128xbf16>, vector<40x128xf32> -> vector<40x128xf32>
    %c21 = arith.constant 21 : index
    %c0_145 = arith.constant 0 : index
    %291 = vector.load %arg6[%c21, %c0_145] : memref<32x128xf32, #tpu.memory_space<vmem>>, vector<1x128xf32>
    %292 = vector.broadcast %291 : vector<1x128xf32> to vector<40x128xf32>
    %293 = arith.addf %290, %292 : vector<40x128xf32>
    %294 = arith.mulf %293, %293 : vector<40x128xf32>
    %295 = arith.mulf %293, %294 : vector<40x128xf32>
    %cst_146 = arith.constant 4.471500e-02 : f32
    %296 = vector.broadcast %cst_146 : f32 to vector<40x128xf32>
    %297 = arith.mulf %296, %295 : vector<40x128xf32>
    %298 = arith.addf %293, %297 : vector<40x128xf32>
    %cst_147 = arith.constant 0.797884583 : f32
    %299 = vector.broadcast %cst_147 : f32 to vector<40x128xf32>
    %300 = arith.mulf %299, %298 : vector<40x128xf32>
    %301 = math.tanh %300 : vector<40x128xf32>
    %cst_148 = arith.constant 1.000000e+00 : f32
    %302 = vector.broadcast %cst_148 : f32 to vector<40x128xf32>
    %303 = arith.addf %302, %301 : vector<40x128xf32>
    %cst_149 = arith.constant 5.000000e-01 : f32
    %304 = vector.broadcast %cst_149 : f32 to vector<40x128xf32>
    %305 = arith.mulf %304, %303 : vector<40x128xf32>
    %306 = arith.mulf %293, %305 : vector<40x128xf32>
    %307 = arith.truncf %306 : vector<40x128xf32> to vector<40x128xbf16>
    %c1_150 = arith.constant 1 : index
    %c0_151 = arith.constant 0 : index
    %c0_152 = arith.constant 0 : index
    %308 = vector.load %arg5[%c1_150, %c0_151, %c0_152] : memref<2x128x32xbf16, #tpu.memory_space<vmem>>, vector<1x128x32xbf16>
    %309 = vector.shape_cast %308 : vector<1x128x32xbf16> to vector<128x32xbf16>
    %cst_153 = arith.constant dense<0.000000e+00> : vector<40x32xf32>
    %310 = tpu.matmul %307, %309, %cst_153 {dimension_numbers = #tpu.dot_dimension_numbers<[1], [0], [0], [1], [0, 0, 1, 1], [], []>} : vector<40x128xbf16>, vector<128x32xbf16>, vector<40x32xf32> -> vector<40x32xf32>
    %311 = arith.addf %262, %310 : vector<40x32xf32>
    %c22 = arith.constant 22 : index
    %c0_154 = arith.constant 0 : index
    %312 = vector.load %arg6[%c22, %c0_154] : memref<32x128xf32, #tpu.memory_space<vmem>>, vector<1x32xf32>
    %313 = vector.broadcast %312 : vector<1x32xf32> to vector<40x32xf32>
    %314 = arith.addf %311, %313 : vector<40x32xf32>
    %c0_155 = arith.constant 0 : index
    %c0_156 = arith.constant 0 : index
    %315 = vector.load %arg7[%c0_155, %c0_156] : memref<8x512xf32, #tpu.memory_space<vmem>>, vector<1x32xf32>
    %c1_157 = arith.constant 1 : index
    %c0_158 = arith.constant 0 : index
    %316 = vector.load %arg7[%c1_157, %c0_158] : memref<8x512xf32, #tpu.memory_space<vmem>>, vector<1x32xf32>
    %cst_159 = arith.constant dense<0.000000e+00> : vector<40xf32>
    %317 = vector.multi_reduction <add>, %314, %cst_159 [1] : vector<40x32xf32> to vector<40xf32>
    %318 = vector.shape_cast %317 : vector<40xf32> to vector<40x1xf32>
    %cst_160 = arith.constant 3.200000e+01 : f32
    %319 = vector.broadcast %cst_160 : f32 to vector<40x1xf32>
    %320 = arith.divf %318, %319 : vector<40x1xf32>
    %321 = arith.mulf %314, %314 : vector<40x32xf32>
    %cst_161 = arith.constant dense<0.000000e+00> : vector<40xf32>
    %322 = vector.multi_reduction <add>, %321, %cst_161 [1] : vector<40x32xf32> to vector<40xf32>
    %323 = vector.shape_cast %322 : vector<40xf32> to vector<40x1xf32>
    %cst_162 = arith.constant 3.200000e+01 : f32
    %324 = vector.broadcast %cst_162 : f32 to vector<40x1xf32>
    %325 = arith.divf %323, %324 : vector<40x1xf32>
    %326 = arith.mulf %320, %320 : vector<40x1xf32>
    %327 = arith.subf %325, %326 : vector<40x1xf32>
    %328 = vector.broadcast %320 : vector<40x1xf32> to vector<40x32xf32>
    %329 = arith.subf %314, %328 : vector<40x32xf32>
    %cst_163 = arith.constant 9.99999997E-7 : f32
    %330 = vector.broadcast %cst_163 : f32 to vector<40x1xf32>
    %331 = arith.addf %327, %330 : vector<40x1xf32>
    %332 = math.rsqrt %331 : vector<40x1xf32>
    %333 = vector.broadcast %332 : vector<40x1xf32> to vector<40x32xf32>
    %334 = arith.mulf %329, %333 : vector<40x32xf32>
    %335 = vector.broadcast %315 : vector<1x32xf32> to vector<40x32xf32>
    %336 = arith.mulf %334, %335 : vector<40x32xf32>
    %337 = vector.broadcast %316 : vector<1x32xf32> to vector<40x32xf32>
    %338 = arith.addf %336, %337 : vector<40x32xf32>
    %c0_164 = arith.constant 0 : index
    %c0_165 = arith.constant 0 : index
    %339 = vector.load %arg12[%c0_164, %c0_165] : memref<2x40xf32, #tpu.memory_space<vmem>>, vector<2x40xf32>
    %340 = arith.truncf %339 : vector<2x40xf32> to vector<2x40xbf16>
    %341 = arith.truncf %338 : vector<40x32xf32> to vector<40x32xbf16>
    %cst_166 = arith.constant dense<0.000000e+00> : vector<2x32xf32>
    %342 = tpu.matmul %340, %341, %cst_166 {dimension_numbers = #tpu.dot_dimension_numbers<[1], [0], [0], [1], [0, 0, 1, 1], [], []>} : vector<2x40xbf16>, vector<40x32xbf16>, vector<2x32xf32> -> vector<2x32xf32>
    %343 = arith.truncf %342 : vector<2x32xf32> to vector<2x32xbf16>
    %c0_167 = arith.constant 0 : index
    %c0_168 = arith.constant 0 : index
    %344 = vector.load %arg8[%c0_167, %c0_168] : memref<32x512xbf16, #tpu.memory_space<vmem>>, vector<32x512xbf16>
    %cst_169 = arith.constant dense<0.000000e+00> : vector<2x512xf32>
    %345 = tpu.matmul %343, %344, %cst_169 {dimension_numbers = #tpu.dot_dimension_numbers<[1], [0], [0], [1], [0, 0, 1, 1], [], []>} : vector<2x32xbf16>, vector<32x512xbf16>, vector<2x512xf32> -> vector<2x512xf32>
    %c2_170 = arith.constant 2 : index
    %c0_171 = arith.constant 0 : index
    %346 = vector.load %arg7[%c2_170, %c0_171] : memref<8x512xf32, #tpu.memory_space<vmem>>, vector<1x512xf32>
    %347 = vector.broadcast %346 : vector<1x512xf32> to vector<2x512xf32>
    %348 = arith.addf %345, %347 : vector<2x512xf32>
    %cst_172 = arith.constant 0.000000e+00 : f32
    %349 = vector.broadcast %cst_172 : f32 to vector<2x512xf32>
    %350 = arith.maximumf %348, %349 : vector<2x512xf32>
    %351 = arith.truncf %350 : vector<2x512xf32> to vector<2x512xbf16>
    %c0_173 = arith.constant 0 : index
    %c0_174 = arith.constant 0 : index
    %352 = vector.load %arg9[%c0_173, %c0_174] : memref<512x128xbf16, #tpu.memory_space<vmem>>, vector<512x128xbf16>
    %cst_175 = arith.constant dense<0.000000e+00> : vector<2x128xf32>
    %353 = tpu.matmul %351, %352, %cst_175 {dimension_numbers = #tpu.dot_dimension_numbers<[1], [0], [0], [1], [0, 0, 1, 1], [], []>} : vector<2x512xbf16>, vector<512x128xbf16>, vector<2x128xf32> -> vector<2x128xf32>
    %c3_176 = arith.constant 3 : index
    %c0_177 = arith.constant 0 : index
    %354 = vector.load %arg7[%c3_176, %c0_177] : memref<8x512xf32, #tpu.memory_space<vmem>>, vector<1x128xf32>
    %355 = vector.broadcast %354 : vector<1x128xf32> to vector<2x128xf32>
    %356 = arith.addf %353, %355 : vector<2x128xf32>
    %cst_178 = arith.constant 0.000000e+00 : f32
    %357 = vector.broadcast %cst_178 : f32 to vector<2x128xf32>
    %358 = arith.maximumf %356, %357 : vector<2x128xf32>
    %359 = arith.truncf %358 : vector<2x128xf32> to vector<2x128xbf16>
    %c0_179 = arith.constant 0 : index
    %c0_180 = arith.constant 0 : index
    %360 = vector.load %arg10[%c0_179, %c0_180] : memref<128x2xbf16, #tpu.memory_space<vmem>>, vector<128x2xbf16>
    %cst_181 = arith.constant dense<0.000000e+00> : vector<2x2xf32>
    %361 = tpu.matmul %359, %360, %cst_181 {dimension_numbers = #tpu.dot_dimension_numbers<[1], [0], [0], [1], [0, 0, 1, 1], [], []>} : vector<2x128xbf16>, vector<128x2xbf16>, vector<2x2xf32> -> vector<2x2xf32>
    %c4_182 = arith.constant 4 : index
    %c0_183 = arith.constant 0 : index
    %362 = vector.load %arg7[%c4_182, %c0_183] : memref<8x512xf32, #tpu.memory_space<vmem>>, vector<1x2xf32>
    %363 = vector.broadcast %362 : vector<1x2xf32> to vector<2x2xf32>
    %364 = arith.addf %361, %363 : vector<2x2xf32>
    %c0_184 = arith.constant 0 : index
    %c0_185 = arith.constant 0 : index
    %365 = vector.load %arg13[%c0_184, %c0_185] : memref<2x2xf32, #tpu.memory_space<vmem>>, vector<2x2xf32>
    tpu.vector_store %arg13[%c0_184, %c0_185], %364 {strides = array<i32>} : memref<2x2xf32, #tpu.memory_space<vmem>>, vector<2x2xf32>,
    return
  }
}

</mosaic_0001>

<bundles_post_ra>
// kernel: vit_video_classifier.1
= control target key start
LH: loop header
LB: loop body
LE: loop exit
PB: predicated region body
PF: predicated region fallthrough
CT: control target
= control target key end

     0   :  { %v5470_v1 = vmov 0   ;;  %vm154_vm0 = vcmask 523264   ;;  %vm231_vm1 = vcmask 261120   ;;  %s6877_s0 = inlined_call_operand.vmem [shape: f32[32,192], index: 0, kind: input, shape index: {}]   ;;  %s6878_s1 = inlined_call_operand.vmem [shape: f32[40,32], index: 1, kind: input, shape index: {}]   ;;  %s6879_s2 = inlined_call_operand.vmem [shape: bf16[192,32], index: 2, kind: input, shape index: {}]   ;;  %s6880_s3 = inlined_call_operand.vmem [shape: bf16[16,32,32], index: 3, kind: input, shape index: {}]   ;;  %s6881_s4 = inlined_call_operand.vmem [shape: bf16[2,32,128], index: 4, kind: input, shape index: {}]   ;;  %s6882_s5 = inlined_call_operand.vmem [shape: bf16[2,128,32], index: 5, kind: input, shape index: {}]   ;;  %s6883_s6 = inlined_call_operand.vmem [shape: f32[32,128], index: 6, kind: input, shape index: {}]   ;;  %s6884_s7 = inlined_call_operand.vmem [shape: f32[8,512], index: 7, kind: input, shape index: {}]   ;;  %s6885_s8 = inlined_call_operand.vmem [shape: bf16[32,512], index: 8, kind: input, shape index: {}]   ;;  %s6886_s9 = inlined_call_operand.vmem [shape: bf16[512,128], index: 9, kind: input, shape index: {}]   ;;  %s6887_s10 = inlined_call_operand.vmem [shape: bf16[128,2], index: 10, kind: input, shape index: {}]   ;;  %s6888_s11 = inlined_call_operand.vmem [shape: f32[80,40], index: 11, kind: input, shape index: {}]   ;;  %s6889_s12 = inlined_call_operand.vmem [shape: f32[2,40], index: 12, kind: input, shape index: {}]   ;;  %s6890_s13 = inlined_call_operand.hbm [shape: f32[2,2], index: 13, kind: output, shape index: {}]  }
   0x1   :  { %v5169_v0 = vld [vmem:[%s6879_s2] sm:$0xff]   ;;  %161 = vmatprep.subr.bf16.mxu0 %v5470_v1  ;;  %v5170_v2 = vld [vmem:[%s6879_s2 + $0x8] sm:$0xff]   ;;  %v5171_v3 = vld [vmem:[%s6879_s2 + $0x10] sm:$0xff]  }
   0x2   :  { %162 = vmatpush1.bf16.msra.mxu0 %v5169_v0  ;;  %v5172_v4 = vld [vmem:[%s6879_s2 + $0x18] sm:$0xff]   ;;  %v47_v5 = vld [vmem:[%s6877_s0 + $0x8] sm:$0xff]  ;;  %v5173_v8 = vld [vmem:[%s6879_s2 + $0x20] sm:$0xff]  }
   0x3   :  { %163 = vmatprep.subr.bf16.mxu0 %v5470_v1  ;;  %v49_v6 = vld [vmem:[%s6877_s0 + $0x18] sm:$0xff]  ;;  %v5572_v9 = vld [vmem:[%s6878_s1] sm:$0xff]  ;;  %v5174_v12 = vld [vmem:[%s6879_s2 + $0x28] sm:$0xff]  }
   0x4   :  { %v55_v7 = vpack.c.bf16 %v49_v6, %v47_v5  ;;  %v232_v10 = vsel %vm231_vm1, %v5572_v9, 0.0  ;;  %v253_v11 = vmul.f32 %v5572_v9, %v5572_v9  ;;  %v5175_v14 = vld [vmem:[%s6879_s2 + $0x30] sm:$0xff]   ;;  %v5176_v15 = vld [vmem:[%s6879_s2 + $0x38] sm:$0xff]   ;;  %v5177_v16 = vld [vmem:[%s6879_s2 + $0x40] sm:$0xff]  }
   0x5   :  { %233 = vadd.xlane.f32.xlu0 %v232_v10  ;;  %v5178_v17 = vld [vmem:[%s6879_s2 + $0x48] sm:$0xff]   ;;  %v5179_v18 = vld [vmem:[%s6879_s2 + $0x50] sm:$0xff]   ;;  %v5180_v19 = vld [vmem:[%s6879_s2 + $0x58] sm:$0xff]  }
   0x6   :  { %164 = vmatpush1.bf16.msra.mxu0 %v5170_v2  ;;  %4134 = vmatprep.mubr.msk.bf16.mxu0 %vm154_vm0, %v55_v7  ;;  %v258_v13 = vsel %vm231_vm1, %v253_v11, 0.0  ;;  %v46_v20 = vld [vmem:[%s6877_s0] sm:$0xff]  ;;  %v48_v21 = vld [vmem:[%s6877_s0 + $0x10] sm:$0xff]  ;;  %v51_v22 = vld [vmem:[%s6877_s0 + $0x28] sm:$0xff] }
   0x7   :  { %165 = vmatprep.subr.bf16.mxu0 %v5470_v1  ;;  %259 = vadd.xlane.f32.xlu1 %v258_v13  ;;  %v53_v23 = vld [vmem:[%s6877_s0 + $0x38] sm:$0xff]  ;;  %v54_v24 = vpack.c.bf16 %v48_v21, %v46_v20  ;;  %v50_v26 = vld [vmem:[%s6877_s0 + $0x20] sm:$0xff]  ;;  %v52_v27 = vld [vmem:[%s6877_s0 + $0x30] sm:$0xff] }
   0x8   :  { %v57_v25 = vpack.c.bf16 %v53_v23, %v51_v22  ;;  %v56_v28 = vpack.c.bf16 %v52_v27, %v50_v26 }
   0xa   :  { %166 = vmatpush1.bf16.msra.mxu0 %v5171_v3 }
   0xb   :  { %167 = vmatprep.subr.bf16.mxu0 %v5470_v1 }
   0xe   :  { %168 = vmatpush1.bf16.msra.mxu0 %v5172_v4 }
   0xf   :  { %169 = vmatprep.subr.bf16.mxu0 %v5470_v1 }
  0x12   :  { %170 = vmatpush1.bf16.msra.mxu0 %v5173_v8 }
  0x13   :  { %171 = vmatprep.subr.bf16.mxu0 %v5470_v1 }
  0x16   :  { %172 = vmatpush1.bf16.msra.mxu0 %v5174_v12 }
  0x17   :  { %173 = vmatprep.subr.bf16.mxu0 %v5470_v1 }
  0x1a   :  { %174 = vmatpush1.bf16.msra.mxu0 %v5175_v14 }
  0x1b   :  { %175 = vmatprep.subr.bf16.mxu0 %v5470_v1 }
  0x1e   :  { %176 = vmatpush1.bf16.msra.mxu0 %v5176_v15 }
  0x1f   :  { %177 = vmatprep.subr.bf16.mxu0 %v5470_v1 }
  0x22   :  { %178 = vmatpush1.bf16.msra.mxu0 %v5177_v16 }
  0x23   :  { %179 = vmatprep.subr.bf16.mxu0 %v5470_v1 }
  0x26   :  { %180 = vmatpush1.bf16.msra.mxu0 %v5178_v17 }
  0x27   :  { %181 = vmatprep.subr.bf16.mxu0 %v5470_v1 }
  0x2a   :  { %182 = vmatpush1.bf16.msra.mxu0 %v5179_v18 }
  0x2b   :  { %183 = vmatprep.subr.bf16.mxu0 %v5470_v1 }
  0x2e   :  { %184 = vmatpush1.bf16.msra.mxu0 %v5180_v19 }
  0x31   :  { %194 = vmatmul.mubr.bf16.vlgmr.msra.gmra.mrb[0].mxu0 %v54_v24 }
  0x32   :  { %4135 = vmatprep.mubr.msk.bf16.mxu0 %vm154_vm0, %v57_v25 }
  0x39   :  { %202 = vmatmul.mubr.bf16.gmra.mrb[4].mxu0 %v56_v28 }
  0x3a   :  { %18 = vsyncpa [#allocation3], 0  ;;  %v211_v29 = vld [vmem:[%s6878_s1 + $0x8] sm:$0xff]  ;;  %v212_v31 = vld [vmem:[%s6878_s1 + $0x10] sm:$0xff]  ;;  %v5471_v58 = vmov 0.0   ;;  %vm5472_vm2 = vmmov 0  }
  0x3b   :  { %v213_v40 = vld [vmem:[%s6878_s1 + $0x18] sm:$0xff]  ;;  %v214_v44 = vld [vmem:[%s6878_s1 + $0x20] sm:$0xff]  ;;  %4641 = vmatprep.subr.bf16.mxu1 %v5471_v58  ;;  %4689 = vmatprep.subr.bf16.mxu0 %v5471_v58  ;;  %v5182_v59 = vld [vmem:[%s6880_s3 + $0x8] sm:$0xff]   ;;  %vm1106_vm3 = vcmask 1043456   ;;  %vm981_vm4 = vcmask 326656   ;;  %vm4106_vm5 = vcmask 9216  }
  0x3c   :  { %v5181_v57 = vld [vmem:[%s6880_s3] sm:$0xff]   ;;  %4645 = vmatprep.mubr.msk.bf16.mxu1 %vm5472_vm2, %v5471_v58  ;;  %4695 = vmatprep.mubr.msk.bf16.mxu0 %vm5472_vm2, %v5471_v58 }
  0x3d   :  { %4642 = vmatpush3.bf16.msra.mxu1 %v5181_v57 }
  0x3e   :  { %4643 = vmatprep.subr.bf16.mxu1 %v5471_v58 }
  0x41   :  { %4644 = vmatpush3.bf16.msra.mxu1 %v5182_v59 }
  0x42   :  { %4657 = vmatprep.subr.bf16.mxu1 %v5471_v58 }
  0x92   :  { %v234_v60 = vpop.xlane.xlu0 %233 }
  0x93   :  { %v248_v61 = vmul.f32 0.03125, %v234_v60 }
  0x94   :  { %v260_v62 = vpop.xlane.xlu1 %259 }
  0x95   :  { %v278_v63 = vmul.f32 %v248_v61, %v248_v61  ;;  %v273_v0 = vmul.f32 0.03125, %v260_v62  ;;  %v288_v20 = vsub.f32 %v5572_v9, %v248_v61 }
  0x97   :  { %v283_v2 = vsub.f32 %v273_v0, %v278_v63 }
  0x99   :  { %v293_v3 = vadd.f32 1e-06, %v283_v2 }
  0x9b   :  { %5285 = vrsqrt.f32 %v293_v3 }
  0xa5   :  { %v5286_v23 = vpop.eup %5285 }
 0x104   :  { %v195_v30 = vpop.f32.mrb[0].mxu0 }
 0x105   :  { %v5634_v32 = vadd.f32 %v211_v29, %v195_v30  ;;  %v197_v33 = vpop.f32.mrb[1].mxu0  ;;  %v303_v29 = vmul.f32 %v5286_v23, %v288_v20 }
 0x106   :  { %v198_v34 = vpop.f32.mrb[2].mxu0 }
 0x107   :  { %v5636_v35 = vadd.f32 %v212_v31, %v198_v34  ;;  %v200_v36 = vpop.f32.mrb[3].mxu0  ;;  %v235_v37 = vsel %vm231_vm1, %v5634_v32, 0.0  ;;  %v254_v38 = vmul.f32 %v5634_v32, %v5634_v32  ;;  %v4136_v31 = vld [vmem:[%s6883_s6] ss:$0 sm:$0xff] }
 0x108   :  { %236 = vadd.xlane.f32.xlu0 %v235_v37 }
 0x109   :  { %v261_v39 = vsel %vm231_vm1, %v254_v38, 0.0  ;;  %v238_v41 = vsel %vm231_vm1, %v5636_v35, 0.0  ;;  %v255_v42 = vmul.f32 %v5636_v35, %v5636_v35 }
 0x10a   :  { %262 = vadd.xlane.f32.xlu1 %v261_v39  ;;  %v312_v39 = vmul.f32 %v4136_v31, %v303_v29 }
 0x10b   :  { %v264_v50 = vsel %vm231_vm1, %v255_v42, 0.0 }
 0x10c   :  { %239 = vadd.xlane.f32.xlu0 %v238_v41  ;;  %v203_v43 = vpop.f32.mrb[4].mxu0  ;;  %v4137_v41 = vld [vmem:[%s6883_s6 + $0x1] ss:$0 sm:$0xff] }
 0x10d   :  { %v5653_v45 = vadd.f32 %v213_v40, %v203_v43  ;;  %v205_v46 = vpop.f32.mrb[5].mxu0 }
 0x10e   :  { %v206_v47 = vpop.f32.mrb[6].mxu0 }
 0x10f   :  { %v5655_v48 = vadd.f32 %v214_v44, %v206_v47  ;;  %v208_v49 = vpop.f32.mrb[7].mxu0  ;;  %v241_v51 = vsel %vm231_vm1, %v5653_v45, 0.0  ;;  %v256_v52 = vmul.f32 %v5653_v45, %v5653_v45  ;;  %v321_v44 = vadd.f32 %v4137_v41, %v312_v39 }
 0x110   :  { %265 = vadd.xlane.f32.xlu0 %v264_v50  ;;  %242 = vadd.xlane.f32.xlu1 %v241_v51  ;;  %v5183_v50 = vld [vmem:[%s6880_s3 + $0x10] sm:$0xff]  }
 0x111   :  { %v267_v53 = vsel %vm231_vm1, %v256_v52, 0.0  ;;  %v244_v54 = vsel %vm231_vm1, %v5655_v48, 0.0  ;;  %v257_v55 = vmul.f32 %v5655_v48, %v5655_v48 }
 0x113   :  { %v270_v56 = vsel %vm231_vm1, %v257_v55, 0.0  ;;  %v5184_v55 = vld [vmem:[%s6880_s3 + $0x18] sm:$0xff]  }
 0x114   :  { %268 = vadd.xlane.f32.xlu1 %v267_v53  ;;  %245 = vadd.xlane.f32.xlu0 %v244_v54 }
 0x118   :  { %271 = vadd.xlane.f32.xlu1 %v270_v56 }
 0x195   :  { %v237_v4 = vpop.xlane.xlu0 %236 }
 0x196   :  { %v249_v5 = vmul.f32 0.03125, %v237_v4 }
 0x197   :  { %v263_v6 = vpop.xlane.xlu1 %262 }
 0x198   :  { %v279_v7 = vmul.f32 %v249_v5, %v249_v5  ;;  %v274_v8 = vmul.f32 0.03125, %v263_v6  ;;  %v289_v9 = vsub.f32 %v5634_v32, %v249_v5  ;;  %v5185_v6 = vld [vmem:[%s6880_s3 + $0x20] sm:$0xff]  }
 0x199   :  { %v240_v10 = vpop.xlane.xlu0 %239 }
 0x19a   :  { %v284_v11 = vsub.f32 %v274_v8, %v279_v7  ;;  %v250_v12 = vmul.f32 0.03125, %v240_v10  ;;  %v5186_v7 = vld [vmem:[%s6880_s3 + $0x28] sm:$0xff]   ;;  %v5754_v8 = vld [vmem:[%s6883_s6 + $0x7] ss:$0 sm:$0xff] }
 0x19c   :  { %v294_v13 = vadd.f32 1e-06, %v284_v11  ;;  %v280_v16 = vmul.f32 %v250_v12, %v250_v12  ;;  %v290_v47 = vsub.f32 %v5636_v35, %v250_v12 }
 0x19d   :  { %v266_v14 = vpop.xlane.xlu0 %265  ;;  %v243_v15 = vpop.xlane.xlu1 %242 }
 0x19e   :  { %5287 = vrsqrt.f32 %v294_v13  ;;  %v275_v17 = vmul.f32 0.03125, %v266_v14  ;;  %v251_v18 = vmul.f32 0.03125, %v243_v15 }
 0x1a0   :  { %v285_v19 = vsub.f32 %v275_v17, %v280_v16  ;;  %v281_v25 = vmul.f32 %v251_v18, %v251_v18  ;;  %v291_v53 = vsub.f32 %v5653_v45, %v251_v18 }
 0x1a1   :  { %v269_v21 = vpop.xlane.xlu1 %268  ;;  %v246_v22 = vpop.xlane.xlu0 %245 }
 0x1a2   :  { %v295_v24 = vadd.f32 1e-06, %v285_v19  ;;  %v276_v26 = vmul.f32 0.03125, %v269_v21  ;;  %v252_v27 = vmul.f32 0.03125, %v246_v22 }
 0x1a4   :  { %5289 = vrsqrt.f32 %v295_v24  ;;  %v286_v28 = vsub.f32 %v276_v26, %v281_v25  ;;  %v282_v34 = vmul.f32 %v252_v27, %v252_v27  ;;  %v292_v60 = vsub.f32 %v5655_v48, %v252_v27 }
 0x1a5   :  { %v272_v30 = vpop.xlane.xlu1 %271 }
 0x1a6   :  { %v296_v33 = vadd.f32 1e-06, %v286_v28  ;;  %v277_v36 = vmul.f32 0.03125, %v272_v30  ;;  %v4148_v28 = vld [vmem:[%s6883_s6 + $0x8] ss:$0 sm:$0xff] }
 0x1a8   :  { %v5288_v37 = vpop.eup %5287  ;;  %5291 = vrsqrt.f32 %v296_v33  ;;  %v287_v38 = vsub.f32 %v277_v36, %v282_v34 }
 0x1a9   :  { %v304_v40 = vmul.f32 %v5288_v37, %v289_v9 }
 0x1aa   :  { %v297_v42 = vadd.f32 1e-06, %v287_v38 }
 0x1ab   :  { %v313_v43 = vmul.f32 %v4136_v31, %v304_v40 }
 0x1ac   :  { %5293 = vrsqrt.f32 %v297_v42 }
 0x1ad   :  { %v322_v46 = vadd.f32 %v4137_v41, %v313_v43 }
 0x1ae   :  { %v5290_v49 = vpop.eup %5289 }
 0x1af   :  { %v305_v51 = vmul.f32 %v5290_v49, %v290_v47  ;;  %v5694_v52 = vpack.c.bf16 %v322_v46, %v321_v44 }
 0x1b1   :  { %4646 = vmatmul.mubr.msk.bf16.vlgmr.msra.gmra.mrb[0].mxu1 %vm231_vm1, %v5694_v52  ;;  %v314_v56 = vmul.f32 %v4136_v31, %v305_v51 }
 0x1b2   :  { %v5292_v54 = vpop.eup %5291  ;;  %4649 = vmatprep.mubr.msk.bf16.mxu1 %vm5472_vm2, %v5471_v58  ;;  %4658 = vmatpush3.bf16.msra.mxu1 %v5183_v50 }
 0x1b3   :  { %v306_v57 = vmul.f32 %v5292_v54, %v291_v53  ;;  %4659 = vmatprep.subr.bf16.mxu1 %v5471_v58  ;;  %v323_v62 = vadd.f32 %v4137_v41, %v314_v56  ;;  %v4158_v56 = vld [vmem:[%s6883_s6 + $0x9] ss:$0 sm:$0xff] }
 0x1b5   :  { %v315_v59 = vmul.f32 %v4136_v31, %v306_v57 }
 0x1b6   :  { %v5294_v61 = vpop.eup %5293  ;;  %4660 = vmatpush3.bf16.msra.mxu1 %v5184_v55 }
 0x1b7   :  { %v324_v63 = vadd.f32 %v4137_v41, %v315_v59  ;;  %v307_v0 = vmul.f32 %v5294_v61, %v292_v60  ;;  %4673 = vmatprep.subr.bf16.mxu1 %v5471_v58 }
 0x1b9   :  { %v316_v2 = vmul.f32 %v4136_v31, %v307_v0  ;;  %v5707_v3 = vpack.c.bf16 %v324_v63, %v323_v62  ;;  %v5187_v0 = vld [vmem:[%s6880_s3 + $0x50] sm:$0xff]  }
 0x1bb   :  { %4650 = vmatmul.mubr.msk.bf16.gmra.mrb[4].mxu1 %vm231_vm1, %v5707_v3  ;;  %v325_v4 = vadd.f32 %v4137_v41, %v316_v2 }
 0x1bc   :  { %4653 = vmatprep.mubr.msk.bf16.mxu1 %vm5472_vm2, %v5471_v58 }
 0x1bd   :  { %v5713_v5 = vpack.c.bf16 %v325_v4, %v325_v4  ;;  %v5189_v4 = vld [vmem:[%s6880_s3 + $0x40] sm:$0xff]  }
 0x1c3   :  { %4654 = vmatmul.mubr.msk.bf16.gmra.mrb[8].mxu1 %vm231_vm1, %v5713_v5 }
 0x1c4   :  { %4661 = vmatprep.mubr.msk.bf16.mxu1 %vm5472_vm2, %v5471_v58 }
 0x1cb   :  { %4662 = vmatmul.mubr.msk.bf16.vlgmr.msra.gmra.mrb[12].mxu1 %vm231_vm1, %v5694_v52 }
 0x1cc   :  { %4665 = vmatprep.mubr.msk.bf16.mxu1 %vm5472_vm2, %v5471_v58  ;;  %4674 = vmatpush3.bf16.msra.mxu1 %v5185_v6 }
 0x1cd   :  { %4675 = vmatprep.subr.bf16.mxu1 %v5471_v58 }
 0x1d0   :  { %4676 = vmatpush3.bf16.msra.mxu1 %v5186_v7  ;;  %v5188_v7 = vld [vmem:[%s6880_s3 + $0x58] sm:$0xff]  }
 0x1d1   :  { %5159 = vmatprep.subr.bf16.mxu1 %v5471_v58 }
 0x1d3   :  { %4666 = vmatmul.mubr.msk.bf16.gmra.mrb[16].mxu1 %vm231_vm1, %v5707_v3 }
 0x1d4   :  { %4669 = vmatprep.mubr.msk.bf16.mxu1 %vm5472_vm2, %v5471_v58 }
 0x1db   :  { %4670 = vmatmul.mubr.msk.bf16.gmra.mrb[20].mxu1 %vm231_vm1, %v5713_v5 }
 0x1dc   :  { %4677 = vmatprep.mubr.msk.bf16.mxu1 %vm5472_vm2, %v5471_v58 }
 0x1e3   :  { %4678 = vmatmul.mubr.msk.bf16.vlgmr.msra.gmra.mrb[24].mxu1 %vm231_vm1, %v5694_v52 }
 0x1e4   :  { %4681 = vmatprep.mubr.msk.bf16.mxu1 %vm5472_vm2, %v5471_v58 }
 0x1eb   :  { %4682 = vmatmul.mubr.msk.bf16.gmra.mrb[28].mxu1 %vm231_vm1, %v5707_v3 }
 0x1ec   :  { %4685 = vmatprep.mubr.msk.bf16.mxu1 %vm5472_vm2, %v5471_v58 }
 0x1f3   :  { %4686 = vmatmul.mubr.msk.bf16.gmra.mrb[32].mxu1 %vm231_vm1, %v5713_v5 }
 0x1f4   :  { %4699 = vmatprep.mubr.msk.bf16.mxu1 %vm5472_vm2, %v5471_v58 }
 0x284   :  { %v393_v10 = vpop.f32.mrb[0].mxu1 }
 0x285   :  { %v4647_v11 = vpop.f32.mrb[1].mxu1  ;;  %v394_v13 = vadd.f32 %v5754_v8, %v393_v10 }
 0x286   :  { %v396_v12 = vpop.f32.mrb[2].mxu1 }
 0x287   :  { %v397_v14 = vadd.f32 %v5754_v8, %v396_v12  ;;  %v4648_v15 = vpop.f32.mrb[3].mxu1 }
 0x289   :  { %v571_v16 = vpack.c.bf16 %v397_v14, %v394_v13  ;;  %v5190_v13 = vld [vmem:[%s6880_s3 + $0x48] sm:$0xff]  }
 0x28e   :  { %v401_v17 = vpop.f32.mrb[4].mxu1 }
 0x28f   :  { %v4651_v18 = vpop.f32.mrb[5].mxu1  ;;  %v402_v20 = vadd.f32 %v5754_v8, %v401_v17 }
 0x290   :  { %v404_v19 = vpop.f32.mrb[6].mxu1 }
 0x291   :  { %v405_v21 = vadd.f32 %v5754_v8, %v404_v19  ;;  %v4652_v22 = vpop.f32.mrb[7].mxu1 }
 0x292   :  { %v5191_v22 = vld [vmem:[%s6880_s3 + $0x60] sm:$0xff]  }
 0x293   :  { %v572_v23 = vpack.c.bf16 %v405_v21, %v402_v20 }
 0x296   :  { %v409_v24 = vpop.f32.mrb[8].mxu1 }
 0x297   :  { %v4655_v25 = vpop.f32.mrb[9].mxu1  ;;  %v410_v10 = vadd.f32 %v5754_v8, %v409_v24 }
 0x298   :  { %v412_v26 = vpop.f32.mrb[10].mxu1 }
 0x299   :  { %v4656_v27 = vpop.f32.mrb[11].mxu1  ;;  %v573_v17 = vpack.c.bf16 %v410_v10, %v410_v10 }
 0x29e   :  { %v471_v29 = vpop.f32.mrb[12].mxu1 }
 0x29f   :  { %v4663_v30 = vpop.f32.mrb[13].mxu1  ;;  %v472_v33 = vadd.f32 %v4148_v28, %v471_v29 }
 0x2a0   :  { %v474_v31 = vpop.f32.mrb[14].mxu1 }
 0x2a1   :  { %v475_v34 = vadd.f32 %v4148_v28, %v474_v31  ;;  %v4664_v36 = vpop.f32.mrb[15].mxu1 }
 0x2a2   :  { %v4181_v36 = vld [vmem:[%s6883_s6 + $0xb] ss:$0 sm:$0xff] }
 0x2a3   :  { %v574_v9 = vpack.c.bf16 %v475_v34, %v472_v33  ;;  %v223_v34 = vld [vmem:[%s6888_s11 + $0x20] sm:$0xff] }
 0x2a5   :  { %v587_v37 = vsel %vm231_vm1, %v574_v9, 0 }
 0x2a6   :  { %v479_v38 = vpop.f32.mrb[16].mxu1  ;;  %4690 = vmatpush3.bf16.xpose.msra.mxu0 %v587_v37  ;;  %5162 = vmatpush3.bf16.xpose.msra.mxu1 %v587_v37 }
 0x2a7   :  { %v4667_v39 = vpop.f32.mrb[17].mxu1  ;;  %4691 = vmatprep.subr.bf16.mxu0 %v5471_v58  ;;  %5160 = vmatprep.subr.bf16.mxu1 %v5471_v58  ;;  %v480_v41 = vadd.f32 %v4148_v28, %v479_v38 }
 0x2a8   :  { %v482_v40 = vpop.f32.mrb[18].mxu1 }
 0x2a9   :  { %v483_v42 = vadd.f32 %v4148_v28, %v482_v40  ;;  %v4668_v43 = vpop.f32.mrb[19].mxu1 }
 0x2ab   :  { %v575_v44 = vpack.c.bf16 %v483_v42, %v480_v41 }
 0x2ad   :  { %v590_v46 = vsel %vm231_vm1, %v575_v44, 0 }
 0x2ae   :  { %v487_v47 = vpop.f32.mrb[20].mxu1  ;;  %4692 = vmatpush3.bf16.xpose.msra.mxu0 %v590_v46  ;;  %5163 = vmatpush3.bf16.xpose.msra.mxu1 %v590_v46 }
 0x2af   :  { %v488_v49 = vadd.f32 %v4148_v28, %v487_v47  ;;  %v4671_v50 = vpop.f32.mrb[21].mxu1  ;;  %4693 = vmatprep.subr.bf16.mxu0 %v5471_v58  ;;  %5161 = vmatprep.subr.bf16.mxu1 %v5471_v58 }
 0x2b0   :  { %v490_v51 = vpop.f32.mrb[22].mxu1 }
 0x2b1   :  { %v576_v53 = vpack.c.bf16 %v488_v49, %v488_v49  ;;  %v4672_v54 = vpop.f32.mrb[23].mxu1  ;;  %v4171_v51 = vld [vmem:[%s6883_s6 + $0xa] ss:$0 sm:$0xff] }
 0x2b3   :  { %v593_v55 = vsel %vm231_vm1, %v576_v53, 0 }
 0x2b6   :  { %v549_v57 = vpop.f32.mrb[24].mxu1  ;;  %4694 = vmatpush3.bf16.xpose.msra.mxu0 %v593_v55  ;;  %5164 = vmatpush3.bf16.xpose.msra.mxu1 %v593_v55 }
 0x2b7   :  { %v4679_v59 = vpop.f32.mrb[25].mxu1  ;;  %4723 = vmatprep.subr.bf16.mxu0 %v5471_v58  ;;  %4707 = vmatprep.subr.bf16.mxu1 %v5471_v58  ;;  %v550_v61 = vadd.f32 %v4158_v56, %v549_v57 }
 0x2b8   :  { %v552_v60 = vpop.f32.mrb[26].mxu1 }
 0x2b9   :  { %v553_v62 = vadd.f32 %v4158_v56, %v552_v60  ;;  %v4680_v63 = vpop.f32.mrb[27].mxu1 }
 0x2bb   :  { %v651_v2 = vpack.c.bf16 %v553_v62, %v550_v61 }
 0x2bd   :  { %4696 = vmatmul.mubr.msk.bf16.vlgmr.msra.gmra.mrb[8].mxu0 %vm231_vm1, %v571_v16  ;;  %4700 = vmatmul.mubr.msk.bf16.vlgmr.msra.gmra.mrb[36].mxu1 %vm231_vm1, %v572_v23  ;;  %v5192_v23 = vld [vmem:[%s6880_s3 + $0x68] sm:$0xff]  }
 0x2be   :  { %v557_v6 = vpop.f32.mrb[28].mxu1  ;;  %4724 = vmatpush3.bf16.msra.mxu0 %v5187_v0  ;;  %4703 = vmatprep.mubr.msk.bf16.mxu1 %vm5472_vm2, %v5471_v58 }
 0x2bf   :  { %v4683_v11 = vpop.f32.mrb[29].mxu1  ;;  %4725 = vmatprep.subr.bf16.mxu0 %v5471_v58  ;;  %4727 = vmatprep.mubr.msk.bf16.mxu0 %vm5472_vm2, %v5471_v58  ;;  %v558_v14 = vadd.f32 %v4158_v56, %v557_v6 }
 0x2c0   :  { %v560_v12 = vpop.f32.mrb[30].mxu1  ;;  %4708 = vmatpush3.bf16.msra.mxu1 %v5189_v4 }
 0x2c1   :  { %v561_v15 = vadd.f32 %v4158_v56, %v560_v12  ;;  %v4684_v16 = vpop.f32.mrb[31].mxu1  ;;  %4709 = vmatprep.subr.bf16.mxu1 %v5471_v58 }
 0x2c2   :  { %4726 = vmatpush3.bf16.msra.mxu0 %v5188_v7 }
 0x2c3   :  { %v652_v8 = vpack.c.bf16 %v561_v15, %v558_v14  ;;  %4755 = vmatprep.subr.bf16.mxu0 %v5471_v58 }
 0x2c4   :  { %4710 = vmatpush3.bf16.msra.mxu1 %v5190_v13 }
 0x2c5   :  { %4704 = vmatmul.mubr.msk.bf16.gmra.mrb[40].mxu1 %vm231_vm1, %v573_v17  ;;  %4728 = vmatmul.mubr.msk.bf16.vlgmr.msra.gmra.mrb[12].mxu0 %vm231_vm1, %v5694_v52 }
 0x2c6   :  { %v565_v18 = vpop.f32.mrb[32].mxu1  ;;  %4711 = vmatprep.mubr.msk.bf16.mxu1 %vm5472_vm2, %v5471_v58  ;;  %4731 = vmatprep.mubr.msk.bf16.mxu0 %vm5472_vm2, %v5471_v58 }
 0x2c7   :  { %v4687_v19 = vpop.f32.mrb[33].mxu1  ;;  %4739 = vmatprep.subr.bf16.mxu1 %v5471_v58  ;;  %v566_v24 = vadd.f32 %v4158_v56, %v565_v18 }
 0x2c8   :  { %v568_v20 = vpop.f32.mrb[34].mxu1 }
 0x2c9   :  { %v4688_v21 = vpop.f32.mrb[35].mxu1  ;;  %v653_v25 = vpack.c.bf16 %v566_v24, %v566_v24 }
 0x2cb   :  { %v1108_v26 = vsel %vm1106_vm3, %v653_v25, 0 }
 0x2cd   :  { %4712 = vmatmul.mubr.msk.bf16.vlgmr.msra.gmra.mrb[44].mxu1 %vm231_vm1, %v5694_v52  ;;  %4732 = vmatmul.mubr.msk.bf16.gmra.mrb[16].mxu0 %vm231_vm1, %v5707_v3 }
 0x2ce   :  { %4715 = vmatprep.mubr.msk.bf16.mxu1 %vm5472_vm2, %v5471_v58  ;;  %4735 = vmatprep.mubr.msk.bf16.mxu0 %vm5472_vm2, %v5471_v58 }
 0x2cf   :  { %4740 = vmatpush3.bf16.msra.mxu1 %v5191_v22 }
 0x2d0   :  { %4741 = vmatprep.subr.bf16.mxu1 %v5471_v58 }
 0x2d3   :  { %4742 = vmatpush3.bf16.msra.mxu1 %v5192_v23 }
 0x2d4   :  { %4773 = vmatprep.subr.bf16.mxu1 %v5471_v58 }
 0x2d5   :  { %4716 = vmatmul.mubr.msk.bf16.gmra.mrb[48].mxu1 %vm231_vm1, %v5707_v3  ;;  %4736 = vmatmul.mubr.msk.bf16.gmra.mrb[20].mxu0 %vm231_vm1, %v5713_v5 }
 0x2d6   :  { %4719 = vmatprep.mubr.msk.bf16.mxu1 %vm5472_vm2, %v5471_v58  ;;  %4761 = vmatprep.mubr.msk.bf16.mxu0 %vm5472_vm2, %v5471_v58 }
 0x2dd   :  { %4720 = vmatmul.mubr.msk.bf16.gmra.mrb[52].mxu1 %vm231_vm1, %v5713_v5 }
 0x2de   :  { %4743 = vmatprep.mubr.msk.bf16.mxu1 %vm5472_vm2, %v5471_v58 }
 0x2e5   :  { %4744 = vmatmul.mubr.msk.bf16.vlgmr.msra.gmra.mrb[56].mxu1 %vm231_vm1, %v5694_v52 }
 0x2e6   :  { %4774 = vmatpush3.bf16.msra.mxu1 %v651_v2  ;;  %4747 = vmatprep.mubr.msk.bf16.mxu1 %vm5472_vm2, %v5471_v58 }
 0x2e7   :  { %4775 = vmatprep.subr.bf16.mxu1 %v5471_v58 }
 0x2ea   :  { %4776 = vmatpush3.bf16.msra.mxu1 %v652_v8 }
 0x2eb   :  { %4777 = vmatprep.subr.bf16.mxu1 %v5471_v58 }
 0x2ed   :  { %4748 = vmatmul.mubr.msk.bf16.gmra.mrb[60].mxu1 %vm231_vm1, %v5707_v3 }
 0x2ee   :  { %4778 = vmatpush3.bf16.msra.mxu1 %v1108_v26  ;;  %4751 = vmatprep.mubr.msk.bf16.mxu1 %vm5472_vm2, %v5471_v58 }
 0x2ef   :  { %4809 = vmatprep.subr.bf16.mxu1 %v5471_v58 }
 0x2f5   :  { %4752 = vmatmul.mubr.msk.bf16.gmra.mrb[64].mxu1 %vm231_vm1, %v5713_v5 }
 0x2f6   :  { %4779 = vmatprep.mubr.msk.bf16.mxu1 %vm5472_vm2, %v5471_v58 }
 0x390   :  { %v5849_v52 = vpop.f32.mrb[8].mxu0  ;;  %v5851_v27 = vpop.f32.mrb[36].mxu1 }
 0x391   :  { %v4697_v28 = vpop.f32.mrb[9].mxu0  ;;  %v4701_v29 = vpop.f32.mrb[37].mxu1 }
 0x392   :  { %v5853_v30 = vpop.f32.mrb[10].mxu0  ;;  %v5855_v3 = vpop.f32.mrb[38].mxu1  ;;  %v4191_v28 = vld [vmem:[%s6883_s6 + $0xc] ss:$0 sm:$0xff] }
 0x393   :  { %v4698_v31 = vpop.f32.mrb[11].mxu0  ;;  %v4702_v33 = vpop.f32.mrb[39].mxu1 }
 0x398   :  { %v645_v5 = vpop.f32.mrb[40].mxu1  ;;  %v788_v9 = vpop.f32.mrb[12].mxu0 }
 0x399   :  { %v5863_v37 = vadd.f32 %v645_v5, %v223_v34  ;;  %v4705_v38 = vpop.f32.mrb[41].mxu1  ;;  %v4729_v39 = vpop.f32.mrb[13].mxu0  ;;  %v789_v42 = vadd.f32 %v4181_v36, %v788_v9 }
 0x39a   :  { %v648_v40 = vpop.f32.mrb[42].mxu1  ;;  %v791_v41 = vpop.f32.mrb[14].mxu0 }
 0x39b   :  { %v792_v43 = vadd.f32 %v4181_v36, %v791_v41  ;;  %v4706_v44 = vpop.f32.mrb[43].mxu1  ;;  %v4730_v46 = vpop.f32.mrb[15].mxu0  ;;  %v994_v47 = vsel %vm981_vm4, %v5863_v37, -inf }
 0x39c   :  { %995 = vmax.xlane.f32.xlu0 %v994_v47 }
 0x39d   :  { %v891_v49 = vpack.c.bf16 %v792_v43, %v789_v42 }
 0x39f   :  { %v904_v50 = vsel %vm231_vm1, %v891_v49, 0 }
 0x3a0   :  { %v710_v53 = vpop.f32.mrb[44].mxu1  ;;  %v796_v54 = vpop.f32.mrb[16].mxu0  ;;  %4756 = vmatpush3.bf16.xpose.msra.mxu0 %v904_v50 }
 0x3a1   :  { %v4713_v55 = vpop.f32.mrb[45].mxu1  ;;  %v4733_v56 = vpop.f32.mrb[17].mxu0  ;;  %4757 = vmatprep.subr.bf16.mxu0 %v5471_v58  ;;  %v711_v60 = vadd.f32 %v4171_v51, %v710_v53  ;;  %v797_v61 = vadd.f32 %v4181_v36, %v796_v54 }
 0x3a2   :  { %v713_v57 = vpop.f32.mrb[46].mxu1  ;;  %v799_v59 = vpop.f32.mrb[18].mxu0 }
 0x3a3   :  { %v714_v62 = vadd.f32 %v4171_v51, %v713_v57  ;;  %v800_v63 = vadd.f32 %v4181_v36, %v799_v59  ;;  %v4714_v0 = vpop.f32.mrb[47].mxu1  ;;  %v4734_v2 = vpop.f32.mrb[19].mxu0  ;;  %v224_v59 = vld [vmem:[%s6888_s11 + $0x28] sm:$0xff] }
 0x3a4   :  { %v219_v2 = vld [vmem:[%s6888_s11] sm:$0xff] }
 0x3a5   :  { %v888_v4 = vpack.c.bf16 %v714_v62, %v711_v60  ;;  %v892_v6 = vpack.c.bf16 %v800_v63, %v797_v61  ;;  %v225_v62 = vld [vmem:[%s6888_s11 + $0x30] sm:$0xff] }
 0x3a7   :  { %v907_v7 = vsel %vm231_vm1, %v892_v6, 0 }
 0x3a8   :  { %v718_v10 = vpop.f32.mrb[48].mxu1  ;;  %v804_v11 = vpop.f32.mrb[20].mxu0  ;;  %4758 = vmatpush3.bf16.xpose.msra.mxu0 %v907_v7 }
 0x3a9   :  { %v805_v12 = vadd.f32 %v4181_v36, %v804_v11  ;;  %v4717_v13 = vpop.f32.mrb[49].mxu1  ;;  %v4737_v14 = vpop.f32.mrb[21].mxu0  ;;  %4759 = vmatprep.subr.bf16.mxu0 %v5471_v58  ;;  %v719_v17 = vadd.f32 %v4171_v51, %v718_v10 }
 0x3aa   :  { %v721_v15 = vpop.f32.mrb[50].mxu1  ;;  %v807_v16 = vpop.f32.mrb[22].mxu0  ;;  %v226_v13 = vld [vmem:[%s6888_s11 + $0x38] sm:$0xff]  ;;  %v220_v14 = vld [vmem:[%s6888_s11 + $0x8] sm:$0xff] }
 0x3ab   :  { %v893_v8 = vpack.c.bf16 %v805_v12, %v805_v12  ;;  %v722_v18 = vadd.f32 %v4171_v51, %v721_v15  ;;  %v4718_v19 = vpop.f32.mrb[51].mxu1  ;;  %v4738_v20 = vpop.f32.mrb[23].mxu0  ;;  %v227_v16 = vld [vmem:[%s6888_s11 + $0x40] sm:$0xff] }
 0x3ac   :  { %v972_v20 = vadd.f32 %v5853_v30, %v220_v14  ;;  %v222_v30 = vld [vmem:[%s6888_s11 + $0x18] sm:$0xff] }
 0x3ad   :  { %v889_v21 = vpack.c.bf16 %v722_v18, %v719_v17  ;;  %v910_v22 = vsel %vm231_vm1, %v893_v8, 0  ;;  %v221_v18 = vld [vmem:[%s6888_s11 + $0x10] sm:$0xff] }
 0x3b0   :  { %v726_v23 = vpop.f32.mrb[52].mxu1  ;;  %4760 = vmatpush3.bf16.xpose.msra.mxu0 %v910_v22 }
 0x3b1   :  { %v4721_v24 = vpop.f32.mrb[53].mxu1  ;;  %4791 = vmatprep.subr.bf16.mxu0 %v5471_v58  ;;  %v727_v39 = vadd.f32 %v4171_v51, %v726_v23 }
 0x3b2   :  { %v729_v25 = vpop.f32.mrb[54].mxu1  ;;  %v973_v24 = vadd.f32 %v5851_v27, %v221_v18 }
 0x3b3   :  { %v4722_v26 = vpop.f32.mrb[55].mxu1  ;;  %v890_v46 = vpack.c.bf16 %v727_v39, %v727_v39 }
 0x3b4   :  { %v228_v26 = vld [vmem:[%s6888_s11 + $0x48] sm:$0xff] }
 0x3b7   :  { %4762 = vmatmul.mubr.msk.bf16.vlgmr.msra.gmra.mrb[24].mxu0 %vm231_vm1, %v888_v4 }
 0x3b8   :  { %v866_v29 = vpop.f32.mrb[56].mxu1  ;;  %4765 = vmatprep.mubr.msk.bf16.mxu0 %vm5472_vm2, %v5471_v58 }
 0x3b9   :  { %v4745_v31 = vpop.f32.mrb[57].mxu1  ;;  %v867_v34 = vadd.f32 %v4191_v28, %v866_v29 }
 0x3ba   :  { %v869_v33 = vpop.f32.mrb[58].mxu1 }
 0x3bb   :  { %v870_v5 = vadd.f32 %v4191_v28, %v869_v33  ;;  %v4746_v36 = vpop.f32.mrb[59].mxu1 }
 0x3bc   :  { %v974_v36 = vadd.f32 %v5855_v3, %v222_v30 }
 0x3bd   :  { %v968_v9 = vpack.c.bf16 %v870_v5, %v867_v34  ;;  %v988_v34 = vsel %vm981_vm4, %v973_v24, -inf }
 0x3bf   :  { %4766 = vmatmul.mubr.msk.bf16.gmra.mrb[28].mxu0 %vm231_vm1, %v889_v21 }
 0x3c0   :  { %4792 = vmatpush3.bf16.msra.mxu0 %v968_v9  ;;  %v874_v38 = vpop.f32.mrb[60].mxu1  ;;  %4769 = vmatprep.mubr.msk.bf16.mxu0 %vm5472_vm2, %v5471_v58 }
 0x3c1   :  { %v4749_v40 = vpop.f32.mrb[61].mxu1  ;;  %4793 = vmatprep.subr.bf16.mxu0 %v5471_v58  ;;  %v875_v42 = vadd.f32 %v4191_v28, %v874_v38 }
 0x3c2   :  { %v877_v41 = vpop.f32.mrb[62].mxu1  ;;  %v991_v40 = vsel %vm981_vm4, %v974_v36, -inf }
 0x3c3   :  { %v878_v43 = vadd.f32 %v4191_v28, %v877_v41  ;;  %v4750_v44 = vpop.f32.mrb[63].mxu1 }
 0x3c5   :  { %v969_v47 = vpack.c.bf16 %v878_v43, %v875_v42 }
 0x3c7   :  { %4770 = vmatmul.mubr.msk.bf16.gmra.mrb[32].mxu0 %vm231_vm1, %v890_v46 }
 0x3c8   :  { %4794 = vmatpush3.bf16.msra.mxu0 %v969_v47  ;;  %v882_v49 = vpop.f32.mrb[64].mxu1  ;;  %4797 = vmatprep.mubr.msk.bf16.mxu0 %vm5472_vm2, %v5471_v58 }
 0x3c9   :  { %v883_v50 = vadd.f32 %v4191_v28, %v882_v49  ;;  %v4753_v53 = vpop.f32.mrb[65].mxu1  ;;  %4795 = vmatprep.subr.bf16.mxu0 %v5471_v58  ;;  %v985_v28 = vsel %vm981_vm4, %v972_v20, -inf }
 0x3ca   :  { %v885_v51 = vpop.f32.mrb[66].mxu1 }
 0x3cb   :  { %v970_v54 = vpack.c.bf16 %v883_v50, %v883_v50  ;;  %v4754_v55 = vpop.f32.mrb[67].mxu1 }
 0x3cd   :  { %v1193_v56 = vsel %vm1106_vm3, %v970_v54, 0 }
 0x3ce   :  { %4796 = vmatpush3.bf16.msra.mxu0 %v1193_v56 }
 0x3cf   :  { %4825 = vmatprep.subr.bf16.mxu0 %v5471_v58 }
 0x429   :  { %v996_v57 = vpop.xlane.xlu0 %995 }
 0x42a   :  { %v1016_v60 = vsub.f32 %v5863_v37, %v996_v57  ;;  %v971_v37 = vadd.f32 %v5849_v52, %v219_v2 }
 0x42c   :  { %v1030_v11 = vmul.f32 1.442695, %v1016_v60  ;;  %v982_v52 = vsel %vm981_vm4, %v971_v37, -inf }
 0x42e   :  { %5295 = vpow2.f32 %v1030_v11 }
 0x438   :  { %v5930_v27 = vpop.eup %5295 }
 0x439   :  { %v1054_v39 = vsel %vm981_vm4, %v5930_v27, 0.0 }
 0x48a   :  { %v946_v61 = vpop.f32.mrb[24].mxu0 }
 0x48b   :  { %v976_v63 = vadd.f32 %v946_v61, %v224_v59  ;;  %v4763_v0 = vpop.f32.mrb[25].mxu0 }
 0x48c   :  { %v949_v4 = vpop.f32.mrb[26].mxu0 }
 0x48d   :  { %v977_v6 = vadd.f32 %v949_v4, %v225_v62  ;;  %v4764_v7 = vpop.f32.mrb[27].mxu0  ;;  %v997_v10 = vsel %vm981_vm4, %v976_v63, -inf }
 0x48e   :  { %998 = vmax.xlane.f32.xlu1 %v997_v10 }
 0x48f   :  { %v1000_v12 = vsel %vm981_vm4, %v977_v6, -inf }
 0x490   :  { %1001 = vmax.xlane.f32.xlu0 %v1000_v12 }
 0x492   :  { %v954_v15 = vpop.f32.mrb[28].mxu0 }
 0x493   :  { %v978_v17 = vadd.f32 %v954_v15, %v226_v13  ;;  %v4767_v8 = vpop.f32.mrb[29].mxu0 }
 0x494   :  { %983 = vmax.xlane.f32.xlu0 %v982_v52  ;;  %v957_v19 = vpop.f32.mrb[30].mxu0 }
 0x495   :  { %v979_v21 = vadd.f32 %v957_v19, %v227_v16  ;;  %v4768_v22 = vpop.f32.mrb[31].mxu0  ;;  %v1003_v23 = vsel %vm981_vm4, %v978_v17, -inf }
 0x496   :  { %1004 = vmax.xlane.f32.xlu1 %v1003_v23 }
 0x497   :  { %v1006_v25 = vsel %vm981_vm4, %v979_v21, -inf }
 0x498   :  { %1007 = vmax.xlane.f32.xlu0 %v1006_v25 }
 0x49a   :  { %986 = vmax.xlane.f32.xlu1 %v985_v28  ;;  %v962_v29 = vpop.f32.mrb[32].mxu0 }
 0x49b   :  { %v980_v31 = vadd.f32 %v962_v29, %v228_v26  ;;  %v4771_v33 = vpop.f32.mrb[33].mxu0 }
 0x49c   :  { %989 = vmax.xlane.f32.xlu0 %v988_v34  ;;  %v965_v5 = vpop.f32.mrb[34].mxu0 }
 0x49d   :  { %v4772_v9 = vpop.f32.mrb[35].mxu0  ;;  %v1009_v38 = vsel %vm981_vm4, %v980_v31, -inf }
 0x49e   :  { %1010 = vmax.xlane.f32.xlu1 %v1009_v38 }
 0x4a0   :  { %1055 = vadd.xlane.f32.xlu0 %v1054_v39 }
 0x4a2   :  { %992 = vmax.xlane.f32.xlu1 %v991_v40 }
 0x51b   :  { %v999_v41 = vpop.xlane.xlu1 %998 }
 0x51c   :  { %v1017_v42 = vsub.f32 %v976_v63, %v999_v41 }
 0x51d   :  { %v1002_v43 = vpop.xlane.xlu0 %1001 }
 0x51e   :  { %v1032_v44 = vmul.f32 1.442695, %v1017_v42  ;;  %v1018_v46 = vsub.f32 %v977_v6, %v1002_v43 }
 0x520   :  { %5297 = vpow2.f32 %v1032_v44  ;;  %v1034_v47 = vmul.f32 1.442695, %v1018_v46 }
 0x521   :  { %v984_v49 = vpop.xlane.xlu0 %983 }
 0x522   :  { %5299 = vpow2.f32 %v1034_v47  ;;  %v1012_v3 = vsub.f32 %v971_v37, %v984_v49 }
 0x523   :  { %v1005_v50 = vpop.xlane.xlu1 %1004 }
 0x524   :  { %v1022_v53 = vmul.f32 1.442695, %v1012_v3  ;;  %v1019_v51 = vsub.f32 %v978_v17, %v1005_v50 }
 0x525   :  { %v1008_v54 = vpop.xlane.xlu0 %1007 }
 0x526   :  { %5301 = vpow2.f32 %v1022_v53  ;;  %v1036_v55 = vmul.f32 1.442695, %v1019_v51  ;;  %v1020_v56 = vsub.f32 %v979_v21, %v1008_v54 }
 0x527   :  { %v987_v57 = vpop.xlane.xlu1 %986 }
 0x528   :  { %5303 = vpow2.f32 %v1036_v55  ;;  %v1038_v59 = vmul.f32 1.442695, %v1020_v56  ;;  %v1013_v60 = vsub.f32 %v972_v20, %v987_v57 }
 0x529   :  { %v990_v61 = vpop.xlane.xlu0 %989 }
 0x52a   :  { %v5298_v62 = vpop.eup %5297  ;;  %5305 = vpow2.f32 %v1038_v59  ;;  %v1024_v63 = vmul.f32 1.442695, %v1013_v60  ;;  %v1014_v0 = vsub.f32 %v973_v24, %v990_v61  ;;  %v5193_v59 = vld [vmem:[%s6880_s3 + $0x70] sm:$0xff]  }
 0x52b   :  { %v1011_v2 = vpop.xlane.xlu1 %1010  ;;  %v1057_v4 = vsel %vm981_vm4, %v5298_v62, 0.0  ;;  %v5194_v61 = vld [vmem:[%s6880_s3 + $0x30] sm:$0xff]  }
 0x52c   :  { %v5300_v6 = vpop.eup %5299  ;;  %5307 = vpow2.f32 %v1024_v63  ;;  %v1026_v7 = vmul.f32 1.442695, %v1014_v0  ;;  %v1021_v10 = vsub.f32 %v980_v31, %v1011_v2  ;;  %1058 = vadd.xlane.f32.xlu1 %v1057_v4 }
 0x52d   :  { %v1060_v11 = vsel %vm981_vm4, %v5300_v6, 0.0  ;;  %v1056_v28 = vpop.xlane.xlu0 %1055 }
 0x52e   :  { %5309 = vpow2.f32 %v1026_v7  ;;  %v1040_v37 = vmul.f32 1.442695, %v1021_v10  ;;  %1061 = vadd.xlane.f32.xlu0 %v1060_v11 }
 0x52f   :  { %v993_v12 = vpop.xlane.xlu1 %992 }
 0x530   :  { %v5302_v13 = vpop.eup %5301  ;;  %5311 = vpow2.f32 %v1040_v37  ;;  %v1015_v14 = vsub.f32 %v974_v36, %v993_v12 }
 0x531   :  { %v1042_v15 = vsel %vm981_vm4, %v5302_v13, 0.0 }
 0x532   :  { %v5304_v16 = vpop.eup %5303  ;;  %v1028_v17 = vmul.f32 1.442695, %v1015_v14  ;;  %1043 = vadd.xlane.f32.xlu0 %v1042_v15  ;;  %v5196_v14 = vld [vmem:[%s6880_s3 + $0x38] sm:$0xff]  }
 0x533   :  { %v1063_v8 = vsel %vm981_vm4, %v5304_v16, 0.0 }
 0x534   :  { %v5306_v52 = vpop.eup %5305  ;;  %5313 = vpow2.f32 %v1028_v17  ;;  %1064 = vadd.xlane.f32.xlu1 %v1063_v8 }
 0x535   :  { %v1066_v18 = vsel %vm981_vm4, %v5306_v52, 0.0 }
 0x536   :  { %v5308_v19 = vpop.eup %5307  ;;  %1067 = vadd.xlane.f32.xlu0 %v1066_v18 }
 0x537   :  { %v1045_v20 = vsel %vm981_vm4, %v5308_v19, 0.0 }
 0x538   :  { %v5943_v21 = vpop.eup %5309  ;;  %1046 = vadd.xlane.f32.xlu1 %v1045_v20 }
 0x539   :  { %v1048_v22 = vsel %vm981_vm4, %v5943_v21, 0.0 }
 0x53a   :  { %v5312_v23 = vpop.eup %5311  ;;  %1049 = vadd.xlane.f32.xlu0 %v1048_v22 }
 0x53b   :  { %v1069_v24 = vsel %vm981_vm4, %v5312_v23, 0.0 }
 0x53c   :  { %1070 = vadd.xlane.f32.xlu1 %v1069_v24 }
 0x53e   :  { %v5314_v25 = vpop.eup %5313 }
 0x53f   :  { %v1051_v26 = vsel %vm981_vm4, %v5314_v25, 0.0 }
 0x540   :  { %1052 = vadd.xlane.f32.xlu1 %v1051_v26 }
 0x5b9   :  { %v1059_v30 = vpop.xlane.xlu1 %1058 }
 0x5ba   :  { %5315 = vrcp.f32 %v1059_v30 }
 0x5bb   :  { %v1062_v29 = vpop.xlane.xlu0 %1061  ;;  %5317 = vrcp.f32 %v1056_v28 }
 0x5bc   :  { %5319 = vrcp.f32 %v1062_v29 }
 0x5bf   :  { %v1044_v31 = vpop.xlane.xlu0 %1043 }
 0x5c1   :  { %v1065_v33 = vpop.xlane.xlu1 %1064 }
 0x5c2   :  { %5321 = vrcp.f32 %v1065_v33 }
 0x5c3   :  { %v1068_v34 = vpop.xlane.xlu0 %1067  ;;  %5323 = vrcp.f32 %v1044_v31 }
 0x5c4   :  { %v5316_v36 = vpop.eup %5315 }
 0x5c5   :  { %v1047_v5 = vpop.xlane.xlu1 %1046  ;;  %v5318_v9 = vpop.eup %5317  ;;  %v1087_v38 = vmul.f32 %v5316_v36, %v5298_v62 }
 0x5c6   :  { %5325 = vrcp.f32 %v1047_v5  ;;  %v5320_v41 = vpop.eup %5319  ;;  %v1086_v42 = vmul.f32 %v5318_v9, %v5930_v27 }
 0x5c7   :  { %5327 = vrcp.f32 %v1068_v34  ;;  %v1050_v39 = vpop.xlane.xlu0 %1049  ;;  %v1088_v46 = vmul.f32 %v5320_v41, %v5300_v6 }
 0x5c8   :  { %v1094_v44 = vpack.c.bf16 %v1087_v38, %v1086_v42 }
 0x5c9   :  { %v1071_v40 = vpop.xlane.xlu1 %1070 }
 0x5ca   :  { %5329 = vrcp.f32 %v1071_v40  ;;  %v1178_v55 = vrot.slane %v1094_v44, 4 }
 0x5cb   :  { %5331 = vrcp.f32 %v1050_v39 }
 0x5cc   :  { %v5322_v43 = vpop.eup %5321 }
 0x5cd   :  { %v1089_v47 = vmul.f32 %v5322_v43, %v5304_v16  ;;  %v1053_v49 = vpop.xlane.xlu1 %1052  ;;  %v5324_v3 = vpop.eup %5323 }
 0x5ce   :  { %5333 = vrcp.f32 %v1053_v49  ;;  %v1082_v51 = vmul.f32 %v5324_v3, %v5302_v13  ;;  %v5195_v13 = vld [vmem:[%s6880_s3 + $0x78] sm:$0xff]  }
 0x5cf   :  { %v1095_v50 = vpack.c.bf16 %v1089_v47, %v1088_v46 }
 0x5d0   :  { %v5326_v53 = vpop.eup %5325 }
 0x5d1   :  { %v1083_v54 = vmul.f32 %v5326_v53, %v5308_v19  ;;  %v1179_v56 = vrot.slane %v1095_v50, 4  ;;  %v5328_v57 = vpop.eup %5327 }
 0x5d2   :  { %v1090_v63 = vmul.f32 %v5328_v57, %v5306_v52 }
 0x5d3   :  { %v1092_v27 = vpack.c.bf16 %v1083_v54, %v1082_v51  ;;  %v1180_v60 = vsel %vm1106_vm3, %v1178_v55, %v1179_v56  ;;  %v4224_v51 = vld [vmem:[%s6883_s6 + $0x4] ss:$0 sm:$0xff] }
 0x5d4   :  { %v5330_v62 = vpop.eup %5329  ;;  %4798 = vmatmul.mubr.msk.bf16.vlgmr.msra.gmra.mrb[36].mxu0 %vm981_vm4, %v1180_v60 }
 0x5d5   :  { %4780 = vmatmul.mubr.msk.bf16.vlgmr.msra.gmra.mrb[68].mxu1 %vm981_vm4, %v1092_v27  ;;  %4801 = vmatprep.mubr.msk.bf16.mxu0 %vm5472_vm2, %v5471_v58  ;;  %v1091_v0 = vmul.f32 %v5330_v62, %v5312_v23  ;;  %v5332_v2 = vpop.eup %5331 }
 0x5d6   :  { %4783 = vmatprep.mubr.msk.bf16.mxu1 %vm5472_vm2, %v5471_v58  ;;  %4810 = vmatpush3.bf16.msra.mxu1 %v5193_v59  ;;  %v1084_v10 = vmul.f32 %v5332_v2, %v5943_v21 }
 0x5d7   :  { %v1096_v4 = vpack.c.bf16 %v1091_v0, %v1090_v63  ;;  %4826 = vmatpush3.bf16.msra.mxu0 %v5194_v61  ;;  %4811 = vmatprep.subr.bf16.mxu1 %v5471_v58 }
 0x5d8   :  { %v5334_v6 = vpop.eup %5333  ;;  %4827 = vmatprep.subr.bf16.mxu0 %v5471_v58 }
 0x5d9   :  { %v1181_v7 = vrot.slane %v1096_v4, 4  ;;  %v1085_v11 = vmul.f32 %v5334_v6, %v5314_v25 }
 0x5da   :  { %4812 = vmatpush3.bf16.msra.mxu1 %v5195_v13 }
 0x5db   :  { %v1182_v37 = vsel %vm1106_vm3, %v1179_v56, %v1181_v7  ;;  %v1093_v12 = vpack.c.bf16 %v1085_v11, %v1084_v10  ;;  %4828 = vmatpush3.bf16.msra.mxu0 %v5196_v14  ;;  %4841 = vmatprep.subr.bf16.mxu1 %v5471_v58  ;;  %v5435_v56 = vld [vmem:[%s6878_s1] sm:$0xff] }
 0x5dc   :  { %4802 = vmatmul.mubr.msk.bf16.gmra.mrb[40].mxu0 %vm981_vm4, %v1182_v37  ;;  %4857 = vmatprep.subr.bf16.mxu0 %v5471_v58 }
 0x5dd   :  { %4784 = vmatmul.mubr.msk.bf16.gmra.mrb[72].mxu1 %vm981_vm4, %v1093_v12  ;;  %4805 = vmatprep.mubr.msk.bf16.mxu0 %vm5472_vm2, %v5471_v58 }
 0x5de   :  { %4787 = vmatprep.mubr.msk.bf16.mxu1 %vm5472_vm2, %v5471_v58 }
 0x5e4   :  { %4806 = vmatmul.mubr.msk.bf16.gmra.mrb[44].mxu0 %vm981_vm4, %v1181_v7 }
 0x5e5   :  { %4788 = vmatmul.mubr.msk.bf16.gmra.mrb[76].mxu1 %vm981_vm4, %v1094_v44  ;;  %4829 = vmatprep.mubr.msk.bf16.mxu0 %vm5472_vm2, %v5471_v58 }
 0x5e6   :  { %4813 = vmatprep.mubr.msk.bf16.mxu1 %vm5472_vm2, %v5471_v58 }
 0x6a7   :  { %v1229_v15 = vpop.f32.mrb[36].mxu0 }
 0x6a8   :  { %v1144_v16 = vpop.f32.mrb[68].mxu1  ;;  %v4799_v17 = vpop.f32.mrb[37].mxu0 }
 0x6a9   :  { %v4781_v8 = vpop.f32.mrb[69].mxu1  ;;  %v1232_v52 = vpop.f32.mrb[38].mxu0 }
 0x6aa   :  { %v1251_v18 = vpack.c.bf16 %v1232_v52, %v1229_v15  ;;  %v1147_v19 = vpop.f32.mrb[70].mxu1  ;;  %v4800_v20 = vpop.f32.mrb[39].mxu0 }
 0x6ab   :  { %v1166_v21 = vpack.c.bf16 %v1147_v19, %v1144_v16  ;;  %v4782_v22 = vpop.f32.mrb[71].mxu1 }
 0x6ac   :  { %4814 = vmatmul.mubr.msk.bf16.vlgmr.msra.gmra.mrb[80].mxu1 %vm231_vm1, %v1251_v18 }
 0x6ad   :  { %4830 = vmatmul.mubr.msk.bf16.vlgmr.msra.gmra.mrb[48].mxu0 %vm231_vm1, %v1166_v21  ;;  %4817 = vmatprep.mubr.msk.bf16.mxu1 %vm5472_vm2, %v5471_v58 }
 0x6ae   :  { %4833 = vmatprep.mubr.msk.bf16.mxu0 %vm5472_vm2, %v5471_v58 }
 0x6af   :  { %v1237_v23 = vpop.f32.mrb[40].mxu0 }
 0x6b0   :  { %v1152_v24 = vpop.f32.mrb[72].mxu1  ;;  %v4803_v25 = vpop.f32.mrb[41].mxu0 }
 0x6b1   :  { %v4785_v26 = vpop.f32.mrb[73].mxu1  ;;  %v1240_v28 = vpop.f32.mrb[42].mxu0 }
 0x6b2   :  { %v1252_v30 = vpack.c.bf16 %v1240_v28, %v1237_v23  ;;  %v1155_v29 = vpop.f32.mrb[74].mxu1  ;;  %v4804_v31 = vpop.f32.mrb[43].mxu0 }
 0x6b3   :  { %v1167_v33 = vpack.c.bf16 %v1155_v29, %v1152_v24  ;;  %v4786_v34 = vpop.f32.mrb[75].mxu1 }
 0x6b4   :  { %4818 = vmatmul.mubr.msk.bf16.gmra.mrb[84].mxu1 %vm231_vm1, %v1252_v30 }
 0x6b5   :  { %4834 = vmatmul.mubr.msk.bf16.gmra.mrb[52].mxu0 %vm231_vm1, %v1167_v33  ;;  %4821 = vmatprep.mubr.msk.bf16.mxu1 %vm5472_vm2, %v5471_v58 }
 0x6b6   :  { %4837 = vmatprep.mubr.msk.bf16.mxu0 %vm5472_vm2, %v5471_v58 }
 0x6b7   :  { %v1245_v5 = vpop.f32.mrb[44].mxu0 }
 0x6b8   :  { %v1160_v36 = vpop.f32.mrb[76].mxu1  ;;  %v4807_v9 = vpop.f32.mrb[45].mxu0  ;;  %v1253_v40 = vpack.c.bf16 %v1245_v5, %v1245_v5 }
 0x6b9   :  { %v4789_v38 = vpop.f32.mrb[77].mxu1  ;;  %v1248_v39 = vpop.f32.mrb[46].mxu0  ;;  %v1168_v43 = vpack.c.bf16 %v1160_v36, %v1160_v36 }
 0x6ba   :  { %v1163_v41 = vpop.f32.mrb[78].mxu1  ;;  %v4808_v42 = vpop.f32.mrb[47].mxu0 }
 0x6bb   :  { %v4790_v44 = vpop.f32.mrb[79].mxu1 }
 0x6bc   :  { %4822 = vmatmul.mubr.msk.bf16.gmra.mrb[88].mxu1 %vm231_vm1, %v1253_v40  ;;  %v5198_v40 = vld [vmem:[%s6881_s4 + $0x8] sm:$0xff]  }
 0x6bd   :  { %4838 = vmatmul.mubr.msk.bf16.gmra.mrb[56].mxu0 %vm231_vm1, %v1168_v43  ;;  %4845 = vmatprep.mubr.msk.bf16.mxu1 %vm5472_vm2, %v5471_v58 }
 0x6be   :  { %4873 = vmatprep.mubr.msk.bf16.mxu0 %vm5472_vm2, %v5471_v58 }
 0x77f   :  { %v1314_v46 = vpop.f32.mrb[80].mxu1 }
 0x780   :  { %v4815_v47 = vpop.f32.mrb[81].mxu1  ;;  %v1391_v49 = vpop.f32.mrb[48].mxu0 }
 0x781   :  { %v1392_v3 = vadd.f32 %v1391_v49, %v1314_v46  ;;  %v1317_v50 = vpop.f32.mrb[82].mxu1  ;;  %v4831_v53 = vpop.f32.mrb[49].mxu0 }
 0x782   :  { %v4816_v54 = vpop.f32.mrb[83].mxu1  ;;  %v1394_v55 = vpop.f32.mrb[50].mxu0 }
 0x783   :  { %v1413_v57 = vadd.f32 %v5435_v56, %v1392_v3  ;;  %v1395_v59 = vadd.f32 %v1394_v55, %v1317_v50  ;;  %v4832_v27 = vpop.f32.mrb[51].mxu0 }
 0x785   :  { %v6011_v60 = vadd.f32 %v4224_v51, %v1413_v57  ;;  %v1414_v61 = vadd.f32 %v1395_v59, %v5634_v32 }
 0x787   :  { %v6014_v62 = vadd.f32 %v4224_v51, %v1414_v61  ;;  %v1322_v63 = vpop.f32.mrb[84].mxu1  ;;  %v1430_v0 = vsel %vm231_vm1, %v6011_v60, 0.0  ;;  %v1450_v2 = vmul.f32 %v6011_v60, %v6011_v60 }
 0x788   :  { %v4819_v4 = vpop.f32.mrb[85].mxu1  ;;  %1431 = vadd.xlane.f32.xlu0 %v1430_v0  ;;  %v1399_v6 = vpop.f32.mrb[52].mxu0 }
 0x789   :  { %v1400_v7 = vadd.f32 %v1399_v6, %v1322_v63  ;;  %v1325_v10 = vpop.f32.mrb[86].mxu1  ;;  %v4835_v11 = vpop.f32.mrb[53].mxu0  ;;  %v1433_v37 = vsel %vm231_vm1, %v6014_v62, 0.0  ;;  %v1451_v32 = vmul.f32 %v6014_v62, %v6014_v62  ;;  %v1455_v17 = vsel %vm231_vm1, %v1450_v2, 0.0 }
 0x78a   :  { %v4820_v12 = vpop.f32.mrb[87].mxu1  ;;  %1434 = vadd.xlane.f32.xlu1 %v1433_v37  ;;  %v1402_v13 = vpop.f32.mrb[54].mxu0 }
 0x78b   :  { %v1415_v14 = vadd.f32 %v1400_v7, %v5636_v35  ;;  %v1403_v15 = vadd.f32 %v1402_v13, %v1325_v10  ;;  %v4836_v16 = vpop.f32.mrb[55].mxu0  ;;  %v1458_v18 = vsel %vm231_vm1, %v1451_v32, 0.0 }
 0x78c   :  { %1456 = vadd.xlane.f32.xlu0 %v1455_v17 }
 0x78d   :  { %v6026_v8 = vadd.f32 %v4224_v51, %v1415_v14  ;;  %v1416_v52 = vadd.f32 %v1403_v15, %v5653_v45 }
 0x78e   :  { %1459 = vadd.xlane.f32.xlu1 %v1458_v18  ;;  %v4225_v18 = vld [vmem:[%s6883_s6 + $0x2] ss:$0 sm:$0xff] }
 0x78f   :  { %v6030_v19 = vadd.f32 %v4224_v51, %v1416_v52  ;;  %v1330_v20 = vpop.f32.mrb[88].mxu1  ;;  %v1436_v21 = vsel %vm231_vm1, %v6026_v8, 0.0  ;;  %v1452_v35 = vmul.f32 %v6026_v8, %v6026_v8 }
 0x790   :  { %v4823_v22 = vpop.f32.mrb[89].mxu1  ;;  %1437 = vadd.xlane.f32.xlu0 %v1436_v21  ;;  %v1407_v23 = vpop.f32.mrb[56].mxu0 }
 0x791   :  { %v1408_v24 = vadd.f32 %v1407_v23, %v1330_v20  ;;  %v1333_v25 = vpop.f32.mrb[90].mxu1  ;;  %v4839_v26 = vpop.f32.mrb[57].mxu0  ;;  %v1439_v45 = vsel %vm231_vm1, %v6030_v19, 0.0  ;;  %v1453_v28 = vmul.f32 %v6030_v19, %v6030_v19  ;;  %v1461_v34 = vsel %vm231_vm1, %v1452_v35, 0.0 }
 0x792   :  { %v4824_v30 = vpop.f32.mrb[91].mxu1  ;;  %1440 = vadd.xlane.f32.xlu1 %v1439_v45  ;;  %v1410_v29 = vpop.f32.mrb[58].mxu0  ;;  %v4226_v26 = vld [vmem:[%s6883_s6 + $0x3] ss:$0 sm:$0xff] }
 0x793   :  { %v1417_v31 = vadd.f32 %v1408_v24, %v5655_v48  ;;  %v4840_v33 = vpop.f32.mrb[59].mxu0  ;;  %v1464_v36 = vsel %vm231_vm1, %v1453_v28, 0.0  ;;  %v5197_v48 = vld [vmem:[%s6881_s4] sm:$0xff]  }
 0x794   :  { %1462 = vadd.xlane.f32.xlu0 %v1461_v34  ;;  %4842 = vmatpush3.bf16.msra.mxu1 %v5197_v48 }
 0x795   :  { %v6042_v5 = vadd.f32 %v4224_v51, %v1417_v31  ;;  %4843 = vmatprep.subr.bf16.mxu1 %v5471_v58 }
 0x796   :  { %1465 = vadd.xlane.f32.xlu1 %v1464_v36 }
 0x797   :  { %v1442_v9 = vsel %vm231_vm1, %v6042_v5, 0.0  ;;  %v1454_v38 = vmul.f32 %v6042_v5, %v6042_v5 }
 0x798   :  { %1443 = vadd.xlane.f32.xlu0 %v1442_v9  ;;  %4844 = vmatpush3.bf16.msra.mxu1 %v5198_v40 }
 0x799   :  { %v1467_v39 = vsel %vm231_vm1, %v1454_v38, 0.0  ;;  %4885 = vmatprep.subr.bf16.mxu1 %v5471_v58 }
 0x79a   :  { %1468 = vadd.xlane.f32.xlu1 %v1467_v39 }
 0x815   :  { %v1432_v41 = vpop.xlane.xlu0 %1431 }
 0x816   :  { %v1445_v42 = vmul.f32 0.03125, %v1432_v41 }
 0x817   :  { %v1435_v43 = vpop.xlane.xlu1 %1434 }
 0x818   :  { %v1446_v44 = vmul.f32 0.03125, %v1435_v43  ;;  %v1475_v47 = vmul.f32 %v1445_v42, %v1445_v42  ;;  %v1485_v16 = vsub.f32 %v6011_v60, %v1445_v42 }
 0x819   :  { %v1457_v46 = vpop.xlane.xlu0 %1456 }
 0x81a   :  { %v1470_v49 = vmul.f32 0.03125, %v1457_v46  ;;  %v1476_v50 = vmul.f32 %v1446_v44, %v1446_v44  ;;  %v1486_v20 = vsub.f32 %v6014_v62, %v1446_v44 }
 0x81b   :  { %v1460_v3 = vpop.xlane.xlu1 %1459 }
 0x81c   :  { %v1480_v53 = vsub.f32 %v1470_v49, %v1475_v47  ;;  %v1471_v51 = vmul.f32 0.03125, %v1460_v3 }
 0x81d   :  { %v1438_v54 = vpop.xlane.xlu0 %1437 }
 0x81e   :  { %v1490_v55 = vadd.f32 1e-06, %v1480_v53  ;;  %v1481_v56 = vsub.f32 %v1471_v51, %v1476_v50  ;;  %v1447_v57 = vmul.f32 0.03125, %v1438_v54  ;;  %v5199_v50 = vld [vmem:[%s6882_s5] sm:$0xff]   ;;  %v5200_v53 = vld [vmem:[%s6882_s5 + $0x8] sm:$0xff]   ;;  %v5201_v51 = vld [vmem:[%s6882_s5 + $0x10] sm:$0xff]  }
 0x81f   :  { %v1441_v59 = vpop.xlane.xlu1 %1440  ;;  %4858 = vmatpush3.bf16.msra.mxu0 %v5199_v50  ;;  %v5202_v54 = vld [vmem:[%s6882_s5 + $0x18] sm:$0xff]  }
 0x820   :  { %5335 = vrsqrt.f32 %v1490_v55  ;;  %v1491_v27 = vadd.f32 1e-06, %v1481_v56  ;;  %v1448_v61 = vmul.f32 0.03125, %v1441_v59  ;;  %v1477_v0 = vmul.f32 %v1447_v57, %v1447_v57  ;;  %4859 = vmatprep.subr.bf16.mxu0 %v5471_v58  ;;  %v5203_v55 = vld [vmem:[%s6882_s5 + $0x20] sm:$0xff]   ;;  %v5204_v56 = vld [vmem:[%s6882_s5 + $0x28] sm:$0xff]   ;;  %v5206_v59 = vld [vmem:[%s6882_s5 + $0x38] sm:$0xff]  }
 0x821   :  { %v1463_v63 = vpop.xlane.xlu0 %1462  ;;  %v1487_v29 = vsub.f32 %v6026_v8, %v1447_v57  ;;  %v5205_v57 = vld [vmem:[%s6882_s5 + $0x30] sm:$0xff]  }
 0x822   :  { %5337 = vrsqrt.f32 %v1491_v27  ;;  %v1472_v2 = vmul.f32 0.03125, %v1463_v63  ;;  %v1478_v6 = vmul.f32 %v1448_v61, %v1448_v61  ;;  %v1488_v33 = vsub.f32 %v6030_v19, %v1448_v61  ;;  %v4227_v27 = vld [vmem:[%s6883_s6 + $0x5] ss:$0 sm:$0xff] }
 0x823   :  { %v1466_v4 = vpop.xlane.xlu1 %1465  ;;  %4860 = vmatpush3.bf16.msra.mxu0 %v5200_v53 }
 0x824   :  { %v1482_v7 = vsub.f32 %v1472_v2, %v1477_v0  ;;  %v1473_v10 = vmul.f32 0.03125, %v1466_v4  ;;  %4861 = vmatprep.subr.bf16.mxu0 %v5471_v58 }
 0x825   :  { %v1444_v11 = vpop.xlane.xlu0 %1443 }
 0x826   :  { %v1492_v37 = vadd.f32 1e-06, %v1482_v7  ;;  %v1483_v32 = vsub.f32 %v1473_v10, %v1478_v6  ;;  %v1449_v12 = vmul.f32 0.03125, %v1444_v11 }
 0x827   :  { %v1469_v13 = vpop.xlane.xlu1 %1468  ;;  %4862 = vmatpush3.bf16.msra.mxu0 %v5201_v51 }
 0x828   :  { %5339 = vrsqrt.f32 %v1492_v37  ;;  %v1493_v14 = vadd.f32 1e-06, %v1483_v32  ;;  %v1479_v15 = vmul.f32 %v1449_v12, %v1449_v12  ;;  %v1474_v17 = vmul.f32 0.03125, %v1469_v13  ;;  %4863 = vmatprep.subr.bf16.mxu0 %v5471_v58 }
 0x829   :  { %v1489_v40 = vsub.f32 %v6042_v5, %v1449_v12 }
 0x82a   :  { %v5336_v52 = vpop.eup %5335  ;;  %5341 = vrsqrt.f32 %v1493_v14  ;;  %v1484_v35 = vsub.f32 %v1474_v17, %v1479_v15 }
 0x82b   :  { %v1500_v21 = vmul.f32 %v5336_v52, %v1485_v16  ;;  %4864 = vmatpush3.bf16.msra.mxu0 %v5202_v54 }
 0x82c   :  { %v5338_v22 = vpop.eup %5337  ;;  %v1494_v25 = vadd.f32 1e-06, %v1484_v35  ;;  %4865 = vmatprep.subr.bf16.mxu0 %v5471_v58 }
 0x82d   :  { %v1509_v23 = vmul.f32 %v4225_v18, %v1500_v21  ;;  %v1501_v24 = vmul.f32 %v5338_v22, %v1486_v20 }
 0x82e   :  { %5343 = vrsqrt.f32 %v1494_v25 }
 0x82f   :  { %v1510_v45 = vmul.f32 %v4225_v18, %v1501_v24  ;;  %v1518_v28 = vadd.f32 %v4226_v26, %v1509_v23  ;;  %4866 = vmatpush3.bf16.msra.mxu0 %v5203_v55 }
 0x830   :  { %4867 = vmatprep.subr.bf16.mxu0 %v5471_v58 }
 0x831   :  { %v1519_v30 = vadd.f32 %v4226_v26, %v1510_v45 }
 0x832   :  { %v5340_v31 = vpop.eup %5339 }
 0x833   :  { %v1523_v34 = vpack.c.bf16 %v1519_v30, %v1518_v28  ;;  %v1502_v36 = vmul.f32 %v5340_v31, %v1487_v29  ;;  %4868 = vmatpush3.bf16.msra.mxu0 %v5204_v56 }
 0x834   :  { %v5342_v9 = vpop.eup %5341  ;;  %4869 = vmatprep.subr.bf16.mxu0 %v5471_v58 }
 0x835   :  { %4846 = vmatmul.mubr.msk.bf16.vlgmr.msra.gmra.mrb[92].mxu1 %vm231_vm1, %v1523_v34  ;;  %v1503_v38 = vmul.f32 %v5342_v9, %v1488_v33  ;;  %v1511_v39 = vmul.f32 %v4225_v18, %v1502_v36 }
 0x836   :  { %4849 = vmatprep.mubr.msk.bf16.mxu1 %vm5472_vm2, %v5471_v58 }
 0x837   :  { %v1512_v48 = vmul.f32 %v4225_v18, %v1503_v38  ;;  %v1520_v42 = vadd.f32 %v4226_v26, %v1511_v39  ;;  %4870 = vmatpush3.bf16.msra.mxu0 %v5205_v57 }
 0x838   :  { %v5344_v41 = vpop.eup %5343  ;;  %4871 = vmatprep.subr.bf16.mxu0 %v5471_v58 }
 0x839   :  { %v1521_v43 = vadd.f32 %v4226_v26, %v1512_v48  ;;  %v1504_v44 = vmul.f32 %v5344_v41, %v1489_v40 }
 0x83b   :  { %v1524_v46 = vpack.c.bf16 %v1521_v43, %v1520_v42  ;;  %v1513_v47 = vmul.f32 %v4225_v18, %v1504_v44  ;;  %4872 = vmatpush3.bf16.msra.mxu0 %v5206_v59 }
 0x83c   :  { %4901 = vmatprep.subr.bf16.mxu0 %v5471_v58 }
 0x83d   :  { %4850 = vmatmul.mubr.msk.bf16.gmra.mrb[96].mxu1 %vm231_vm1, %v1524_v46  ;;  %v1522_v49 = vadd.f32 %v4226_v26, %v1513_v47 }
 0x83e   :  { %4853 = vmatprep.mubr.msk.bf16.mxu1 %vm5472_vm2, %v5471_v58 }
 0x83f   :  { %v1525_v3 = vpack.c.bf16 %v1522_v49, %v1522_v49 }
 0x845   :  { %4854 = vmatmul.mubr.msk.bf16.gmra.mrb[100].mxu1 %vm231_vm1, %v1525_v3 }
 0x846   :  { %4889 = vmatprep.mubr.msk.bf16.mxu1 %vm5472_vm2, %v5471_v58 }
 0x908   :  { %v1590_v61 = vpop.f32.mrb[92].mxu1 }
 0x909   :  { %v1591_v63 = vadd.f32 %v4227_v27, %v1590_v61  ;;  %v4847_v0 = vpop.f32.mrb[93].mxu1 }
 0x90a   :  { %v1593_v2 = vpop.f32.mrb[94].mxu1 }
 0x90b   :  { %v1612_v4 = vmul.f32 %v1591_v63, %v1591_v63  ;;  %v1594_v6 = vadd.f32 %v4227_v27, %v1593_v2  ;;  %v4848_v7 = vpop.f32.mrb[95].mxu1 }
 0x90d   :  { %v1617_v10 = vmul.f32 %v1612_v4, %v1591_v63  ;;  %v1613_v11 = vmul.f32 %v1594_v6, %v1594_v6 }
 0x90f   :  { %v1622_v37 = vmul.f32 0.044715, %v1617_v10  ;;  %v1618_v32 = vmul.f32 %v1613_v11, %v1594_v6 }
 0x910   :  { %v1598_v12 = vpop.f32.mrb[96].mxu1 }
 0x911   :  { %v1627_v13 = vadd.f32 %v1622_v37, %v1591_v63  ;;  %v1623_v14 = vmul.f32 0.044715, %v1618_v32  ;;  %v1599_v15 = vadd.f32 %v4227_v27, %v1598_v12  ;;  %v4851_v16 = vpop.f32.mrb[97].mxu1  ;;  %v4241_v37 = vld [vmem:[%s6883_s6 + $0x6] ss:$0 sm:$0xff] }
 0x912   :  { %v1601_v17 = vpop.f32.mrb[98].mxu1 }
 0x913   :  { %v1632_v52 = vmul.f32 0.7978846, %v1627_v13  ;;  %v1628_v18 = vadd.f32 %v1623_v14, %v1594_v6  ;;  %v1614_v20 = vmul.f32 %v1599_v15, %v1599_v15  ;;  %v1602_v21 = vadd.f32 %v4227_v27, %v1601_v17  ;;  %v4852_v35 = vpop.f32.mrb[99].mxu1 }
 0x915   :  { %5345 = vtanh.f32 %v1632_v52  ;;  %v1633_v22 = vmul.f32 0.7978846, %v1628_v18  ;;  %v1619_v23 = vmul.f32 %v1614_v20, %v1599_v15  ;;  %v1615_v24 = vmul.f32 %v1602_v21, %v1602_v21 }
 0x917   :  { %5347 = vtanh.f32 %v1633_v22  ;;  %v1624_v25 = vmul.f32 0.044715, %v1619_v23  ;;  %v1620_v26 = vmul.f32 %v1615_v24, %v1602_v21 }
 0x918   :  { %v1606_v45 = vpop.f32.mrb[100].mxu1 }
 0x919   :  { %v1629_v28 = vadd.f32 %v1624_v25, %v1599_v15  ;;  %v1625_v30 = vmul.f32 0.044715, %v1620_v26  ;;  %v1607_v29 = vadd.f32 %v4227_v27, %v1606_v45  ;;  %v4855_v31 = vpop.f32.mrb[101].mxu1 }
 0x91a   :  { %v1609_v33 = vpop.f32.mrb[102].mxu1 }
 0x91b   :  { %v1634_v34 = vmul.f32 0.7978846, %v1629_v28  ;;  %v1630_v36 = vadd.f32 %v1625_v30, %v1602_v21  ;;  %v1616_v9 = vmul.f32 %v1607_v29, %v1607_v29  ;;  %v4856_v38 = vpop.f32.mrb[103].mxu1 }
 0x91d   :  { %5349 = vtanh.f32 %v1634_v34  ;;  %v1635_v39 = vmul.f32 0.7978846, %v1630_v36  ;;  %v1621_v48 = vmul.f32 %v1616_v9, %v1607_v29 }
 0x91f   :  { %v5346_v40 = vpop.eup %5345  ;;  %5351 = vtanh.f32 %v1635_v39  ;;  %v1626_v41 = vmul.f32 0.044715, %v1621_v48 }
 0x920   :  { %v1642_v42 = vadd.f32 1.0, %v5346_v40 }
 0x921   :  { %v5348_v43 = vpop.eup %5347  ;;  %v1631_v44 = vadd.f32 %v1626_v41, %v1607_v29 }
 0x922   :  { %v1647_v46 = vmul.f32 0.5, %v1642_v42  ;;  %v1643_v47 = vadd.f32 1.0, %v5348_v43  ;;  %v5207_v42 = vld [vmem:[%s6880_s3 + $0x90] sm:$0xff]   ;;  %v5208_v43 = vld [vmem:[%s6880_s3 + $0x80] sm:$0xff]  }
 0x923   :  { %v1636_v49 = vmul.f32 0.7978846, %v1631_v44  ;;  %4886 = vmatpush3.bf16.msra.mxu1 %v5208_v43  ;;  %v5209_v44 = vld [vmem:[%s6880_s3 + $0x98] sm:$0xff]  }
 0x924   :  { %v1648_v3 = vmul.f32 0.5, %v1643_v47  ;;  %v1652_v50 = vmul.f32 %v1647_v46, %v1591_v63  ;;  %4887 = vmatprep.subr.bf16.mxu1 %v5471_v58  ;;  %v5210_v46 = vld [vmem:[%s6880_s3 + $0x88] sm:$0xff]  }
 0x925   :  { %5353 = vtanh.f32 %v1636_v49 }
 0x926   :  { %v1653_v53 = vmul.f32 %v1648_v3, %v1594_v6 }
 0x927   :  { %v5350_v51 = vpop.eup %5349  ;;  %4888 = vmatpush3.bf16.msra.mxu1 %v5210_v46 }
 0x928   :  { %v1657_v54 = vpack.c.bf16 %v1653_v53, %v1652_v50  ;;  %v1644_v55 = vadd.f32 1.0, %v5350_v51  ;;  %4917 = vmatprep.subr.bf16.mxu1 %v5471_v58 }
 0x929   :  { %v5352_v56 = vpop.eup %5351 }
 0x92a   :  { %4874 = vmatmul.mubr.bf16.vlgmr.msra.gmra.mrb[60].mxu0 %v1657_v54  ;;  %v1645_v57 = vadd.f32 1.0, %v5352_v56  ;;  %v1649_v59 = vmul.f32 0.5, %v1644_v55 }
 0x92b   :  { %4877 = vmatprep.mubr.msk.bf16.mxu0 %vm5472_vm2, %v5471_v58  ;;  %4902 = vmatpush3.bf16.msra.mxu0 %v5207_v42 }
 0x92c   :  { %v1650_v27 = vmul.f32 0.5, %v1645_v57  ;;  %v1654_v61 = vmul.f32 %v1649_v59, %v1599_v15  ;;  %4903 = vmatprep.subr.bf16.mxu0 %v5471_v58 }
 0x92e   :  { %v1655_v0 = vmul.f32 %v1650_v27, %v1602_v21 }
 0x92f   :  { %v5354_v2 = vpop.eup %5353  ;;  %4904 = vmatpush3.bf16.msra.mxu0 %v5209_v44 }
 0x930   :  { %v1658_v4 = vpack.c.bf16 %v1655_v0, %v1654_v61  ;;  %v1646_v7 = vadd.f32 1.0, %v5354_v2  ;;  %4933 = vmatprep.subr.bf16.mxu0 %v5471_v58 }
 0x932   :  { %4878 = vmatmul.mubr.bf16.gmra.mrb[64].mxu0 %v1658_v4  ;;  %v1651_v10 = vmul.f32 0.5, %v1646_v7 }
 0x933   :  { %4881 = vmatprep.mubr.msk.bf16.mxu0 %vm5472_vm2, %v5471_v58 }
 0x934   :  { %v1656_v63 = vmul.f32 %v1651_v10, %v1607_v29 }
 0x936   :  { %v1659_v6 = vpack.c.bf16 %v1656_v63, %v1656_v63 }
 0x93a   :  { %4882 = vmatmul.mubr.bf16.gmra.mrb[68].mxu0 %v1659_v6 }
 0x93b   :  { %4905 = vmatprep.mubr.msk.bf16.mxu0 %vm5472_vm2, %v5471_v58 }
 0x9fd   :  { %v1758_v11 = vpop.f32.mrb[60].mxu0 }
 0x9fe   :  { %v1780_v32 = vadd.f32 %v1758_v11, %v6011_v60  ;;  %v4875_v12 = vpop.f32.mrb[61].mxu0 }
 0x9ff   :  { %v1761_v13 = vpop.f32.mrb[62].mxu0 }
 0xa00   :  { %v6123_v14 = vadd.f32 %v4241_v37, %v1780_v32  ;;  %v1781_v15 = vadd.f32 %v1761_v13, %v6014_v62  ;;  %v4876_v16 = vpop.f32.mrb[63].mxu0 }
 0xa02   :  { %v6126_v17 = vadd.f32 %v4241_v37, %v1781_v15  ;;  %v1797_v52 = vsel %vm231_vm1, %v6123_v14, 0.0  ;;  %v1817_v18 = vmul.f32 %v6123_v14, %v6123_v14 }
 0xa03   :  { %1798 = vadd.xlane.f32.xlu0 %v1797_v52 }
 0xa04   :  { %v1800_v20 = vsel %vm231_vm1, %v6126_v17, 0.0  ;;  %v1818_v60 = vmul.f32 %v6126_v17, %v6126_v17  ;;  %v1822_v22 = vsel %vm231_vm1, %v1817_v18, 0.0 }
 0xa05   :  { %1801 = vadd.xlane.f32.xlu1 %v1800_v20  ;;  %v1766_v21 = vpop.f32.mrb[64].mxu0 }
 0xa06   :  { %v1782_v62 = vadd.f32 %v1766_v21, %v6026_v8  ;;  %v4879_v35 = vpop.f32.mrb[65].mxu0  ;;  %v1825_v45 = vsel %vm231_vm1, %v1818_v60, 0.0 }
 0xa07   :  { %1823 = vadd.xlane.f32.xlu0 %v1822_v22  ;;  %v1769_v23 = vpop.f32.mrb[66].mxu0 }
 0xa08   :  { %v6138_v24 = vadd.f32 %v4241_v37, %v1782_v62  ;;  %v1783_v25 = vadd.f32 %v1769_v23, %v6030_v19  ;;  %v4880_v26 = vpop.f32.mrb[67].mxu0  ;;  %v4242_v23 = vld [vmem:[%s6883_s6 + $0x10] ss:$0 sm:$0xff] }
 0xa09   :  { %1826 = vadd.xlane.f32.xlu1 %v1825_v45 }
 0xa0a   :  { %v6142_v28 = vadd.f32 %v4241_v37, %v1783_v25  ;;  %v1803_v30 = vsel %vm231_vm1, %v6138_v24, 0.0  ;;  %v1819_v8 = vmul.f32 %v6138_v24, %v6138_v24 }
 0xa0b   :  { %1804 = vadd.xlane.f32.xlu0 %v1803_v30 }
 0xa0c   :  { %v1806_v29 = vsel %vm231_vm1, %v6142_v28, 0.0  ;;  %v1820_v31 = vmul.f32 %v6142_v28, %v6142_v28  ;;  %v1828_v36 = vsel %vm231_vm1, %v1819_v8, 0.0 }
 0xa0d   :  { %1807 = vadd.xlane.f32.xlu1 %v1806_v29  ;;  %v1774_v19 = vpop.f32.mrb[68].mxu0 }
 0xa0e   :  { %v1784_v33 = vadd.f32 %v1774_v19, %v6042_v5  ;;  %v4883_v34 = vpop.f32.mrb[69].mxu0  ;;  %v1831_v48 = vsel %vm231_vm1, %v1820_v31, 0.0  ;;  %v4243_v19 = vld [vmem:[%s6883_s6 + $0x11] ss:$0 sm:$0xff] }
 0xa0f   :  { %1829 = vadd.xlane.f32.xlu0 %v1828_v36  ;;  %v1777_v9 = vpop.f32.mrb[70].mxu0 }
 0xa10   :  { %v6154_v38 = vadd.f32 %v4241_v37, %v1784_v33  ;;  %v4884_v39 = vpop.f32.mrb[71].mxu0 }
 0xa11   :  { %1832 = vadd.xlane.f32.xlu1 %v1831_v48 }
 0xa12   :  { %v1809_v40 = vsel %vm231_vm1, %v6154_v38, 0.0  ;;  %v1821_v41 = vmul.f32 %v6154_v38, %v6154_v38 }
 0xa13   :  { %1810 = vadd.xlane.f32.xlu0 %v1809_v40 }
 0xa14   :  { %v1834_v5 = vsel %vm231_vm1, %v1821_v41, 0.0 }
 0xa15   :  { %1835 = vadd.xlane.f32.xlu1 %v1834_v5  ;;  %v5211_v5 = vld [vmem:[%s6880_s3 + $0xa0] sm:$0xff]  }
 0xa90   :  { %v1799_v47 = vpop.xlane.xlu0 %1798 }
 0xa91   :  { %v1812_v49 = vmul.f32 0.03125, %v1799_v47  ;;  %v5212_v47 = vld [vmem:[%s6880_s3 + $0xa8] sm:$0xff]  }
 0xa92   :  { %v1802_v3 = vpop.xlane.xlu1 %1801 }
 0xa93   :  { %v1813_v50 = vmul.f32 0.03125, %v1802_v3  ;;  %v1842_v51 = vmul.f32 %v1812_v49, %v1812_v49  ;;  %v1852_v62 = vsub.f32 %v6123_v14, %v1812_v49 }
 0xa94   :  { %v1824_v53 = vpop.xlane.xlu0 %1823 }
 0xa95   :  { %v1837_v54 = vmul.f32 0.03125, %v1824_v53  ;;  %v1843_v56 = vmul.f32 %v1813_v50, %v1813_v50  ;;  %v1853_v25 = vsub.f32 %v6126_v17, %v1813_v50 }
 0xa96   :  { %v1827_v55 = vpop.xlane.xlu1 %1826 }
 0xa97   :  { %v1847_v57 = vsub.f32 %v1837_v54, %v1842_v51  ;;  %v1838_v59 = vmul.f32 0.03125, %v1827_v55 }
 0xa98   :  { %v1805_v27 = vpop.xlane.xlu0 %1804 }
 0xa99   :  { %v1857_v61 = vadd.f32 1e-06, %v1847_v57  ;;  %v1848_v0 = vsub.f32 %v1838_v59, %v1843_v56  ;;  %v1814_v2 = vmul.f32 0.03125, %v1805_v27  ;;  %v5213_v59 = vld [vmem:[%s6880_s3 + $0xc0] sm:$0xff]   ;;  %v5214_v27 = vld [vmem:[%s6880_s3 + $0xc8] sm:$0xff]  }
 0xa9a   :  { %v1808_v4 = vpop.xlane.xlu1 %1807 }
 0xa9b   :  { %5355 = vrsqrt.f32 %v1857_v61  ;;  %v1858_v7 = vadd.f32 1e-06, %v1848_v0  ;;  %v1815_v10 = vmul.f32 0.03125, %v1808_v4  ;;  %v1844_v6 = vmul.f32 %v1814_v2, %v1814_v2  ;;  %v5215_v61 = vld [vmem:[%s6880_s3 + $0xe0] sm:$0xff]   ;;  %v5216_v0 = vld [vmem:[%s6880_s3 + $0xe8] sm:$0xff]  }
 0xa9c   :  { %v1830_v63 = vpop.xlane.xlu0 %1829  ;;  %v1854_v9 = vsub.f32 %v6138_v24, %v1814_v2  ;;  %v6282_v2 = vld [vmem:[%s6883_s6 + $0x17] ss:$0 sm:$0xff] }
 0xa9d   :  { %5357 = vrsqrt.f32 %v1858_v7  ;;  %v1839_v11 = vmul.f32 0.03125, %v1830_v63  ;;  %v1845_v32 = vmul.f32 %v1815_v10, %v1815_v10  ;;  %v1855_v48 = vsub.f32 %v6142_v28, %v1815_v10  ;;  %v4258_v7 = vld [vmem:[%s6883_s6 + $0x18] ss:$0 sm:$0xff] }
 0xa9e   :  { %v1833_v37 = vpop.xlane.xlu1 %1832 }
 0xa9f   :  { %v1849_v12 = vsub.f32 %v1839_v11, %v1844_v6  ;;  %v1840_v13 = vmul.f32 0.03125, %v1833_v37 }
 0xaa0   :  { %v1811_v15 = vpop.xlane.xlu0 %1810 }
 0xaa1   :  { %v1859_v16 = vadd.f32 1e-06, %v1849_v12  ;;  %v1850_v52 = vsub.f32 %v1840_v13, %v1845_v32  ;;  %v1816_v18 = vmul.f32 0.03125, %v1811_v15 }
 0xaa2   :  { %v1836_v20 = vpop.xlane.xlu1 %1835 }
 0xaa3   :  { %5359 = vrsqrt.f32 %v1859_v16  ;;  %v1860_v60 = vadd.f32 1e-06, %v1850_v52  ;;  %v1846_v21 = vmul.f32 %v1816_v18, %v1816_v18  ;;  %v1841_v35 = vmul.f32 0.03125, %v1836_v20 }
 0xaa4   :  { %v1856_v49 = vsub.f32 %v6154_v38, %v1816_v18 }
 0xaa5   :  { %v5356_v22 = vpop.eup %5355  ;;  %5361 = vrsqrt.f32 %v1860_v60  ;;  %v1851_v45 = vsub.f32 %v1841_v35, %v1846_v21 }
 0xaa6   :  { %v1867_v26 = vmul.f32 %v5356_v22, %v1852_v62 }
 0xaa7   :  { %v5358_v30 = vpop.eup %5357  ;;  %v1861_v31 = vadd.f32 1e-06, %v1851_v45 }
 0xaa8   :  { %v1876_v8 = vmul.f32 %v4242_v23, %v1867_v26  ;;  %v1868_v29 = vmul.f32 %v5358_v30, %v1853_v25 }
 0xaa9   :  { %5363 = vrsqrt.f32 %v1861_v31 }
 0xaaa   :  { %v1877_v33 = vmul.f32 %v4242_v23, %v1868_v29  ;;  %v1885_v34 = vadd.f32 %v4243_v19, %v1876_v8 }
 0xaac   :  { %v1886_v36 = vadd.f32 %v4243_v19, %v1877_v33 }
 0xaad   :  { %v5360_v39 = vpop.eup %5359 }
 0xaae   :  { %v1869_v40 = vmul.f32 %v5360_v39, %v1854_v9  ;;  %v6188_v41 = vpack.c.bf16 %v1886_v36, %v1885_v34 }
 0xaaf   :  { %v5362_v42 = vpop.eup %5361 }
 0xab0   :  { %v1878_v43 = vmul.f32 %v4242_v23, %v1869_v40  ;;  %v1870_v44 = vmul.f32 %v5362_v42, %v1855_v48  ;;  %4890 = vmatmul.mubr.msk.bf16.vlgmr.msra.gmra.mrb[104].mxu1 %vm231_vm1, %v6188_v41  ;;  %4906 = vmatmul.mubr.msk.bf16.vlgmr.msra.gmra.mrb[72].mxu0 %vm231_vm1, %v6188_v41 }
 0xab1   :  { %4893 = vmatprep.mubr.msk.bf16.mxu1 %vm5472_vm2, %v5471_v58  ;;  %4909 = vmatprep.mubr.msk.bf16.mxu0 %vm5472_vm2, %v5471_v58 }
 0xab2   :  { %v1879_v46 = vmul.f32 %v4242_v23, %v1870_v44  ;;  %4918 = vmatpush3.bf16.msra.mxu1 %v5211_v5  ;;  %v1887_v50 = vadd.f32 %v4243_v19, %v1878_v43 }
 0xab3   :  { %4919 = vmatprep.subr.bf16.mxu1 %v5471_v58  ;;  %v5364_v3 = vpop.eup %5363 }
 0xab4   :  { %v1888_v53 = vadd.f32 %v4243_v19, %v1879_v46  ;;  %v1871_v51 = vmul.f32 %v5364_v3, %v1856_v49  ;;  %v4268_v49 = vld [vmem:[%s6883_s6 + $0x19] ss:$0 sm:$0xff] }
 0xab6   :  { %v6206_v54 = vpack.c.bf16 %v1888_v53, %v1887_v50  ;;  %4920 = vmatpush3.bf16.msra.mxu1 %v5212_v47  ;;  %v1880_v55 = vmul.f32 %v4242_v23, %v1871_v51 }
 0xab7   :  { %4951 = vmatprep.subr.bf16.mxu1 %v5471_v58 }
 0xab8   :  { %4894 = vmatmul.mubr.msk.bf16.gmra.mrb[108].mxu1 %vm231_vm1, %v6206_v54  ;;  %4910 = vmatmul.mubr.msk.bf16.gmra.mrb[76].mxu0 %vm231_vm1, %v6206_v54  ;;  %v1889_v56 = vadd.f32 %v4243_v19, %v1880_v55 }
 0xab9   :  { %4897 = vmatprep.mubr.msk.bf16.mxu1 %vm5472_vm2, %v5471_v58  ;;  %4913 = vmatprep.mubr.msk.bf16.mxu0 %vm5472_vm2, %v5471_v58 }
 0xaba   :  { %v6217_v57 = vpack.c.bf16 %v1889_v56, %v1889_v56 }
 0xac0   :  { %4898 = vmatmul.mubr.msk.bf16.gmra.mrb[112].mxu1 %vm231_vm1, %v6217_v57  ;;  %4914 = vmatmul.mubr.msk.bf16.gmra.mrb[80].mxu0 %vm231_vm1, %v6217_v57 }
 0xac1   :  { %4921 = vmatprep.mubr.msk.bf16.mxu1 %vm5472_vm2, %v5471_v58  ;;  %4939 = vmatprep.mubr.msk.bf16.mxu0 %vm5472_vm2, %v5471_v58 }
 0xac8   :  { %4922 = vmatmul.mubr.msk.bf16.vlgmr.msra.gmra.mrb[116].mxu1 %vm231_vm1, %v6188_v41 }
 0xac9   :  { %4925 = vmatprep.mubr.msk.bf16.mxu1 %vm5472_vm2, %v5471_v58  ;;  %4952 = vmatpush3.bf16.msra.mxu1 %v5213_v59 }
 0xaca   :  { %4953 = vmatprep.subr.bf16.mxu1 %v5471_v58 }
 0xacd   :  { %4954 = vmatpush3.bf16.msra.mxu1 %v5214_v27  ;;  %v5217_v27 = vld [vmem:[%s6880_s3 + $0xd0] sm:$0xff]  }
 0xace   :  { %4983 = vmatprep.subr.bf16.mxu1 %v5471_v58 }
 0xad0   :  { %4926 = vmatmul.mubr.msk.bf16.gmra.mrb[120].mxu1 %vm231_vm1, %v6206_v54 }
 0xad1   :  { %4929 = vmatprep.mubr.msk.bf16.mxu1 %vm5472_vm2, %v5471_v58 }
 0xad8   :  { %4930 = vmatmul.mubr.msk.bf16.gmra.mrb[124].mxu1 %vm231_vm1, %v6217_v57 }
 0xad9   :  { %4955 = vmatprep.mubr.msk.bf16.mxu1 %vm5472_vm2, %v5471_v58 }
 0xae0   :  { %4956 = vmatmul.mubr.msk.bf16.vlgmr.msra.gmra.mrb[128].mxu1 %vm231_vm1, %v6188_v41 }
 0xae1   :  { %4959 = vmatprep.mubr.msk.bf16.mxu1 %vm5472_vm2, %v5471_v58  ;;  %4984 = vmatpush3.bf16.msra.mxu1 %v5215_v61 }
 0xae2   :  { %4985 = vmatprep.subr.bf16.mxu1 %v5471_v58 }
 0xae5   :  { %4986 = vmatpush3.bf16.msra.mxu1 %v5216_v0 }
 0xae6   :  { %5017 = vmatprep.subr.bf16.mxu1 %v5471_v58 }
 0xae8   :  { %4960 = vmatmul.mubr.msk.bf16.gmra.mrb[132].mxu1 %vm231_vm1, %v6206_v54 }
 0xae9   :  { %4963 = vmatprep.mubr.msk.bf16.mxu1 %vm5472_vm2, %v5471_v58 }
 0xaf0   :  { %4964 = vmatmul.mubr.msk.bf16.gmra.mrb[136].mxu1 %vm231_vm1, %v6217_v57 }
 0xaf1   :  { %4987 = vmatprep.mubr.msk.bf16.mxu1 %vm5472_vm2, %v5471_v58 }
 0xaf8   :  { %4988 = vmatmul.mubr.msk.bf16.vlgmr.msra.gmra.mrb[140].mxu1 %vm231_vm1, %v6188_v41 }
 0xaf9   :  { %4991 = vmatprep.mubr.msk.bf16.mxu1 %vm5472_vm2, %v5471_v58 }
 0xb00   :  { %4992 = vmatmul.mubr.msk.bf16.gmra.mrb[144].mxu1 %vm231_vm1, %v6206_v54 }
 0xb01   :  { %4995 = vmatprep.mubr.msk.bf16.mxu1 %vm5472_vm2, %v5471_v58 }
 0xb08   :  { %4996 = vmatmul.mubr.msk.bf16.gmra.mrb[148].mxu1 %vm231_vm1, %v6217_v57 }
 0xb09   :  { %5023 = vmatprep.mubr.msk.bf16.mxu1 %vm5472_vm2, %v5471_v58 }
 0xb83   :  { %v1958_v4 = vpop.f32.mrb[104].mxu1  ;;  %v2036_v10 = vpop.f32.mrb[72].mxu0 }
 0xb84   :  { %v4891_v63 = vpop.f32.mrb[105].mxu1  ;;  %v4907_v6 = vpop.f32.mrb[73].mxu0  ;;  %v1959_v32 = vadd.f32 %v6282_v2, %v1958_v4  ;;  %v2037_v12 = vadd.f32 %v4258_v7, %v2036_v10  ;;  %v5218_v4 = vld [vmem:[%s6880_s3 + $0xd8] sm:$0xff]  }
 0xb85   :  { %v1961_v11 = vpop.f32.mrb[106].mxu1  ;;  %v2039_v37 = vpop.f32.mrb[74].mxu0 }
 0xb86   :  { %v1962_v13 = vadd.f32 %v6282_v2, %v1961_v11  ;;  %v2040_v15 = vadd.f32 %v4258_v7, %v2039_v37  ;;  %v4892_v16 = vpop.f32.mrb[107].mxu1  ;;  %v4908_v52 = vpop.f32.mrb[75].mxu0 }
 0xb88   :  { %v2136_v18 = vpack.c.bf16 %v1962_v13, %v1959_v32  ;;  %v2139_v20 = vpack.c.bf16 %v2040_v15, %v2037_v12 }
 0xb8a   :  { %v2152_v60 = vsel %vm231_vm1, %v2139_v20, 0 }
 0xb8b   :  { %v1966_v21 = vpop.f32.mrb[108].mxu1  ;;  %v2044_v62 = vpop.f32.mrb[76].mxu0  ;;  %4934 = vmatpush3.bf16.xpose.msra.mxu0 %v2152_v60  ;;  %v6323_v60 = vld [vmem:[%s6883_s6 + $0x1a] ss:$0 sm:$0xff] }
 0xb8c   :  { %v4895_v35 = vpop.f32.mrb[109].mxu1  ;;  %v4911_v22 = vpop.f32.mrb[77].mxu0  ;;  %4935 = vmatprep.subr.bf16.mxu0 %v5471_v58  ;;  %v1967_v26 = vadd.f32 %v6282_v2, %v1966_v21  ;;  %v2045_v45 = vadd.f32 %v4258_v7, %v2044_v62 }
 0xb8d   :  { %v1969_v23 = vpop.f32.mrb[110].mxu1  ;;  %v2047_v25 = vpop.f32.mrb[78].mxu0 }
 0xb8e   :  { %v1970_v30 = vadd.f32 %v6282_v2, %v1969_v23  ;;  %v2048_v8 = vadd.f32 %v4258_v7, %v2047_v25  ;;  %v4896_v29 = vpop.f32.mrb[111].mxu1  ;;  %v4912_v31 = vpop.f32.mrb[79].mxu0 }
 0xb90   :  { %v2137_v19 = vpack.c.bf16 %v1970_v30, %v1967_v26  ;;  %v2140_v33 = vpack.c.bf16 %v2048_v8, %v2045_v45 }
 0xb92   :  { %v2155_v34 = vsel %vm231_vm1, %v2140_v33, 0 }
 0xb93   :  { %v1974_v36 = vpop.f32.mrb[112].mxu1  ;;  %v2052_v9 = vpop.f32.mrb[80].mxu0  ;;  %4936 = vmatpush3.bf16.xpose.msra.mxu0 %v2155_v34 }
 0xb94   :  { %v2053_v39 = vadd.f32 %v4258_v7, %v2052_v9  ;;  %v4899_v48 = vpop.f32.mrb[113].mxu1  ;;  %v4915_v40 = vpop.f32.mrb[81].mxu0  ;;  %4937 = vmatprep.subr.bf16.mxu0 %v5471_v58  ;;  %v1975_v32 = vadd.f32 %v6282_v2, %v1974_v36  ;;  %v6358_v9 = vld [vmem:[%s6883_s6 + $0x1c] ss:$0 sm:$0xff] }
 0xb95   :  { %v1977_v5 = vpop.f32.mrb[114].mxu1  ;;  %v2055_v42 = vpop.f32.mrb[82].mxu0 }
 0xb96   :  { %v2141_v43 = vpack.c.bf16 %v2053_v39, %v2053_v39  ;;  %v4900_v44 = vpop.f32.mrb[115].mxu1  ;;  %v4916_v46 = vpop.f32.mrb[83].mxu0 }
 0xb98   :  { %v2158_v47 = vsel %vm231_vm1, %v2141_v43, 0 }
 0xb9b   :  { %v2114_v3 = vpop.f32.mrb[116].mxu1  ;;  %4938 = vmatpush3.bf16.xpose.msra.mxu0 %v2158_v47 }
 0xb9c   :  { %v4923_v50 = vpop.f32.mrb[117].mxu1  ;;  %4967 = vmatprep.subr.bf16.mxu0 %v5471_v58  ;;  %v2115_v51 = vadd.f32 %v4268_v49, %v2114_v3 }
 0xb9d   :  { %v2117_v53 = vpop.f32.mrb[118].mxu1 }
 0xb9e   :  { %v2118_v55 = vadd.f32 %v4268_v49, %v2117_v53  ;;  %v4924_v56 = vpop.f32.mrb[119].mxu1 }
 0xba0   :  { %v2216_v59 = vpack.c.bf16 %v2118_v55, %v2115_v51 }
 0xba2   :  { %4940 = vmatmul.mubr.msk.bf16.vlgmr.msra.gmra.mrb[84].mxu0 %vm231_vm1, %v2136_v18  ;;  %5018 = vmatpush3.bf16.msra.mxu1 %v2216_v59  ;;  %v2138_v18 = vpack.c.bf16 %v1975_v32, %v1975_v32 }
 0xba3   :  { %v2122_v61 = vpop.f32.mrb[120].mxu1  ;;  %4943 = vmatprep.mubr.msk.bf16.mxu0 %vm5472_vm2, %v5471_v58  ;;  %5019 = vmatprep.subr.bf16.mxu1 %v5471_v58 }
 0xba4   :  { %v4927_v0 = vpop.f32.mrb[121].mxu1  ;;  %4968 = vmatpush3.bf16.msra.mxu0 %v5217_v27  ;;  %v2123_v10 = vadd.f32 %v4268_v49, %v2122_v61 }
 0xba5   :  { %v2125_v7 = vpop.f32.mrb[122].mxu1  ;;  %4969 = vmatprep.subr.bf16.mxu0 %v5471_v58 }
 0xba6   :  { %v2126_v63 = vadd.f32 %v4268_v49, %v2125_v7  ;;  %v4928_v6 = vpop.f32.mrb[123].mxu1 }
 0xba8   :  { %v2217_v11 = vpack.c.bf16 %v2126_v63, %v2123_v10  ;;  %4970 = vmatpush3.bf16.msra.mxu0 %v5218_v4 }
 0xba9   :  { %4999 = vmatprep.subr.bf16.mxu0 %v5471_v58 }
 0xbaa   :  { %4944 = vmatmul.mubr.msk.bf16.gmra.mrb[88].mxu0 %vm231_vm1, %v2137_v19  ;;  %5020 = vmatpush3.bf16.msra.mxu1 %v2217_v11  ;;  %v5436_v11 = vld [vmem:[%s6888_s11 + $0x20] sm:$0xff] }
 0xbab   :  { %v2130_v37 = vpop.f32.mrb[124].mxu1  ;;  %5021 = vmatprep.subr.bf16.mxu1 %v5471_v58  ;;  %4947 = vmatprep.mubr.msk.bf16.mxu0 %vm5472_vm2, %v5471_v58 }
 0xbac   :  { %v2131_v12 = vadd.f32 %v4268_v49, %v2130_v37  ;;  %v4931_v13 = vpop.f32.mrb[125].mxu1 }
 0xbad   :  { %v2133_v15 = vpop.f32.mrb[126].mxu1 }
 0xbae   :  { %v2218_v16 = vpack.c.bf16 %v2131_v12, %v2131_v12  ;;  %v4932_v52 = vpop.f32.mrb[127].mxu1 }
 0xbb0   :  { %v2671_v20 = vsel %vm1106_vm3, %v2218_v16, 0  ;;  %v4291_v16 = vld [vmem:[%s6883_s6 + $0x1b] ss:$0 sm:$0xff] }
 0xbb1   :  { %5022 = vmatpush3.bf16.msra.mxu1 %v2671_v20 }
 0xbb2   :  { %4948 = vmatmul.mubr.msk.bf16.gmra.mrb[92].mxu0 %vm231_vm1, %v2138_v18  ;;  %5053 = vmatprep.subr.bf16.mxu1 %v5471_v58 }
 0xbb3   :  { %v2275_v21 = vpop.f32.mrb[128].mxu1  ;;  %4971 = vmatprep.mubr.msk.bf16.mxu0 %vm5472_vm2, %v5471_v58 }
 0xbb4   :  { %v4957_v2 = vpop.f32.mrb[129].mxu1  ;;  %v6328_v35 = vadd.f32 %v6323_v60, %v2275_v21 }
 0xbb5   :  { %v2278_v62 = vpop.f32.mrb[130].mxu1 }
 0xbb6   :  { %v6331_v22 = vadd.f32 %v6323_v60, %v2278_v62  ;;  %v4958_v23 = vpop.f32.mrb[131].mxu1 }
 0xbb8   :  { %v2453_v25 = vpack.c.bf16 %v6331_v22, %v6328_v35 }
 0xbba   :  { %4972 = vmatmul.mubr.msk.bf16.vlgmr.msra.gmra.mrb[96].mxu0 %vm231_vm1, %v6188_v41 }
 0xbbb   :  { %v2283_v26 = vpop.f32.mrb[132].mxu1  ;;  %4975 = vmatprep.mubr.msk.bf16.mxu0 %vm5472_vm2, %v5471_v58 }
 0xbbc   :  { %v4961_v45 = vpop.f32.mrb[133].mxu1  ;;  %v6340_v8 = vadd.f32 %v6323_v60, %v2283_v26 }
 0xbbd   :  { %v2286_v30 = vpop.f32.mrb[134].mxu1 }
 0xbbe   :  { %v6343_v29 = vadd.f32 %v6323_v60, %v2286_v30  ;;  %v4962_v31 = vpop.f32.mrb[135].mxu1 }
 0xbc0   :  { %v2454_v19 = vpack.c.bf16 %v6343_v29, %v6340_v8 }
 0xbc2   :  { %4976 = vmatmul.mubr.msk.bf16.gmra.mrb[100].mxu0 %vm231_vm1, %v6206_v54 }
 0xbc3   :  { %v6349_v41 = vpop.f32.mrb[136].mxu1  ;;  %4979 = vmatprep.mubr.msk.bf16.mxu0 %vm5472_vm2, %v5471_v58 }
 0xbc4   :  { %v4965_v33 = vpop.f32.mrb[137].mxu1  ;;  %v2292_v35 = vadd.f32 %v6323_v60, %v6349_v41  ;;  %v5438_v60 = vld [vmem:[%s6888_s11 + $0x30] sm:$0xff] }
 0xbc5   :  { %v2294_v34 = vpop.f32.mrb[138].mxu1 }
 0xbc6   :  { %v4966_v36 = vpop.f32.mrb[139].mxu1  ;;  %v2455_v22 = vpack.c.bf16 %v2292_v35, %v2292_v35 }
 0xbca   :  { %4980 = vmatmul.mubr.msk.bf16.gmra.mrb[104].mxu0 %vm231_vm1, %v6217_v57 }
 0xbcb   :  { %v2431_v39 = vpop.f32.mrb[140].mxu1  ;;  %5005 = vmatprep.mubr.msk.bf16.mxu0 %vm5472_vm2, %v5471_v58 }
 0xbcc   :  { %v4989_v54 = vpop.f32.mrb[141].mxu1  ;;  %v6363_v40 = vadd.f32 %v6358_v9, %v2431_v39 }
 0xbcd   :  { %v2434_v48 = vpop.f32.mrb[142].mxu1 }
 0xbce   :  { %v2435_v5 = vadd.f32 %v6358_v9, %v2434_v48  ;;  %v4990_v42 = vpop.f32.mrb[143].mxu1 }
 0xbd0   :  { %v2533_v43 = vpack.c.bf16 %v2435_v5, %v6363_v40 }
 0xbd3   :  { %v2439_v57 = vpop.f32.mrb[144].mxu1 }
 0xbd4   :  { %v4993_v44 = vpop.f32.mrb[145].mxu1  ;;  %v2440_v47 = vadd.f32 %v6358_v9, %v2439_v57 }
 0xbd5   :  { %v2442_v46 = vpop.f32.mrb[146].mxu1 }
 0xbd6   :  { %v2443_v49 = vadd.f32 %v6358_v9, %v2442_v46  ;;  %v4994_v3 = vpop.f32.mrb[147].mxu1 }
 0xbd8   :  { %v2534_v50 = vpack.c.bf16 %v2443_v49, %v2440_v47 }
 0xbdb   :  { %v2447_v53 = vpop.f32.mrb[148].mxu1 }
 0xbdc   :  { %v4997_v51 = vpop.f32.mrb[149].mxu1  ;;  %v2448_v47 = vadd.f32 %v6358_v9, %v2447_v53 }
 0xbdd   :  { %v2450_v55 = vpop.f32.mrb[150].mxu1 }
 0xbde   :  { %v4998_v56 = vpop.f32.mrb[151].mxu1  ;;  %v2535_v49 = vpack.c.bf16 %v2448_v47, %v2448_v47 }
 0xbdf   :  { %v5439_v56 = vld [vmem:[%s6888_s11] sm:$0xff] }
 0xbe0   :  { %v2755_v3 = vsel %vm1106_vm3, %v2535_v49, 0 }
 0xc75   :  { %v6369_v59 = vpop.f32.mrb[84].mxu0 }
 0xc76   :  { %v4941_v27 = vpop.f32.mrb[85].mxu0 }
 0xc77   :  { %v6371_v61 = vpop.f32.mrb[86].mxu0  ;;  %v2536_v27 = vadd.f32 %v5439_v56, %v6369_v59 }
 0xc78   :  { %v4942_v0 = vpop.f32.mrb[87].mxu0 }
 0xc7d   :  { %v6373_v4 = vpop.f32.mrb[88].mxu0 }
 0xc7e   :  { %v4945_v7 = vpop.f32.mrb[89].mxu0 }
 0xc7f   :  { %v6375_v10 = vpop.f32.mrb[90].mxu0 }
 0xc80   :  { %v4946_v63 = vpop.f32.mrb[91].mxu0 }
 0xc81   :  { %v5440_v63 = vld [vmem:[%s6888_s11 + $0x38] sm:$0xff] }
 0xc85   :  { %v2210_v6 = vpop.f32.mrb[92].mxu0 }
 0xc86   :  { %v6380_v37 = vadd.f32 %v5436_v11, %v2210_v6  ;;  %v4949_v32 = vpop.f32.mrb[93].mxu0 }
 0xc87   :  { %v2213_v12 = vpop.f32.mrb[94].mxu0 }
 0xc88   :  { %v4950_v13 = vpop.f32.mrb[95].mxu0  ;;  %v2558_v15 = vsel %vm981_vm4, %v6380_v37, -inf  ;;  %v5441_v12 = vld [vmem:[%s6888_s11 + $0x8] sm:$0xff] }
 0xc89   :  { %2559 = vmax.xlane.f32.xlu0 %v2558_v15  ;;  %v2537_v59 = vadd.f32 %v5441_v12, %v6371_v61  ;;  %v5442_v13 = vld [vmem:[%s6888_s11 + $0x40] sm:$0xff] }
 0xc8b   :  { %v2549_v61 = vsel %vm981_vm4, %v2537_v59, -inf }
 0xc8d   :  { %v2353_v52 = vpop.f32.mrb[96].mxu0 }
 0xc8e   :  { %v4973_v18 = vpop.f32.mrb[97].mxu0  ;;  %v2354_v21 = vadd.f32 %v4291_v16, %v2353_v52 }
 0xc8f   :  { %v2356_v20 = vpop.f32.mrb[98].mxu0  ;;  %v5443_v18 = vld [vmem:[%s6888_s11 + $0x10] sm:$0xff] }
 0xc90   :  { %v2357_v2 = vadd.f32 %v4291_v16, %v2356_v20  ;;  %v4974_v62 = vpop.f32.mrb[99].mxu0  ;;  %v2538_v20 = vadd.f32 %v5443_v18, %v6373_v4  ;;  %v5445_v4 = vld [vmem:[%s6888_s11 + $0x18] sm:$0xff] }
 0xc91   :  { %v5444_v62 = vld [vmem:[%s6888_s11 + $0x48] sm:$0xff] }
 0xc92   :  { %v2456_v23 = vpack.c.bf16 %v2357_v2, %v2354_v21 }
 0xc94   :  { %v2469_v26 = vsel %vm231_vm1, %v2456_v23, 0 }
 0xc95   :  { %v2361_v45 = vpop.f32.mrb[100].mxu0  ;;  %5000 = vmatpush3.bf16.xpose.msra.mxu0 %v2469_v26 }
 0xc96   :  { %v4977_v30 = vpop.f32.mrb[101].mxu0  ;;  %5001 = vmatprep.subr.bf16.mxu0 %v5471_v58  ;;  %v2362_v33 = vadd.f32 %v4291_v16, %v2361_v45  ;;  %v2552_v45 = vsel %vm981_vm4, %v2538_v20, -inf }
 0xc97   :  { %v2364_v31 = vpop.f32.mrb[102].mxu0 }
 0xc98   :  { %v2365_v34 = vadd.f32 %v4291_v16, %v2364_v31  ;;  %v4978_v36 = vpop.f32.mrb[103].mxu0 }
 0xc9a   :  { %v2457_v39 = vpack.c.bf16 %v2365_v34, %v2362_v33  ;;  %v2539_v33 = vadd.f32 %v5445_v4, %v6375_v10 }
 0xc9c   :  { %v2472_v54 = vsel %vm231_vm1, %v2457_v39, 0 }
 0xc9d   :  { %v2369_v48 = vpop.f32.mrb[104].mxu0  ;;  %5002 = vmatpush3.bf16.xpose.msra.mxu0 %v2472_v54  ;;  %v2555_v54 = vsel %vm981_vm4, %v2539_v33, -inf }
 0xc9e   :  { %v2370_v40 = vadd.f32 %v4291_v16, %v2369_v48  ;;  %v4981_v5 = vpop.f32.mrb[105].mxu0  ;;  %5003 = vmatprep.subr.bf16.mxu0 %v5471_v58 }
 0xc9f   :  { %v2372_v42 = vpop.f32.mrb[106].mxu0 }
 0xca0   :  { %v2458_v57 = vpack.c.bf16 %v2370_v40, %v2370_v40  ;;  %v4982_v44 = vpop.f32.mrb[107].mxu0 }
 0xca2   :  { %v2475_v46 = vsel %vm231_vm1, %v2458_v57, 0 }
 0xca5   :  { %5004 = vmatpush3.bf16.xpose.msra.mxu0 %v2475_v46 }
 0xca6   :  { %5035 = vmatprep.subr.bf16.mxu0 %v5471_v58 }
 0xcac   :  { %5006 = vmatmul.mubr.msk.bf16.vlgmr.msra.gmra.mrb[108].mxu0 %vm231_vm1, %v2453_v25 }
 0xcad   :  { %5036 = vmatpush3.bf16.msra.mxu0 %v2533_v43  ;;  %5009 = vmatprep.mubr.msk.bf16.mxu0 %vm5472_vm2, %v5471_v58 }
 0xcae   :  { %5037 = vmatprep.subr.bf16.mxu0 %v5471_v58 }
 0xcb1   :  { %5038 = vmatpush3.bf16.msra.mxu0 %v2534_v50 }
 0xcb2   :  { %5039 = vmatprep.subr.bf16.mxu0 %v5471_v58 }
 0xcb4   :  { %5010 = vmatmul.mubr.msk.bf16.gmra.mrb[112].mxu0 %vm231_vm1, %v2454_v19  ;;  %v5437_v19 = vld [vmem:[%s6888_s11 + $0x28] sm:$0xff] }
 0xcb5   :  { %5040 = vmatpush3.bf16.msra.mxu0 %v2755_v3  ;;  %5013 = vmatprep.mubr.msk.bf16.mxu0 %vm5472_vm2, %v5471_v58 }
 0xcb6   :  { %5069 = vmatprep.subr.bf16.mxu0 %v5471_v58 }
 0xcbc   :  { %5014 = vmatmul.mubr.msk.bf16.gmra.mrb[116].mxu0 %vm231_vm1, %v2455_v22 }
 0xcbd   :  { %5041 = vmatprep.mubr.msk.bf16.mxu0 %vm5472_vm2, %v5471_v58 }
 0xd16   :  { %v2560_v25 = vpop.xlane.xlu0 %2559 }
 0xd17   :  { %v2580_v8 = vsub.f32 %v6380_v37, %v2560_v25  ;;  %v2546_v37 = vsel %vm981_vm4, %v2536_v27, -inf }
 0xd19   :  { %v2594_v55 = vmul.f32 1.442695, %v2580_v8 }
 0xd1b   :  { %5365 = vpow2.f32 %v2594_v55 }
 0xd25   :  { %v6450_v30 = vpop.eup %5365 }
 0xd26   :  { %v2618_v39 = vsel %vm981_vm4, %v6450_v30, 0.0 }
 0xd7f   :  { %v2511_v29 = vpop.f32.mrb[108].mxu0 }
 0xd80   :  { %v2541_v9 = vadd.f32 %v5437_v19, %v2511_v29  ;;  %v5007_v43 = vpop.f32.mrb[109].mxu0 }
 0xd81   :  { %v2514_v50 = vpop.f32.mrb[110].mxu0 }
 0xd82   :  { %v2542_v41 = vadd.f32 %v5438_v60, %v2514_v50  ;;  %v5008_v53 = vpop.f32.mrb[111].mxu0  ;;  %v2561_v51 = vsel %vm981_vm4, %v2541_v9, -inf }
 0xd83   :  { %2562 = vmax.xlane.f32.xlu1 %v2561_v51 }
 0xd84   :  { %v2564_v0 = vsel %vm981_vm4, %v2542_v41, -inf }
 0xd85   :  { %2565 = vmax.xlane.f32.xlu0 %v2564_v0 }
 0xd87   :  { %v2519_v7 = vpop.f32.mrb[112].mxu0 }
 0xd88   :  { %v2543_v6 = vadd.f32 %v5440_v63, %v2519_v7  ;;  %v5011_v11 = vpop.f32.mrb[113].mxu0 }
 0xd89   :  { %2547 = vmax.xlane.f32.xlu0 %v2546_v37  ;;  %v2522_v32 = vpop.f32.mrb[114].mxu0 }
 0xd8a   :  { %v2544_v15 = vadd.f32 %v5442_v13, %v2522_v32  ;;  %v5012_v16 = vpop.f32.mrb[115].mxu0  ;;  %v2567_v52 = vsel %vm981_vm4, %v2543_v6, -inf }
 0xd8b   :  { %2568 = vmax.xlane.f32.xlu1 %v2567_v52 }
 0xd8c   :  { %v2570_v21 = vsel %vm981_vm4, %v2544_v15, -inf }
 0xd8d   :  { %2571 = vmax.xlane.f32.xlu0 %v2570_v21 }
 0xd8f   :  { %2550 = vmax.xlane.f32.xlu1 %v2549_v61  ;;  %v2527_v2 = vpop.f32.mrb[116].mxu0 }
 0xd90   :  { %v2545_v23 = vadd.f32 %v5444_v62, %v2527_v2  ;;  %v5015_v26 = vpop.f32.mrb[117].mxu0 }
 0xd91   :  { %2553 = vmax.xlane.f32.xlu0 %v2552_v45  ;;  %v2530_v31 = vpop.f32.mrb[118].mxu0 }
 0xd92   :  { %v5016_v34 = vpop.f32.mrb[119].mxu0  ;;  %v2573_v36 = vsel %vm981_vm4, %v2545_v23, -inf }
 0xd93   :  { %2574 = vmax.xlane.f32.xlu1 %v2573_v36 }
 0xd95   :  { %2619 = vadd.xlane.f32.xlu0 %v2618_v39 }
 0xd97   :  { %2556 = vmax.xlane.f32.xlu1 %v2555_v54 }
 0xe10   :  { %v2563_v48 = vpop.xlane.xlu1 %2562 }
 0xe11   :  { %v2581_v40 = vsub.f32 %v2541_v9, %v2563_v48 }
 0xe12   :  { %v2566_v5 = vpop.xlane.xlu0 %2565 }
 0xe13   :  { %v2596_v42 = vmul.f32 1.442695, %v2581_v40  ;;  %v2582_v57 = vsub.f32 %v2542_v41, %v2566_v5 }
 0xe15   :  { %5367 = vpow2.f32 %v2596_v42  ;;  %v2598_v44 = vmul.f32 1.442695, %v2582_v57 }
 0xe16   :  { %v2548_v46 = vpop.xlane.xlu0 %2547 }
 0xe17   :  { %5369 = vpow2.f32 %v2598_v44  ;;  %v2576_v10 = vsub.f32 %v2536_v27, %v2548_v46 }
 0xe18   :  { %v2569_v47 = vpop.xlane.xlu1 %2568 }
 0xe19   :  { %v2586_v49 = vmul.f32 1.442695, %v2576_v10  ;;  %v2583_v3 = vsub.f32 %v2543_v6, %v2569_v47 }
 0xe1a   :  { %v2572_v35 = vpop.xlane.xlu0 %2571 }
 0xe1b   :  { %5371 = vpow2.f32 %v2586_v49  ;;  %v2600_v22 = vmul.f32 1.442695, %v2583_v3  ;;  %v2584_v25 = vsub.f32 %v2544_v15, %v2572_v35 }
 0xe1c   :  { %v2551_v8 = vpop.xlane.xlu1 %2550 }
 0xe1d   :  { %5373 = vpow2.f32 %v2600_v22  ;;  %v2602_v29 = vmul.f32 1.442695, %v2584_v25  ;;  %v2577_v19 = vsub.f32 %v2537_v59, %v2551_v8 }
 0xe1e   :  { %v2554_v9 = vpop.xlane.xlu0 %2553 }
 0xe1f   :  { %v5368_v43 = vpop.eup %5367  ;;  %5375 = vpow2.f32 %v2602_v29  ;;  %v2588_v50 = vmul.f32 1.442695, %v2577_v19  ;;  %v2578_v60 = vsub.f32 %v2538_v20, %v2554_v9  ;;  %v5219_v19 = vld [vmem:[%s6880_s3 + $0xf0] sm:$0xff]  }
 0xe20   :  { %v2575_v41 = vpop.xlane.xlu1 %2574  ;;  %v2621_v53 = vsel %vm981_vm4, %v5368_v43, 0.0 }
 0xe21   :  { %v5370_v51 = vpop.eup %5369  ;;  %5377 = vpow2.f32 %v2588_v50  ;;  %v2590_v55 = vmul.f32 1.442695, %v2578_v60  ;;  %v2585_v56 = vsub.f32 %v2545_v23, %v2575_v41  ;;  %2622 = vadd.xlane.f32.xlu1 %v2621_v53 }
 0xe22   :  { %v2624_v27 = vsel %vm981_vm4, %v5370_v51, 0.0  ;;  %v2620_v62 = vpop.xlane.xlu0 %2619 }
 0xe23   :  { %5379 = vpow2.f32 %v2590_v55  ;;  %v2604_v0 = vmul.f32 1.442695, %v2585_v56  ;;  %2625 = vadd.xlane.f32.xlu0 %v2624_v27 }
 0xe24   :  { %v2557_v7 = vpop.xlane.xlu1 %2556 }
 0xe25   :  { %v5372_v63 = vpop.eup %5371  ;;  %5381 = vpow2.f32 %v2604_v0  ;;  %v2579_v6 = vsub.f32 %v2539_v33, %v2557_v7 }
 0xe26   :  { %v2606_v11 = vsel %vm981_vm4, %v5372_v63, 0.0 }
 0xe27   :  { %v5374_v37 = vpop.eup %5373  ;;  %v2592_v32 = vmul.f32 1.442695, %v2579_v6  ;;  %2607 = vadd.xlane.f32.xlu0 %v2606_v11  ;;  %v5221_v6 = vld [vmem:[%s6880_s3 + $0xf8] sm:$0xff]  }
 0xe28   :  { %v2627_v12 = vsel %vm981_vm4, %v5374_v37, 0.0  ;;  %v5222_v11 = vld [vmem:[%s6880_s3 + $0xb8] sm:$0xff]  }
 0xe29   :  { %v5376_v59 = vpop.eup %5375  ;;  %5383 = vpow2.f32 %v2592_v32  ;;  %2628 = vadd.xlane.f32.xlu1 %v2627_v12 }
 0xe2a   :  { %v2630_v13 = vsel %vm981_vm4, %v5376_v59, 0.0 }
 0xe2b   :  { %v5378_v15 = vpop.eup %5377  ;;  %2631 = vadd.xlane.f32.xlu0 %v2630_v13 }
 0xe2c   :  { %v2609_v16 = vsel %vm981_vm4, %v5378_v15, 0.0 }
 0xe2d   :  { %v6466_v52 = vpop.eup %5379  ;;  %2610 = vadd.xlane.f32.xlu1 %v2609_v16 }
 0xe2e   :  { %v2612_v18 = vsel %vm981_vm4, %v6466_v52, 0.0 }
 0xe2f   :  { %v5382_v20 = vpop.eup %5381  ;;  %2613 = vadd.xlane.f32.xlu0 %v2612_v18 }
 0xe30   :  { %v2633_v21 = vsel %vm981_vm4, %v5382_v20, 0.0 }
 0xe31   :  { %2634 = vadd.xlane.f32.xlu1 %v2633_v21 }
 0xe33   :  { %v5384_v61 = vpop.eup %5383 }
 0xe34   :  { %v2615_v2 = vsel %vm981_vm4, %v5384_v61, 0.0 }
 0xe35   :  { %2616 = vadd.xlane.f32.xlu1 %v2615_v2 }
 0xeae   :  { %v2623_v23 = vpop.xlane.xlu1 %2622 }
 0xeaf   :  { %5385 = vrcp.f32 %v2623_v23 }
 0xeb0   :  { %v2626_v26 = vpop.xlane.xlu0 %2625  ;;  %5387 = vrcp.f32 %v2620_v62 }
 0xeb1   :  { %5389 = vrcp.f32 %v2626_v26 }
 0xeb4   :  { %v2608_v45 = vpop.xlane.xlu0 %2607 }
 0xeb6   :  { %v2629_v31 = vpop.xlane.xlu1 %2628 }
 0xeb7   :  { %5391 = vrcp.f32 %v2629_v31 }
 0xeb8   :  { %v2632_v4 = vpop.xlane.xlu0 %2631  ;;  %5393 = vrcp.f32 %v2608_v45 }
 0xeb9   :  { %v5386_v34 = vpop.eup %5385 }
 0xeba   :  { %v2611_v33 = vpop.xlane.xlu1 %2610  ;;  %v5388_v36 = vpop.eup %5387  ;;  %v2651_v39 = vmul.f32 %v5386_v34, %v5368_v43  ;;  %v5220_v43 = vld [vmem:[%s6880_s3 + $0xb0] sm:$0xff]  }
 0xebb   :  { %5395 = vrcp.f32 %v2611_v33  ;;  %v5390_v40 = vpop.eup %5389  ;;  %v2650_v5 = vmul.f32 %v5388_v36, %v6450_v30 }
 0xebc   :  { %5397 = vrcp.f32 %v2632_v4  ;;  %v2614_v54 = vpop.xlane.xlu0 %2613  ;;  %v2652_v44 = vmul.f32 %v5390_v40, %v5370_v51 }
 0xebd   :  { %v2658_v57 = vpack.c.bf16 %v2651_v39, %v2650_v5 }
 0xebe   :  { %v2635_v48 = vpop.xlane.xlu1 %2634 }
 0xebf   :  { %5399 = vrcp.f32 %v2635_v48  ;;  %v2740_v25 = vrot.slane %v2658_v57, 4 }
 0xec0   :  { %5401 = vrcp.f32 %v2614_v54 }
 0xec1   :  { %v5392_v42 = vpop.eup %5391 }
 0xec2   :  { %v2653_v46 = vmul.f32 %v5392_v42, %v5374_v37  ;;  %v2617_v10 = vpop.xlane.xlu1 %2616  ;;  %v5394_v47 = vpop.eup %5393 }
 0xec3   :  { %5403 = vrcp.f32 %v2617_v10  ;;  %v2646_v35 = vmul.f32 %v5394_v47, %v5372_v63 }
 0xec4   :  { %v2659_v49 = vpack.c.bf16 %v2653_v46, %v2652_v44 }
 0xec5   :  { %v5396_v3 = vpop.eup %5395 }
 0xec6   :  { %v2647_v22 = vmul.f32 %v5396_v3, %v5378_v15  ;;  %v2741_v8 = vrot.slane %v2659_v49, 4  ;;  %v5398_v29 = vpop.eup %5397 }
 0xec7   :  { %v2654_v60 = vmul.f32 %v5398_v29, %v5376_v59 }
 0xec8   :  { %v2656_v30 = vpack.c.bf16 %v2647_v22, %v2646_v35  ;;  %v2742_v9 = vsel %vm1106_vm3, %v2740_v25, %v2741_v8  ;;  %v4334_v22 = vld [vmem:[%s6883_s6 + $0x14] ss:$0 sm:$0xff] }
 0xec9   :  { %v5400_v50 = vpop.eup %5399  ;;  %5042 = vmatmul.mubr.msk.bf16.vlgmr.msra.gmra.mrb[120].mxu0 %vm981_vm4, %v2742_v9 }
 0xeca   :  { %5024 = vmatmul.mubr.msk.bf16.vlgmr.msra.gmra.mrb[152].mxu1 %vm981_vm4, %v2656_v30  ;;  %5045 = vmatprep.mubr.msk.bf16.mxu0 %vm5472_vm2, %v5471_v58  ;;  %v2655_v41 = vmul.f32 %v5400_v50, %v5382_v20  ;;  %v5402_v53 = vpop.eup %5401 }
 0xecb   :  { %5027 = vmatprep.mubr.msk.bf16.mxu1 %vm5472_vm2, %v5471_v58  ;;  %5054 = vmatpush3.bf16.msra.mxu1 %v5219_v19  ;;  %v2648_v27 = vmul.f32 %v5402_v53, %v6466_v52 }
 0xecc   :  { %v2660_v51 = vpack.c.bf16 %v2655_v41, %v2654_v60  ;;  %5070 = vmatpush3.bf16.msra.mxu0 %v5220_v43  ;;  %5055 = vmatprep.subr.bf16.mxu1 %v5471_v58 }
 0xecd   :  { %v5404_v55 = vpop.eup %5403  ;;  %5071 = vmatprep.subr.bf16.mxu0 %v5471_v58 }
 0xece   :  { %v2743_v56 = vrot.slane %v2660_v51, 4  ;;  %v2649_v0 = vmul.f32 %v5404_v55, %v5384_v61 }
 0xecf   :  { %5056 = vmatpush3.bf16.msra.mxu1 %v5221_v6 }
 0xed0   :  { %v2744_v7 = vsel %vm1106_vm3, %v2741_v8, %v2743_v56  ;;  %v2657_v63 = vpack.c.bf16 %v2649_v0, %v2648_v27  ;;  %5072 = vmatpush3.bf16.msra.mxu0 %v5222_v11  ;;  %5085 = vmatprep.subr.bf16.mxu1 %v5471_v58 }
 0xed1   :  { %5046 = vmatmul.mubr.msk.bf16.gmra.mrb[124].mxu0 %vm981_vm4, %v2744_v7  ;;  %5101 = vmatprep.subr.bf16.mxu0 %v5471_v58 }
 0xed2   :  { %5028 = vmatmul.mubr.msk.bf16.gmra.mrb[156].mxu1 %vm981_vm4, %v2657_v63  ;;  %5049 = vmatprep.mubr.msk.bf16.mxu0 %vm5472_vm2, %v5471_v58 }
 0xed3   :  { %5031 = vmatprep.mubr.msk.bf16.mxu1 %vm5472_vm2, %v5471_v58 }
 0xed9   :  { %5050 = vmatmul.mubr.msk.bf16.gmra.mrb[128].mxu0 %vm981_vm4, %v2743_v56 }
 0xeda   :  { %5032 = vmatmul.mubr.msk.bf16.gmra.mrb[160].mxu1 %vm981_vm4, %v2658_v57  ;;  %5073 = vmatprep.mubr.msk.bf16.mxu0 %vm5472_vm2, %v5471_v58 }
 0xedb   :  { %5057 = vmatprep.mubr.msk.bf16.mxu1 %vm5472_vm2, %v5471_v58 }
 0xf9c   :  { %v2791_v37 = vpop.f32.mrb[120].mxu0 }
 0xf9d   :  { %v2707_v32 = vpop.f32.mrb[152].mxu1  ;;  %v5043_v12 = vpop.f32.mrb[121].mxu0 }
 0xf9e   :  { %v5025_v59 = vpop.f32.mrb[153].mxu1  ;;  %v2794_v13 = vpop.f32.mrb[122].mxu0 }
 0xf9f   :  { %v2813_v15 = vpack.c.bf16 %v2794_v13, %v2791_v37  ;;  %v2710_v16 = vpop.f32.mrb[154].mxu1  ;;  %v5044_v52 = vpop.f32.mrb[123].mxu0 }
 0xfa0   :  { %v2729_v18 = vpack.c.bf16 %v2710_v16, %v2707_v32  ;;  %v5026_v20 = vpop.f32.mrb[155].mxu1 }
 0xfa1   :  { %5058 = vmatmul.mubr.msk.bf16.vlgmr.msra.gmra.mrb[164].mxu1 %vm231_vm1, %v2813_v15 }
 0xfa2   :  { %5074 = vmatmul.mubr.msk.bf16.vlgmr.msra.gmra.mrb[132].mxu0 %vm231_vm1, %v2729_v18  ;;  %5061 = vmatprep.mubr.msk.bf16.mxu1 %vm5472_vm2, %v5471_v58 }
 0xfa3   :  { %5077 = vmatprep.mubr.msk.bf16.mxu0 %vm5472_vm2, %v5471_v58 }
 0xfa4   :  { %v2799_v21 = vpop.f32.mrb[124].mxu0 }
 0xfa5   :  { %v2715_v61 = vpop.f32.mrb[156].mxu1  ;;  %v5047_v2 = vpop.f32.mrb[125].mxu0 }
 0xfa6   :  { %v5029_v62 = vpop.f32.mrb[157].mxu1  ;;  %v2802_v23 = vpop.f32.mrb[126].mxu0 }
 0xfa7   :  { %v2814_v26 = vpack.c.bf16 %v2802_v23, %v2799_v21  ;;  %v2718_v45 = vpop.f32.mrb[158].mxu1  ;;  %v5048_v31 = vpop.f32.mrb[127].mxu0 }
 0xfa8   :  { %v2730_v4 = vpack.c.bf16 %v2718_v45, %v2715_v61  ;;  %v5030_v33 = vpop.f32.mrb[159].mxu1 }
 0xfa9   :  { %5062 = vmatmul.mubr.msk.bf16.gmra.mrb[168].mxu1 %vm231_vm1, %v2814_v26 }
 0xfaa   :  { %5078 = vmatmul.mubr.msk.bf16.gmra.mrb[136].mxu0 %vm231_vm1, %v2730_v4  ;;  %5065 = vmatprep.mubr.msk.bf16.mxu1 %vm5472_vm2, %v5471_v58 }
 0xfab   :  { %5081 = vmatprep.mubr.msk.bf16.mxu0 %vm5472_vm2, %v5471_v58 }
 0xfac   :  { %v2807_v34 = vpop.f32.mrb[128].mxu0 }
 0xfad   :  { %v2723_v36 = vpop.f32.mrb[160].mxu1  ;;  %v5051_v39 = vpop.f32.mrb[129].mxu0  ;;  %v2815_v40 = vpack.c.bf16 %v2807_v34, %v2807_v34 }
 0xfae   :  { %v5033_v54 = vpop.f32.mrb[161].mxu1  ;;  %v2810_v48 = vpop.f32.mrb[130].mxu0  ;;  %v2731_v57 = vpack.c.bf16 %v2723_v36, %v2723_v36 }
 0xfaf   :  { %v2726_v5 = vpop.f32.mrb[162].mxu1  ;;  %v5052_v42 = vpop.f32.mrb[131].mxu0  ;;  %v5224_v48 = vld [vmem:[%s6881_s4 + $0x18] sm:$0xff]  }
 0xfb0   :  { %v5034_v44 = vpop.f32.mrb[163].mxu1 }
 0xfb1   :  { %5066 = vmatmul.mubr.msk.bf16.gmra.mrb[172].mxu1 %vm231_vm1, %v2815_v40 }
 0xfb2   :  { %5082 = vmatmul.mubr.msk.bf16.gmra.mrb[140].mxu0 %vm231_vm1, %v2731_v57  ;;  %5089 = vmatprep.mubr.msk.bf16.mxu1 %vm5472_vm2, %v5471_v58 }
 0xfb3   :  { %5117 = vmatprep.mubr.msk.bf16.mxu0 %vm5472_vm2, %v5471_v58 }
0x1074   :  { %v2876_v46 = vpop.f32.mrb[164].mxu1 }
0x1075   :  { %v5059_v10 = vpop.f32.mrb[165].mxu1  ;;  %v2953_v47 = vpop.f32.mrb[132].mxu0 }
0x1076   :  { %v2954_v49 = vadd.f32 %v2953_v47, %v2876_v46  ;;  %v2879_v3 = vpop.f32.mrb[166].mxu1  ;;  %v5075_v35 = vpop.f32.mrb[133].mxu0 }
0x1077   :  { %v5060_v25 = vpop.f32.mrb[167].mxu1  ;;  %v2956_v8 = vpop.f32.mrb[134].mxu0 }
0x1078   :  { %v2975_v29 = vadd.f32 %v2954_v49, %v6123_v14  ;;  %v2957_v19 = vadd.f32 %v2956_v8, %v2879_v3  ;;  %v5076_v30 = vpop.f32.mrb[135].mxu0 }
0x107a   :  { %v6532_v9 = vadd.f32 %v4334_v22, %v2975_v29  ;;  %v2976_v43 = vadd.f32 %v2957_v19, %v6126_v17 }
0x107c   :  { %v6535_v50 = vadd.f32 %v4334_v22, %v2976_v43  ;;  %v2884_v60 = vpop.f32.mrb[168].mxu1  ;;  %v2992_v41 = vsel %vm231_vm1, %v6532_v9, 0.0  ;;  %v3012_v53 = vmul.f32 %v6532_v9, %v6532_v9 }
0x107d   :  { %v5063_v51 = vpop.f32.mrb[169].mxu1  ;;  %2993 = vadd.xlane.f32.xlu0 %v2992_v41  ;;  %v2961_v55 = vpop.f32.mrb[136].mxu0 }
0x107e   :  { %v2962_v56 = vadd.f32 %v2961_v55, %v2884_v60  ;;  %v2887_v14 = vpop.f32.mrb[170].mxu1  ;;  %v5079_v27 = vpop.f32.mrb[137].mxu0  ;;  %v2995_v0 = vsel %vm231_vm1, %v6535_v50, 0.0  ;;  %v3013_v17 = vmul.f32 %v6535_v50, %v6535_v50  ;;  %v3017_v32 = vsel %vm231_vm1, %v3012_v53, 0.0 }
0x107f   :  { %v5064_v7 = vpop.f32.mrb[171].mxu1  ;;  %2996 = vadd.xlane.f32.xlu1 %v2995_v0  ;;  %v2964_v63 = vpop.f32.mrb[138].mxu0 }
0x1080   :  { %v2977_v6 = vadd.f32 %v2962_v56, %v6138_v24  ;;  %v2965_v11 = vadd.f32 %v2964_v63, %v2887_v14  ;;  %v5080_v37 = vpop.f32.mrb[139].mxu0  ;;  %v3020_v13 = vsel %vm231_vm1, %v3013_v17, 0.0 }
0x1081   :  { %3018 = vadd.xlane.f32.xlu0 %v3017_v32 }
0x1082   :  { %v6547_v12 = vadd.f32 %v4334_v22, %v2977_v6  ;;  %v2978_v59 = vadd.f32 %v2965_v11, %v6142_v28 }
0x1083   :  { %3021 = vadd.xlane.f32.xlu1 %v3020_v13  ;;  %v4335_v13 = vld [vmem:[%s6883_s6 + $0x12] ss:$0 sm:$0xff] }
0x1084   :  { %v6551_v15 = vadd.f32 %v4334_v22, %v2978_v59  ;;  %v2892_v16 = vpop.f32.mrb[172].mxu1  ;;  %v2998_v52 = vsel %vm231_vm1, %v6547_v12, 0.0  ;;  %v3014_v24 = vmul.f32 %v6547_v12, %v6547_v12 }
0x1085   :  { %v5067_v18 = vpop.f32.mrb[173].mxu1  ;;  %2999 = vadd.xlane.f32.xlu0 %v2998_v52  ;;  %v2969_v20 = vpop.f32.mrb[140].mxu0 }
0x1086   :  { %v2970_v21 = vadd.f32 %v2969_v20, %v2892_v16  ;;  %v2895_v61 = vpop.f32.mrb[174].mxu1  ;;  %v5083_v2 = vpop.f32.mrb[141].mxu0  ;;  %v3001_v28 = vsel %vm231_vm1, %v6551_v15, 0.0  ;;  %v3015_v62 = vmul.f32 %v6551_v15, %v6551_v15  ;;  %v3023_v4 = vsel %vm231_vm1, %v3014_v24, 0.0 }
0x1087   :  { %v5068_v23 = vpop.f32.mrb[175].mxu1  ;;  %3002 = vadd.xlane.f32.xlu1 %v3001_v28  ;;  %v2972_v26 = vpop.f32.mrb[142].mxu0  ;;  %v4336_v2 = vld [vmem:[%s6883_s6 + $0x13] ss:$0 sm:$0xff] }
0x1088   :  { %v2979_v45 = vadd.f32 %v2970_v21, %v6154_v38  ;;  %v5084_v31 = vpop.f32.mrb[143].mxu0  ;;  %v3026_v34 = vsel %vm231_vm1, %v3015_v62, 0.0  ;;  %v5223_v38 = vld [vmem:[%s6881_s4 + $0x10] sm:$0xff]  }
0x1089   :  { %3024 = vadd.xlane.f32.xlu0 %v3023_v4  ;;  %5086 = vmatpush3.bf16.msra.mxu1 %v5223_v38 }
0x108a   :  { %v6563_v33 = vadd.f32 %v4334_v22, %v2979_v45  ;;  %5087 = vmatprep.subr.bf16.mxu1 %v5471_v58 }
0x108b   :  { %3027 = vadd.xlane.f32.xlu1 %v3026_v34 }
0x108c   :  { %v3004_v36 = vsel %vm231_vm1, %v6563_v33, 0.0  ;;  %v3016_v39 = vmul.f32 %v6563_v33, %v6563_v33 }
0x108d   :  { %3005 = vadd.xlane.f32.xlu0 %v3004_v36  ;;  %5088 = vmatpush3.bf16.msra.mxu1 %v5224_v48 }
0x108e   :  { %v3029_v54 = vsel %vm231_vm1, %v3016_v39, 0.0  ;;  %5129 = vmatprep.subr.bf16.mxu1 %v5471_v58 }
0x108f   :  { %3030 = vadd.xlane.f32.xlu1 %v3029_v54 }
0x110a   :  { %v2994_v40 = vpop.xlane.xlu0 %2993 }
0x110b   :  { %v3007_v5 = vmul.f32 0.03125, %v2994_v40 }
0x110c   :  { %v2997_v42 = vpop.xlane.xlu1 %2996 }
0x110d   :  { %v3008_v57 = vmul.f32 0.03125, %v2997_v42  ;;  %v3037_v46 = vmul.f32 %v3007_v5, %v3007_v5  ;;  %v3047_v37 = vsub.f32 %v6532_v9, %v3007_v5 }
0x110e   :  { %v3019_v44 = vpop.xlane.xlu0 %3018 }
0x110f   :  { %v3032_v10 = vmul.f32 0.03125, %v3019_v44  ;;  %v3038_v49 = vmul.f32 %v3008_v57, %v3008_v57  ;;  %v3048_v16 = vsub.f32 %v6535_v50, %v3008_v57 }
0x1110   :  { %v3022_v47 = vpop.xlane.xlu1 %3021 }
0x1111   :  { %v3042_v3 = vsub.f32 %v3032_v10, %v3037_v46  ;;  %v3033_v35 = vmul.f32 0.03125, %v3022_v47 }
0x1112   :  { %v3000_v22 = vpop.xlane.xlu0 %2999 }
0x1113   :  { %v3052_v25 = vadd.f32 1e-06, %v3042_v3  ;;  %v3043_v8 = vsub.f32 %v3033_v35, %v3038_v49  ;;  %v3009_v29 = vmul.f32 0.03125, %v3000_v22  ;;  %v5225_v49 = vld [vmem:[%s6882_s5 + $0x40] sm:$0xff]   ;;  %v5226_v3 = vld [vmem:[%s6882_s5 + $0x48] sm:$0xff]   ;;  %v5227_v35 = vld [vmem:[%s6882_s5 + $0x50] sm:$0xff]  }
0x1114   :  { %v3003_v19 = vpop.xlane.xlu1 %3002  ;;  %5102 = vmatpush3.bf16.msra.mxu0 %v5225_v49  ;;  %v5228_v22 = vld [vmem:[%s6882_s5 + $0x58] sm:$0xff]  }
0x1115   :  { %5405 = vrsqrt.f32 %v3052_v25  ;;  %v3053_v30 = vadd.f32 1e-06, %v3043_v8  ;;  %v3010_v43 = vmul.f32 0.03125, %v3003_v19  ;;  %v3039_v41 = vmul.f32 %v3009_v29, %v3009_v29  ;;  %5103 = vmatprep.subr.bf16.mxu0 %v5471_v58  ;;  %v5229_v25 = vld [vmem:[%s6882_s5 + $0x60] sm:$0xff]   ;;  %v5230_v8 = vld [vmem:[%s6882_s5 + $0x68] sm:$0xff]   ;;  %v5232_v19 = vld [vmem:[%s6882_s5 + $0x78] sm:$0xff]  }
0x1116   :  { %v3025_v60 = vpop.xlane.xlu0 %3024  ;;  %v3049_v26 = vsub.f32 %v6547_v12, %v3009_v29  ;;  %v5231_v29 = vld [vmem:[%s6882_s5 + $0x70] sm:$0xff]  }
0x1117   :  { %5407 = vrsqrt.f32 %v3053_v30  ;;  %v3034_v53 = vmul.f32 0.03125, %v3025_v60  ;;  %v3040_v55 = vmul.f32 %v3010_v43, %v3010_v43  ;;  %v3050_v31 = vsub.f32 %v6551_v15, %v3010_v43  ;;  %v4341_v30 = vld [vmem:[%s6883_s6 + $0x15] ss:$0 sm:$0xff] }
0x1118   :  { %v3028_v51 = vpop.xlane.xlu1 %3027  ;;  %5104 = vmatpush3.bf16.msra.mxu0 %v5226_v3 }
0x1119   :  { %v3044_v56 = vsub.f32 %v3034_v53, %v3039_v41  ;;  %v3035_v14 = vmul.f32 0.03125, %v3028_v51  ;;  %5105 = vmatprep.subr.bf16.mxu0 %v5471_v58 }
0x111a   :  { %v3006_v27 = vpop.xlane.xlu0 %3005 }
0x111b   :  { %v3054_v0 = vadd.f32 1e-06, %v3044_v56  ;;  %v3045_v17 = vsub.f32 %v3035_v14, %v3040_v55  ;;  %v3011_v7 = vmul.f32 0.03125, %v3006_v27 }
0x111c   :  { %v3031_v63 = vpop.xlane.xlu1 %3030  ;;  %5106 = vmatpush3.bf16.msra.mxu0 %v5227_v35 }
0x111d   :  { %5409 = vrsqrt.f32 %v3054_v0  ;;  %v3055_v6 = vadd.f32 1e-06, %v3045_v17  ;;  %v3041_v11 = vmul.f32 %v3011_v7, %v3011_v7  ;;  %v3036_v32 = vmul.f32 0.03125, %v3031_v63  ;;  %5107 = vmatprep.subr.bf16.mxu0 %v5471_v58 }
0x111e   :  { %v3051_v48 = vsub.f32 %v6563_v33, %v3011_v7 }
0x111f   :  { %v5406_v59 = vpop.eup %5405  ;;  %5411 = vrsqrt.f32 %v3055_v6  ;;  %v3046_v24 = vsub.f32 %v3036_v32, %v3041_v11 }
0x1120   :  { %v3062_v52 = vmul.f32 %v5406_v59, %v3047_v37  ;;  %5108 = vmatpush3.bf16.msra.mxu0 %v5228_v22 }
0x1121   :  { %v5408_v18 = vpop.eup %5407  ;;  %v3056_v61 = vadd.f32 1e-06, %v3046_v24  ;;  %5109 = vmatprep.subr.bf16.mxu0 %v5471_v58 }
0x1122   :  { %v3071_v20 = vmul.f32 %v4335_v13, %v3062_v52  ;;  %v3063_v21 = vmul.f32 %v5408_v18, %v3048_v16 }
0x1123   :  { %5413 = vrsqrt.f32 %v3056_v61 }
0x1124   :  { %v3072_v28 = vmul.f32 %v4335_v13, %v3063_v21  ;;  %v3080_v62 = vadd.f32 %v4336_v2, %v3071_v20  ;;  %5110 = vmatpush3.bf16.msra.mxu0 %v5229_v25 }
0x1125   :  { %5111 = vmatprep.subr.bf16.mxu0 %v5471_v58 }
0x1126   :  { %v3081_v23 = vadd.f32 %v4336_v2, %v3072_v28 }
0x1127   :  { %v5410_v45 = vpop.eup %5409 }
0x1128   :  { %v3085_v4 = vpack.c.bf16 %v3081_v23, %v3080_v62  ;;  %v3064_v34 = vmul.f32 %v5410_v45, %v3049_v26  ;;  %5112 = vmatpush3.bf16.msra.mxu0 %v5230_v8 }
0x1129   :  { %v5412_v36 = vpop.eup %5411  ;;  %5113 = vmatprep.subr.bf16.mxu0 %v5471_v58 }
0x112a   :  { %5090 = vmatmul.mubr.msk.bf16.vlgmr.msra.gmra.mrb[176].mxu1 %vm231_vm1, %v3085_v4  ;;  %v3065_v39 = vmul.f32 %v5412_v36, %v3050_v31  ;;  %v3073_v54 = vmul.f32 %v4335_v13, %v3064_v34 }
0x112b   :  { %5093 = vmatprep.mubr.msk.bf16.mxu1 %vm5472_vm2, %v5471_v58 }
0x112c   :  { %v3074_v38 = vmul.f32 %v4335_v13, %v3065_v39  ;;  %v3082_v5 = vadd.f32 %v4336_v2, %v3073_v54  ;;  %5114 = vmatpush3.bf16.msra.mxu0 %v5231_v29 }
0x112d   :  { %v5414_v40 = vpop.eup %5413  ;;  %5115 = vmatprep.subr.bf16.mxu0 %v5471_v58 }
0x112e   :  { %v3083_v42 = vadd.f32 %v4336_v2, %v3074_v38  ;;  %v3066_v57 = vmul.f32 %v5414_v40, %v3051_v48 }
0x1130   :  { %v3086_v44 = vpack.c.bf16 %v3083_v42, %v3082_v5  ;;  %v3075_v46 = vmul.f32 %v4335_v13, %v3066_v57  ;;  %5116 = vmatpush3.bf16.msra.mxu0 %v5232_v19 }
0x1132   :  { %5094 = vmatmul.mubr.msk.bf16.gmra.mrb[180].mxu1 %vm231_vm1, %v3086_v44  ;;  %v3084_v10 = vadd.f32 %v4336_v2, %v3075_v46 }
0x1133   :  { %5097 = vmatprep.mubr.msk.bf16.mxu1 %vm5472_vm2, %v5471_v58 }
0x1134   :  { %v3087_v47 = vpack.c.bf16 %v3084_v10, %v3084_v10 }
0x113a   :  { %5098 = vmatmul.mubr.msk.bf16.gmra.mrb[184].mxu1 %vm231_vm1, %v3087_v47 }
0x113b   :  { %5135 = vmatprep.mubr.msk.bf16.mxu1 %vm5472_vm2, %v5471_v58 }
0x11fd   :  { %v3153_v43 = vpop.f32.mrb[176].mxu1 }
0x11fe   :  { %v3154_v60 = vadd.f32 %v4341_v30, %v3153_v43  ;;  %v5091_v41 = vpop.f32.mrb[177].mxu1 }
0x11ff   :  { %v3156_v53 = vpop.f32.mrb[178].mxu1 }
0x1200   :  { %v3175_v51 = vmul.f32 %v3154_v60, %v3154_v60  ;;  %v3157_v55 = vadd.f32 %v4341_v30, %v3156_v53  ;;  %v5092_v56 = vpop.f32.mrb[179].mxu1 }
0x1202   :  { %v3180_v14 = vmul.f32 %v3175_v51, %v3154_v60  ;;  %v3176_v27 = vmul.f32 %v3157_v55, %v3157_v55 }
0x1204   :  { %v3185_v0 = vmul.f32 0.044715, %v3180_v14  ;;  %v3181_v17 = vmul.f32 %v3176_v27, %v3157_v55 }
0x1205   :  { %v3161_v7 = vpop.f32.mrb[180].mxu1 }
0x1206   :  { %v3190_v63 = vadd.f32 %v3185_v0, %v3154_v60  ;;  %v3186_v6 = vmul.f32 0.044715, %v3181_v17  ;;  %v3162_v11 = vadd.f32 %v4341_v30, %v3161_v7  ;;  %v5095_v37 = vpop.f32.mrb[181].mxu1  ;;  %v4371_v0 = vld [vmem:[%s6883_s6 + $0x16] ss:$0 sm:$0xff] }
0x1207   :  { %v3164_v32 = vpop.f32.mrb[182].mxu1 }
0x1208   :  { %v3195_v59 = vmul.f32 0.7978846, %v3190_v63  ;;  %v3191_v13 = vadd.f32 %v3186_v6, %v3157_v55  ;;  %v3177_v16 = vmul.f32 %v3162_v11, %v3162_v11  ;;  %v3165_v52 = vadd.f32 %v4341_v30, %v3164_v32  ;;  %v5096_v24 = vpop.f32.mrb[183].mxu1 }
0x120a   :  { %5415 = vtanh.f32 %v3195_v59  ;;  %v3196_v18 = vmul.f32 0.7978846, %v3191_v13  ;;  %v3182_v20 = vmul.f32 %v3177_v16, %v3162_v11  ;;  %v3178_v21 = vmul.f32 %v3165_v52, %v3165_v52 }
0x120c   :  { %5417 = vtanh.f32 %v3196_v18  ;;  %v3187_v61 = vmul.f32 0.044715, %v3182_v20  ;;  %v3183_v2 = vmul.f32 %v3178_v21, %v3165_v52 }
0x120d   :  { %v3169_v28 = vpop.f32.mrb[184].mxu1 }
0x120e   :  { %v3192_v62 = vadd.f32 %v3187_v61, %v3162_v11  ;;  %v3188_v23 = vmul.f32 0.044715, %v3183_v2  ;;  %v3170_v26 = vadd.f32 %v4341_v30, %v3169_v28  ;;  %v5099_v45 = vpop.f32.mrb[185].mxu1 }
0x120f   :  { %v3172_v31 = vpop.f32.mrb[186].mxu1 }
0x1210   :  { %v3197_v4 = vmul.f32 0.7978846, %v3192_v62  ;;  %v3193_v34 = vadd.f32 %v3188_v23, %v3165_v52  ;;  %v3179_v36 = vmul.f32 %v3170_v26, %v3170_v26  ;;  %v5100_v39 = vpop.f32.mrb[187].mxu1 }
0x1212   :  { %5419 = vtanh.f32 %v3197_v4  ;;  %v3198_v54 = vmul.f32 0.7978846, %v3193_v34  ;;  %v3184_v38 = vmul.f32 %v3179_v36, %v3170_v26 }
0x1214   :  { %v5416_v48 = vpop.eup %5415  ;;  %5421 = vtanh.f32 %v3198_v54  ;;  %v3189_v40 = vmul.f32 0.044715, %v3184_v38 }
0x1215   :  { %v3205_v5 = vadd.f32 1.0, %v5416_v48 }
0x1216   :  { %v5418_v42 = vpop.eup %5417  ;;  %v3194_v57 = vadd.f32 %v3189_v40, %v3170_v26 }
0x1217   :  { %v3210_v44 = vmul.f32 0.5, %v3205_v5  ;;  %v3206_v46 = vadd.f32 1.0, %v5418_v42 }
0x1218   :  { %v3199_v10 = vmul.f32 0.7978846, %v3194_v57 }
0x1219   :  { %v3211_v47 = vmul.f32 0.5, %v3206_v46  ;;  %v3215_v49 = vmul.f32 %v3210_v44, %v3154_v60 }
0x121a   :  { %5423 = vtanh.f32 %v3199_v10 }
0x121b   :  { %v3216_v3 = vmul.f32 %v3211_v47, %v3157_v55 }
0x121c   :  { %v5420_v35 = vpop.eup %5419 }
0x121d   :  { %v3220_v22 = vpack.c.bf16 %v3216_v3, %v3215_v49  ;;  %v3207_v25 = vadd.f32 1.0, %v5420_v35 }
0x121e   :  { %v5422_v8 = vpop.eup %5421 }
0x121f   :  { %5118 = vmatmul.mubr.bf16.vlgmr.msra.gmra.mrb[144].mxu0 %v3220_v22  ;;  %v3208_v29 = vadd.f32 1.0, %v5422_v8  ;;  %v3212_v19 = vmul.f32 0.5, %v3207_v25 }
0x1220   :  { %5121 = vmatprep.mubr.msk.bf16.mxu0 %vm5472_vm2, %v5471_v58 }
0x1221   :  { %v3213_v30 = vmul.f32 0.5, %v3208_v29  ;;  %v3217_v43 = vmul.f32 %v3212_v19, %v3162_v11 }
0x1223   :  { %v3218_v41 = vmul.f32 %v3213_v30, %v3165_v52 }
0x1224   :  { %v5424_v53 = vpop.eup %5423 }
0x1225   :  { %v3221_v51 = vpack.c.bf16 %v3218_v41, %v3217_v43  ;;  %v3209_v56 = vadd.f32 1.0, %v5424_v53 }
0x1227   :  { %5122 = vmatmul.mubr.bf16.gmra.mrb[148].mxu0 %v3221_v51  ;;  %v3214_v14 = vmul.f32 0.5, %v3209_v56 }
0x1228   :  { %5125 = vmatprep.mubr.msk.bf16.mxu0 %vm5472_vm2, %v5471_v58 }
0x1229   :  { %v3219_v60 = vmul.f32 %v3214_v14, %v3170_v26 }
0x122b   :  { %v3222_v55 = vpack.c.bf16 %v3219_v60, %v3219_v60 }
0x122f   :  { %5126 = vmatmul.mubr.bf16.gmra.mrb[152].mxu0 %v3222_v55 }
0x12f2   :  { %v3322_v27 = vpop.f32.mrb[144].mxu0 }
0x12f3   :  { %v3344_v17 = vadd.f32 %v3322_v27, %v6532_v9  ;;  %v5119_v7 = vpop.f32.mrb[145].mxu0 }
0x12f4   :  { %v3325_v63 = vpop.f32.mrb[146].mxu0 }
0x12f5   :  { %v6641_v6 = vadd.f32 %v4371_v0, %v3344_v17  ;;  %v3345_v11 = vadd.f32 %v3325_v63, %v6535_v50  ;;  %v5120_v37 = vpop.f32.mrb[147].mxu0 }
0x12f7   :  { %v6644_v32 = vadd.f32 %v4371_v0, %v3345_v11  ;;  %v3361_v59 = vsel %vm231_vm1, %v6641_v6, 0.0  ;;  %v3381_v13 = vmul.f32 %v6641_v6, %v6641_v6 }
0x12f8   :  { %3362 = vadd.xlane.f32.xlu0 %v3361_v59 }
0x12f9   :  { %v3364_v16 = vsel %vm231_vm1, %v6644_v32, 0.0  ;;  %v3382_v9 = vmul.f32 %v6644_v32, %v6644_v32  ;;  %v3386_v18 = vsel %vm231_vm1, %v3381_v13, 0.0 }
0x12fa   :  { %3365 = vadd.xlane.f32.xlu1 %v3364_v16  ;;  %v3330_v52 = vpop.f32.mrb[148].mxu0 }
0x12fb   :  { %v3346_v50 = vadd.f32 %v3330_v52, %v6547_v12  ;;  %v5123_v24 = vpop.f32.mrb[149].mxu0  ;;  %v3389_v28 = vsel %vm231_vm1, %v3382_v9, 0.0  ;;  %v3359_v52 = vld [vmem:[%s6884_s7] ss:$0 sm:$0xff] }
0x12fc   :  { %3387 = vadd.xlane.f32.xlu0 %v3386_v18  ;;  %v3333_v20 = vpop.f32.mrb[150].mxu0 }
0x12fd   :  { %v6656_v21 = vadd.f32 %v4371_v0, %v3346_v50  ;;  %v3347_v61 = vadd.f32 %v3333_v20, %v6551_v15  ;;  %v5124_v2 = vpop.f32.mrb[151].mxu0 }
0x12fe   :  { %3390 = vadd.xlane.f32.xlu1 %v3389_v28 }
0x12ff   :  { %v6660_v62 = vadd.f32 %v4371_v0, %v3347_v61  ;;  %v3367_v23 = vsel %vm231_vm1, %v6656_v21, 0.0  ;;  %v3383_v12 = vmul.f32 %v6656_v21, %v6656_v21 }
0x1300   :  { %3368 = vadd.xlane.f32.xlu0 %v3367_v23  ;;  %v3360_v23 = vld [vmem:[%s6884_s7 + $0x1] ss:$0 sm:$0xff] }
0x1301   :  { %v3370_v26 = vsel %vm231_vm1, %v6660_v62, 0.0  ;;  %v3384_v45 = vmul.f32 %v6660_v62, %v6660_v62  ;;  %v3392_v34 = vsel %vm231_vm1, %v3383_v12, 0.0 }
0x1302   :  { %3371 = vadd.xlane.f32.xlu1 %v3370_v26  ;;  %v3338_v15 = vpop.f32.mrb[152].mxu0 }
0x1303   :  { %v3348_v31 = vadd.f32 %v3338_v15, %v6563_v33  ;;  %v5127_v4 = vpop.f32.mrb[153].mxu0  ;;  %v3395_v38 = vsel %vm231_vm1, %v3384_v45, 0.0 }
0x1304   :  { %3393 = vadd.xlane.f32.xlu0 %v3392_v34  ;;  %v3341_v36 = vpop.f32.mrb[154].mxu0 }
0x1305   :  { %v6672_v39 = vadd.f32 %v4371_v0, %v3348_v31  ;;  %v5128_v54 = vpop.f32.mrb[155].mxu0 }
0x1306   :  { %3396 = vadd.xlane.f32.xlu1 %v3395_v38 }
0x1307   :  { %v3373_v48 = vsel %vm231_vm1, %v6672_v39, 0.0  ;;  %v3385_v40 = vmul.f32 %v6672_v39, %v6672_v39 }
0x1308   :  { %3374 = vadd.xlane.f32.xlu0 %v3373_v48 }
0x1309   :  { %v3398_v33 = vsel %vm231_vm1, %v3385_v40, 0.0 }
0x130a   :  { %3399 = vadd.xlane.f32.xlu1 %v3398_v33 }
0x1385   :  { %v3363_v5 = vpop.xlane.xlu0 %3362 }
0x1386   :  { %v3376_v42 = vmul.f32 0.03125, %v3363_v5 }
0x1387   :  { %v3366_v57 = vpop.xlane.xlu1 %3365 }
0x1388   :  { %v3377_v44 = vmul.f32 0.03125, %v3366_v57  ;;  %v3406_v10 = vmul.f32 %v3376_v42, %v3376_v42  ;;  %v3416_v13 = vsub.f32 %v6641_v6, %v3376_v42 }
0x1389   :  { %v3388_v46 = vpop.xlane.xlu0 %3387 }
0x138a   :  { %v3401_v47 = vmul.f32 0.03125, %v3388_v46  ;;  %v3407_v3 = vmul.f32 %v3377_v44, %v3377_v44  ;;  %v3417_v50 = vsub.f32 %v6644_v32, %v3377_v44  ;;  %v3446_v44 = vld [vmem:[%s6889_s12] sm:$0x3] }
0x138b   :  { %v3391_v49 = vpop.xlane.xlu1 %3390 }
0x138c   :  { %v3411_v35 = vsub.f32 %v3401_v47, %v3406_v10  ;;  %v3402_v22 = vmul.f32 0.03125, %v3391_v49  ;;  %v5235_v10 = vld [vmem:[%s6885_s8 + $0x4] ss:$16 sps:$4 sm:$0xff]   ;;  %v3447_v47 = vpack.c.bf16 %v3446_v44, %v3446_v44  ;;  %v5233_v49 = vld [vmem:[%s6885_s8] ss:$16 sps:$4 sm:$0xff]  }
0x138d   :  { %v3369_v25 = vpop.xlane.xlu0 %3368 }
0x138e   :  { %v3421_v8 = vadd.f32 1e-06, %v3411_v35  ;;  %v3412_v29 = vsub.f32 %v3402_v22, %v3407_v3  ;;  %v3378_v19 = vmul.f32 0.03125, %v3369_v25  ;;  %v5238_v3 = vld [vmem:[%s6885_s8 + $0x24] ss:$16 sps:$4 sm:$0xff]  }
0x138f   :  { %v3372_v30 = vpop.xlane.xlu1 %3371  ;;  %v5236_v35 = vld [vmem:[%s6885_s8 + $0x20] ss:$16 sps:$4 sm:$0xff]   ;;  %v5241_v22 = vld [vmem:[%s6885_s8 + $0xc] ss:$16 sps:$4 sm:$0xff]  }
0x1390   :  { %5425 = vrsqrt.f32 %v3421_v8  ;;  %v3422_v43 = vadd.f32 1e-06, %v3412_v29  ;;  %v3379_v41 = vmul.f32 0.03125, %v3372_v30  ;;  %v3408_v51 = vmul.f32 %v3378_v19, %v3378_v19  ;;  %v5245_v25 = vld [vmem:[%s6886_s9 + $0x40] sm:$0xff]   ;;  %v5247_v29 = vld [vmem:[%s6886_s9 + $0x48] sm:$0xff]   ;;  %v5251_v30 = vld [vmem:[%s6886_s9 + $0x50] sm:$0xff]  }
0x1391   :  { %v3394_v53 = vpop.xlane.xlu0 %3393  ;;  %v3418_v12 = vsub.f32 %v6656_v21, %v3378_v19  ;;  %v5246_v8 = vld [vmem:[%s6886_s9] sm:$0xff]   ;;  %4588 = vmatprep.subr.bf16.mxu0 %v5245_v25  ;;  %v5248_v19 = vld [vmem:[%s6886_s9 + $0x8] sm:$0xff]  }
0x1392   :  { %5427 = vrsqrt.f32 %v3422_v43  ;;  %v3403_v56 = vmul.f32 0.03125, %v3394_v53  ;;  %v3409_v60 = vmul.f32 %v3379_v41, %v3379_v41  ;;  %v3419_v31 = vsub.f32 %v6660_v62, %v3379_v41  ;;  %4589 = vmatpush3.bf16.msra.mxu0 %v5246_v8  ;;  %v5252_v43 = vld [vmem:[%s6886_s9 + $0x10] sm:$0xff]   ;;  %v5255_v41 = vld [vmem:[%s6886_s9 + $0x58] sm:$0xff]  }
0x1393   :  { %v3397_v14 = vpop.xlane.xlu1 %3396  ;;  %4590 = vmatprep.subr.bf16.mxu0 %v5247_v29  ;;  %v5256_v53 = vld [vmem:[%s6886_s9 + $0x18] sm:$0xff]  }
0x1394   :  { %v3413_v55 = vsub.f32 %v3403_v56, %v3408_v51  ;;  %v3404_v27 = vmul.f32 0.03125, %v3397_v14  ;;  %v5259_v51 = vld [vmem:[%s6886_s9 + $0x60] sm:$0xff]   ;;  %v5263_v14 = vld [vmem:[%s6886_s9 + $0x68] sm:$0xff]  }
0x1395   :  { %v3375_v0 = vpop.xlane.xlu0 %3374  ;;  %v5260_v56 = vld [vmem:[%s6886_s9 + $0x20] sm:$0xff]  }
0x1396   :  { %v3423_v17 = vadd.f32 1e-06, %v3413_v55  ;;  %v3414_v7 = vsub.f32 %v3404_v27, %v3409_v60  ;;  %v3380_v63 = vmul.f32 0.03125, %v3375_v0  ;;  %4591 = vmatpush3.bf16.msra.mxu0 %v5248_v19  ;;  %v5264_v60 = vld [vmem:[%s6886_s9 + $0x28] sm:$0xff]  }
0x1397   :  { %v3400_v11 = vpop.xlane.xlu1 %3399  ;;  %4592 = vmatprep.subr.bf16.mxu0 %v5251_v30  ;;  %v5239_v27 = vld [vmem:[%s6885_s8 + $0x8] ss:$16 sps:$4 sm:$0xff]  }
0x1398   :  { %5429 = vrsqrt.f32 %v3423_v17  ;;  %v3424_v37 = vadd.f32 1e-06, %v3414_v7  ;;  %v3410_v59 = vmul.f32 %v3380_v63, %v3380_v63  ;;  %v3405_v16 = vmul.f32 0.03125, %v3400_v11  ;;  %v5244_v7 = vld [vmem:[%s6885_s8 + $0x2c] ss:$16 sps:$4 sm:$0xff]  }
0x1399   :  { %v3420_v48 = vsub.f32 %v6672_v39, %v3380_v63  ;;  %v5278_v30 = vld [vmem:[%s6887_s10 + $0x8] sm:$0xff]  }
0x139a   :  { %v5426_v9 = vpop.eup %5425  ;;  %5431 = vrsqrt.f32 %v3424_v37  ;;  %v3415_v24 = vsub.f32 %v3405_v16, %v3410_v59  ;;  %4593 = vmatpush3.bf16.msra.mxu0 %v5252_v43  ;;  %v5242_v37 = vld [vmem:[%s6885_s8 + $0x28] ss:$16 sps:$4 sm:$0xff]   ;;  %v5249_v59 = vld [vmem:[%s6886_s9 + $0xc0] sm:$0xff]   ;;  %s5473_s8 = smov [#allocation2]  }
0x139b   :  { %v3431_v18 = vmul.f32 %v5426_v9, %v3416_v13  ;;  %4594 = vmatprep.subr.bf16.mxu0 %v5255_v41  ;;  %v5250_v13 = vld [vmem:[%s6886_s9 + $0x80] sm:$0xff]   ;;  %v5253_v16 = vld [vmem:[%s6886_s9 + $0xc8] sm:$0xff]   ;;  %v5257_v9 = vld [vmem:[%s6886_s9 + $0xd0] sm:$0xff]   ;;  %s4114_s6 = sshll.u32 %s5473_s8, 4  ;;  %s4115_s6 = int_to_ptr.vmem [resolvable:$true] %s4114_s6 }
0x139c   :  { %v5428_v20 = vpop.eup %5427  ;;  %v3425_v61 = vadd.f32 1e-06, %v3415_v24  ;;  %v5262_v24 = vld [vmem:[%s6886_s9 + $0x98] sm:$0xff]   ;;  %s5446_s4 = scalar_lea.vmem %s4115_s6, 32  ;;  %p5451_p1 = scmp.lt.s32.totalorder %s4115_s6, %s4115_s6 }
0x139d   :  { %v3432_v2 = vmul.f32 %v5428_v20, %v3417_v50  ;;  %v3436_v28 = vmul.f32 %v3431_v18, %v3359_v52  ;;  %v5261_v50 = vld [vmem:[%s6886_s9 + $0xd8] sm:$0xff]   ;;  %v5265_v18 = vld [vmem:[%s6886_s9 + $0xe0] sm:$0xff]   ;;  %p5447_p0 = scmp.ne.s32.totalorder %s4115_s6, %s5446_s4  ;;  %p5452_p2 = scmp.lt.s32.totalorder %s5446_s4, %s5446_s4 }
0x139e   :  { %5433 = vrsqrt.f32 %v3425_v61  ;;  %4595 = vmatpush3.bf16.msra.mxu0 %v5256_v53  ;;  %v5266_v20 = vld [vmem:[%s6886_s9 + $0xa0] sm:$0xff]   ;;  %v5267_v61 = vld [vmem:[%s6886_s9 + $0x70] sm:$0xff]  }
0x139f   :  { %v3437_v6 = vmul.f32 %v3432_v2, %v3359_v52  ;;  %v3441_v26 = vadd.f32 %v3436_v28, %v3360_v23  ;;  %4596 = vmatprep.subr.bf16.mxu0 %v5259_v51  ;;  %v5268_v2 = vld [vmem:[%s6886_s9 + $0x30] sm:$0xff]   ;;  %v5269_v28 = vld [vmem:[%s6886_s9 + $0xe8] sm:$0xff]   ;;  %p5453_p3 = por %p5452_p2, %p5451_p1 }
0x13a1   :  { %v3442_v45 = vadd.f32 %v3437_v6, %v3360_v23  ;;  %v5270_v6 = vld [vmem:[%s6886_s9 + $0xa8] sm:$0xff]   ;;  %p5454_p4 = pnand %p5453_p3, %p5447_p0 }
0x13a2   :  { %v5430_v15 = vpop.eup %5429  ;;  %4597 = vmatpush3.bf16.msra.mxu0 %v5260_v56  ;;  %v5279_v56 = vld [vmem:[%s6887_s10 + $0x10] sm:$0xff]  }
0x13a3   :  { %v3448_v32 = vpack.c.bf16 %v3442_v45, %v3441_v26  ;;  %v3433_v4 = vmul.f32 %v5430_v15, %v3418_v12  ;;  %4598 = vmatprep.subr.bf16.mxu0 %v5263_v14  ;;  %v5272_v12 = vld [vmem:[%s6886_s9 + $0x38] sm:$0xff]   ;;  %v5273_v26 = vld [vmem:[%s6886_s9 + $0xf0] sm:$0xff]  }
0x13a4   :  { %v5432_v34 = vpop.eup %5431  ;;  %v5274_v45 = vld [vmem:[%s6886_s9 + $0xb0] sm:$0xff]   ;;  %v5275_v15 = vld [vmem:[%s6886_s9 + $0xf8] sm:$0xff]  }
0x13a5   :  { %5130 = vmatpush3.bf16.msra.mxu1 %v3448_v32  ;;  %v3434_v36 = vmul.f32 %v5432_v34, %v3419_v31  ;;  %v3438_v54 = vmul.f32 %v3433_v4, %v3359_v52  ;;  %v5276_v31 = vld [vmem:[%s6886_s9 + $0xb8] sm:$0xff]   ;;  %v3509_v32 = vlaneseq }
0x13a6   :  { %5131 = vmatprep.subr.bf16.mxu1 %v5471_v58  ;;  %4599 = vmatpush3.bf16.msra.mxu0 %v5264_v60  ;;  %v5280_v60 = vld [vmem:[%s6887_s10 + $0x18] sm:$0xff]  }
0x13a7   :  { %v3439_v38 = vmul.f32 %v3434_v36, %v3359_v52  ;;  %v3443_v33 = vadd.f32 %v3438_v54, %v3360_v23  ;;  %4600 = vmatprep.subr.bf16.mxu0 %v5267_v61  ;;  %v3510_v4 = vshrl.u32 %v3509_v32, 7  ;;  %v4373_v36 = vld [vmem:[%s6884_s7 + $0x2] ss:$8 sm:$0xf]  ;;  %v4017_v61 = vld [vmem:[%s6884_s7 + $0x4] ss:$0 sm:$0xff] }
0x13a8   :  { %v5434_v40 = vpop.eup %5433 }
0x13a9   :  { %v3444_v5 = vadd.f32 %v3439_v38, %v3360_v23  ;;  %v3435_v21 = vmul.f32 %v5434_v40, %v3420_v48  ;;  %v3511_v34 = vsub.s32 0, %v3510_v4  ;;  %v3515_v54 = vsub.s32 1, %v3510_v4 }
0x13aa   :  { %4601 = vmatpush3.bf16.msra.mxu0 %v5268_v2 }
0x13ab   :  { %v3449_v42 = vpack.c.bf16 %v3444_v5, %v3443_v33  ;;  %v3440_v57 = vmul.f32 %v3435_v21, %v3359_v52  ;;  %v5258_v52 = vld [vmem:[%s6886_s9 + $0x90] sm:$0xff]   ;;  %v3512_v38 = vrot.slane %v4373_v36, %v3511_v34  ;;  %v3516_v48 = vrot.slane %v4373_v36, %v3515_v54 }
0x13ac   :  { %v3519_v21 = vsub.s32 2, %v3510_v4 }
0x13ad   :  { %5132 = vmatpush3.bf16.msra.mxu1 %v3449_v42  ;;  %v3445_v62 = vadd.f32 %v3440_v57, %v3360_v23  ;;  %v5271_v23 = vld [vmem:[%s6886_s9 + $0x78] sm:$0xff]  }
0x13ae   :  { %5133 = vmatprep.subr.bf16.mxu1 %v5471_v58  ;;  %4602 = vmatprep.subr.bf16.mxu0 %v5271_v23 }
0x13af   :  { %v3450_v46 = vpack.c.bf16 %v3445_v62, %v3445_v62  ;;  %4603 = vmatpush3.bf16.msra.mxu0 %v5272_v12  ;;  %v3523_v62 = vsub.s32 3, %v3510_v4 }
0x13b0   :  { %5139 = vmatprep.subr.bf16.mxu0 %v5471_v58 }
0x13b1   :  { %v3455_v39 = vsel %vm1106_vm3, %v3450_v46, 0 }
0x13b2   :  { %5134 = vmatpush3.bf16.msra.mxu1 %v3455_v39  ;;  %v3520_v39 = vrot.slane %v4373_v36, %v3519_v21 }
0x13b3   :  { %3572 = vmatprep.subr.bf16.mxu1 %v5235_v10 }
0x13b5   :  { %5136 = vmatmul.mubr.msk.bf16.vlgmr.msra.gmra.mrb[188].mxu1 %vm981_vm4, %v3447_v47 }
0x13b6   :  { %3573 = vmatpush1.bf16.msra.mxu1 %v5233_v49  ;;  %3604 = vmatprep.mubr.bf16.mxu1 %v5470_v1  ;;  %v3524_v49 = vrot.slane %v4373_v36, %v3523_v62 }
0x13b7   :  { %3574 = vmatprep.subr.bf16.mxu1 %v5238_v3  ;;  %v5277_v3 = vld [vmem:[%s6887_s10] sm:$0xff]  }
0x13ba   :  { %3575 = vmatpush1.bf16.msra.mxu1 %v5236_v35 }
0x13bb   :  { %3613 = vmatprep.subr.bf16.mxu1 %v5241_v22 }
0x1488   :  { %v3491_v55 = vpop.f32.mrb[188].mxu1 }
0x1489   :  { %v3497_v0 = vpack.c.bf16 %v3491_v55, %v3491_v55  ;;  %v5137_v17 = vpop.f32.mrb[189].mxu1  ;;  %v5281_v55 = vld [vmem:[%s6887_s10 + $0x20] sm:$0xff]  }
0x148a   :  { %v3494_v63 = vpop.f32.mrb[190].mxu1  ;;  %v5284_v17 = vld [vmem:[%s6887_s10 + $0x38] sm:$0xff]  }
0x148b   :  { %4382 = vmatmul.mubr.msk.bf16.vlgmr.msra.gmra.mrb[192].mxu1 %vm231_vm1, %v3497_v0  ;;  %v5138_v11 = vpop.f32.mrb[191].mxu1 }
0x148c   :  { %3614 = vmatpush1.bf16.msra.mxu1 %v5239_v27  ;;  %3645 = vmatprep.mubr.bf16.mxu1 %v5470_v1  ;;  %v5254_v1 = vld [vmem:[%s6886_s9 + $0x88] sm:$0xff]  }
0x148d   :  { %3615 = vmatprep.subr.bf16.mxu1 %v5244_v7  ;;  %v5282_v27 = vld [vmem:[%s6887_s10 + $0x28] sm:$0xff]  }
0x1490   :  { %3616 = vmatpush1.bf16.msra.mxu1 %v5242_v37 }
0x1491   :  { %4610 = vmatprep.subr.bf16.mxu1 %v5249_v59 }
0x1493   :  { %4383 = vmatmul.mubr.msk.bf16.vlgmr.msra.gmra.mrb[196].mxu1 %vm231_vm1, %v3497_v0  ;;  %v5283_v0 = vld [vmem:[%s6887_s10 + $0x30] sm:$0xff]  }
0x1494   :  { %4611 = vmatpush3.bf16.msra.mxu1 %v5250_v13  ;;  %v3726_v13 = vld [vmem:[%s6884_s7 + $0x3] ss:$0 sm:$0xff] }
0x1495   :  { %4612 = vmatprep.subr.bf16.mxu1 %v5253_v16 }
0x1498   :  { %4613 = vmatpush3.bf16.msra.mxu1 %v5254_v1 }
0x1499   :  { %4614 = vmatprep.subr.bf16.mxu1 %v5257_v9 }
0x149c   :  { %4615 = vmatpush3.bf16.msra.mxu1 %v5258_v52 }
0x149d   :  { %4616 = vmatprep.subr.bf16.mxu1 %v5261_v50 }
0x14a0   :  { %4617 = vmatpush3.bf16.msra.mxu1 %v5262_v24 }
0x14a1   :  { %4618 = vmatprep.subr.bf16.mxu1 %v5265_v18 }
0x14a4   :  { %4619 = vmatpush3.bf16.msra.mxu1 %v5266_v20 }
0x14a5   :  { %4620 = vmatprep.subr.bf16.mxu1 %v5269_v28 }
0x14a8   :  { %4621 = vmatpush3.bf16.msra.mxu1 %v5270_v6 }
0x14a9   :  { %4622 = vmatprep.subr.bf16.mxu1 %v5273_v26 }
0x14ac   :  { %4623 = vmatpush3.bf16.msra.mxu1 %v5274_v45 }
0x14ad   :  { %4624 = vmatprep.subr.bf16.mxu1 %v5275_v15 }
0x14b0   :  { %4625 = vmatpush3.bf16.msra.mxu1 %v5276_v31 }
0x155e   :  { %v3606_v40 = vpop.f32.mrb[192].mxu1 }
0x155f   :  { %v3607_v33 = vadd.f32 %v3606_v40, %v3512_v38  ;;  %v3608_v5 = vpop.f32.mrb[193].mxu1 }
0x1560   :  { %v3609_v42 = vadd.f32 %v3608_v5, %v3516_v48  ;;  %v3610_v57 = vpop.f32.mrb[194].mxu1 }
0x1561   :  { %v3654_v44 = vmax.f32 %v3607_v33, 0.0  ;;  %v3611_v46 = vpop.f32.mrb[195].mxu1 }
0x1562   :  { %v3655_v10 = vmax.f32 %v3609_v42, 0.0 }
0x1563   :  { %v3658_v35 = vpack.c.bf16 %v3654_v44, %v3654_v44 }
0x1564   :  { %v3659_v47 = vpack.c.bf16 %v3655_v10, %v3655_v10 }
0x1566   :  { %v3647_v22 = vpop.f32.mrb[196].mxu1  ;;  %3951 = vmatprep.mubr.bf16.mxu0 %v3659_v47 }
0x1567   :  { %v3648_v25 = vadd.f32 %v3647_v22, %v3520_v39  ;;  %v3649_v8 = vpop.f32.mrb[197].mxu1  ;;  %3952 = vmatmul.mubr.bf16.vlgmr.msra.gmra.mrb[156].mxu0 %v3658_v35 }
0x1568   :  { %v3650_v29 = vadd.f32 %v3649_v8, %v3524_v49  ;;  %v3651_v19 = vpop.f32.mrb[198].mxu1  ;;  %5140 = vmatpush3.bf16.msra.mxu0 %v5277_v3  ;;  %5155 = vmatprep.mubr.msk.bf16.mxu0 %vm5472_vm2, %v5471_v58 }
0x1569   :  { %v3656_v43 = vmax.f32 %v3648_v25, 0.0  ;;  %v3652_v41 = vpop.f32.mrb[199].mxu1  ;;  %5141 = vmatprep.subr.bf16.mxu0 %v5471_v58 }
0x156a   :  { %v3657_v53 = vmax.f32 %v3650_v29, 0.0 }
0x156b   :  { %v3660_v14 = vpack.c.bf16 %v3656_v43, %v3656_v43 }
0x156c   :  { %v3661_v51 = vpack.c.bf16 %v3657_v53, %v3657_v53  ;;  %5142 = vmatpush3.bf16.msra.mxu0 %v5278_v30 }
0x156d   :  { %5143 = vmatprep.subr.bf16.mxu0 %v5471_v58 }
0x156e   :  { %3991 = vmatprep.mubr.bf16.mxu1 %v3661_v51 }
0x156f   :  { %3992 = vmatmul.mubr.bf16.vlgmr.msra.gmra.mrb[200].mxu1 %v3660_v14 }
0x1570   :  { %5144 = vmatpush3.bf16.msra.mxu0 %v5279_v56 }
0x1571   :  { %5145 = vmatprep.subr.bf16.mxu0 %v5471_v58 }
0x1574   :  { %5146 = vmatpush3.bf16.msra.mxu0 %v5280_v60 }
0x1575   :  { %5147 = vmatprep.subr.bf16.mxu0 %v5471_v58 }
0x1578   :  { %5148 = vmatpush3.bf16.msra.mxu0 %v5281_v55 }
0x1579   :  { %5149 = vmatprep.subr.bf16.mxu0 %v5471_v58 }
0x157c   :  { %5150 = vmatpush3.bf16.msra.mxu0 %v5282_v27 }
0x157d   :  { %5151 = vmatprep.subr.bf16.mxu0 %v5471_v58 }
0x1580   :  { %5152 = vmatpush3.bf16.msra.mxu0 %v5283_v0 }
0x1581   :  { %5153 = vmatprep.subr.bf16.mxu0 %v5471_v58 }
0x1584   :  { %5154 = vmatpush3.bf16.msra.mxu0 %v5284_v17 }
0x163a   :  { %v4604_v7 = vpop.f32.mrb[156].mxu0 }
0x163b   :  { %v4605_v63 = vpop.f32.mrb[157].mxu0 }
0x163c   :  { %v4606_v11 = vadd.f32 %v4605_v63, %v4604_v7  ;;  %v4607_v37 = vpop.f32.mrb[158].mxu0 }
0x163d   :  { %v4608_v59 = vpop.f32.mrb[159].mxu0 }
0x163e   :  { %v3954_v9 = vadd.f32 %v4606_v11, %v3726_v13 }
0x1642   :  { %v4626_v16 = vpop.f32.mrb[200].mxu1 }
0x1643   :  { %v4627_v1 = vpop.f32.mrb[201].mxu1 }
0x1644   :  { %v4628_v52 = vadd.f32 %v4627_v1, %v4626_v16  ;;  %v4629_v50 = vpop.f32.mrb[202].mxu1 }
0x1645   :  { %v4630_v58 = vpop.f32.mrb[203].mxu1 }
0x1646   :  { %v3994_v24 = vadd.f32 %v4628_v52, %v3954_v9 }
0x1648   :  { %v3999_v18 = vmax.f32 %v3994_v24, 0.0 }
0x164a   :  { %v4000_v20 = vpack.c.bf16 %v3999_v18, %v3999_v18 }
0x164c   :  { %5156 = vmatmul.mubr.bf16.vlgmr.msra.gmra.mrb[160].mxu0 %v4000_v20 }
0x171f   :  { %v4100_v2 = vpop.f32.mrb[160].mxu0 }
0x1720   :  { %v4101_v28 = vadd.f32 %v4100_v2, %v4017_v61  ;;  %v5157_v23 = vpop.f32.mrb[161].mxu0 }
0x1721   :  { %v4103_v6 = vpop.f32.mrb[162].mxu0 }
0x1722   :  { %v5158_v12 = vpop.f32.mrb[163].mxu0  ;;  %4107 = vst.msk [vmem:[#allocation2] sm:$0x3] %vm4106_vm5, %v4101_v28 }
0x1723   :  { %5457 = shalt.err (!%p5454_p4)
}
0x1724   :  { %s5458_s7 = scalar_lea.hbm %s6890_s13, 32 }
0x1725   :  { %p5459_p5 = scmp.ne.s32.totalorder %s6890_s13, %s5458_s7  ;;  %p5462_p6 = scmp.lt.u32.totalorder %s5458_s7, %s6890_s13 }
0x1727   :  { %p5464_p7 = pnand %p5462_p6, %p5459_p5 }
0x1729   :  { %5467 = shalt.err (!%p5464_p7)
}
0x172a   :  { %4117 = dma.vmem_to_hbm [thread:$0]  %s4115_s6, 32, %s6890_s13, [#allocation3]  }
0x172b   :  { %5468 = dma.done.wait [#allocation3], 32  }
0x172c   :  { %5469 = vsyncadd [#allocation3], 4294967264 }
0x172d   :  { %4121 = vsyncpa [#allocation3], 1 }

</bundles_post_ra>
